<compile_context>
chip_gen: v5e
topology: v5e:2x2
jax: 0.10.0
libtpu: 0.0.40
codegen_flags: <defaults>
</compile_context>

<pallas_src>
import functools

import jax
import jax.numpy as jnp
from jax.experimental import pallas as pl
from jax.experimental.pallas import tpu as pltpu

EPS = 1e-5        # nn.BatchNorm2d default eps
LANE = 128        # TPU lane width; activation channels are padded to this
K_GROUP = 2       # taps packed per GEMM along K (2 -> K=256 for v6e/v7x; use 1 on v5e)


def _cpad(c):
    return ((c + LANE - 1) // LANE) * LANE


# ---------------------------------------------------------------------------
# In-kernel helpers
# ---------------------------------------------------------------------------

def _accumulate_taps(window, w_ref, n_taps, cin, cout, m, k_group):
    """acc(M, Cout) += sum_t window(t) @ W[t]; adjacent taps packed along K."""
    acc = jnp.zeros((m, cout), jnp.float32)
    t = 0
    while t < n_taps:
        g = min(k_group, n_taps - t)
        if g == 1:
            a = window(t)
        else:
            a = jnp.concatenate([window(t + u) for u in range(g)], axis=-1)
        wk = w_ref[pl.ds(t * cin, g * cin), :]
        acc = acc + jnp.dot(a, wk, preferred_element_type=jnp.float32)
        t += g
    return acc


# ---------------------------------------------------------------------------
# Pallas kernels
# ---------------------------------------------------------------------------

def _stem_kernel(x_ref, w_ref, s_ref, b_ref, o_ref, *, oh, ow):
    """Fused stem: conv7x7/s2 (one GEMM over im2col'ed K) + BN + ReLU + maxpool.

    x_ref : (oh*ow, Kp)  bf16 im2col patches (Kp = pad(7*7*in_c) to 256)
    w_ref : (Kp, Cout)   bf16
    s_ref, b_ref : (1, Cout) f32 folded BN scale / bias
    o_ref : (oh//2, ow//2, Cout) bf16  (post max-pool)
    """
    c = o_ref.shape[-1]
    y = jnp.dot(x_ref[...], w_ref[...], preferred_element_type=jnp.float32)
    y = jnp.maximum(y * s_ref[...] + b_ref[...], 0.0)
    y = y.reshape(oh, ow, c)

    # MaxPool 3x3 / s2 / p1 (oh, ow even).  Post-ReLU values are >= 0 so a
    # zero boundary is exact for the max.
    poh, pw = oh // 2, ow // 2
    t = y.reshape(oh, pw, 2, c)
    ye, yo = t[:, :, 0, :], t[:, :, 1, :]
    yo_s = jnp.concatenate(
        [jnp.zeros((oh, 1, c), jnp.float32), yo[:, :pw - 1, :]], axis=1)
    cm = jnp.maximum(jnp.maximum(ye, yo), yo_s)          # (oh, pw, c) col-max
    t2 = cm.reshape(poh, 2, pw, c)
    ce, co = t2[:, 0, :, :], t2[:, 1, :, :]
    co_s = jnp.concatenate(
        [jnp.zeros((1, pw, c), jnp.float32), co[:poh - 1, :, :]], axis=0)
    o_ref[...] = jnp.maximum(jnp.maximum(ce, co), co_s).astype(o_ref.dtype)


def _block_kernel(*refs, stride, oh, ow, wps_in, cin, cout, k_group,
                  has_proj, fuse_head):
    """One fused BasicBlock (optionally + GAP + Linear head), one image / step.

    Conv inputs live as flat, zero-padded images (width wps = OW + pad) so
    every kernel tap is a *contiguous* (M, C) window and the whole conv is a
    handful of dense MXU GEMMs with f32 accumulation.  conv1 -> conv2 hand-off
    is staged in a VMEM scratch (no HBM round trip).
    """
    it = iter(refs)
    x_ref = next(it)
    w1, s1, b1 = next(it), next(it), next(it)
    if has_proj:
        wsc, ssc, bsc = next(it), next(it), next(it)
    w2, s2, b2 = next(it), next(it), next(it)
    if fuse_head:
        fw, fb = next(it), next(it)
    o_ref = next(it)
    y1 = next(it)                                   # VMEM scratch (conv2 input)

    wps2 = ow + 2
    m1 = oh * wps_in
    m2 = oh * wps2

    if stride == 1:
        def win1(t):                                # x_ref: (hps*wps, C) flat
            i, j = divmod(t, 3)
            return x_ref[pl.ds(i * wps_in + j, m1), :]
    else:
        def win1(t):                                # x_ref: (4, hps*wps, C) phases
            i, j = divmod(t, 3)
            return x_ref[(i % 2) * 2 + (j % 2),
                         pl.ds((i // 2) * wps_in + (j // 2), m1), :]

    # ---- conv1 + folded BN + ReLU ---------------------------------------
    acc1 = _accumulate_taps(win1, w1, 9, cin, cout, m1, k_group)
    y = jnp.maximum(acc1 * s1[...] + b1[...], 0.0)
    valid1 = y.reshape(oh, wps_in, cout)[:, :ow, :]          # drop pad columns

    # ---- shortcut branch --------------------------------------------------
    if has_proj:
        # 1x1 stride-2 conv + BN == phase (1,1) of the padded input at offset 0.
        sc = jnp.dot(x_ref[3, pl.ds(0, m1), :], wsc[...],
                     preferred_element_type=jnp.float32)
        sc = (sc * ssc[...] + bsc[...]).reshape(oh, wps_in, cout)[:, :ow, :]
    else:
        # identity: the valid window of the input itself.
        sc = x_ref[pl.ds(wps_in + 1, m1), :].astype(jnp.float32)
        sc = sc.reshape(oh, wps_in, cout)[:, :ow, :]

    # ---- stage conv1 output into conv2's zero-padded layout (VMEM) --------
    y1[...] = jnp.zeros(y1.shape, y1.dtype)
    staged = jnp.concatenate(
        [jnp.zeros((oh, 1, cout), jnp.float32), valid1,
         jnp.zeros((oh, 1, cout), jnp.float32)], axis=1)     # (oh, wps2, C)
    y1[pl.ds(wps2, m2), :] = staged.reshape(m2, cout).astype(y1.dtype)

    # ---- conv2 + folded BN + residual add + ReLU --------------------------
    def win2(t):
        i, j = divmod(t, 3)
        return y1[pl.ds(i * wps2 + j, m2), :]

    acc2 = _accumulate_taps(win2, w2, 9, cout, cout, m2, k_group)
    out = acc2 * s2[...] + b2[...]
    out = out.reshape(oh, wps2, cout)[:, :ow, :] + sc
    out = jnp.maximum(out, 0.0)

    if fuse_head:
        # Global average pool + Linear(C, 1) as VPU multiply + lane reduction.
        gap = jnp.sum(out.reshape(oh * ow, cout), axis=0, keepdims=True)
        gap = gap * (1.0 / (oh * ow))
        o_ref[...] = jnp.sum(gap * fw[...], axis=-1, keepdims=True) + fb[...]
    else:
        o_ref[...] = out.astype(o_ref.dtype)


# ---------------------------------------------------------------------------
# Wrappers (XLA side: pads / phase-split / stem im2col only)
# ---------------------------------------------------------------------------

def stem_forward(x_nhwc, prep):
    """Conv7x7/s2/p3 + BN + ReLU + MaxPool3x3/s2/p1 in one pallas_call."""
    n, h, w, cin = x_nhwc.shape
    oh = (h + 6 - 7) // 2 + 1
    ow = (w + 6 - 7) // 2 + 1
    assert oh % 2 == 0 and ow % 2 == 0, "stem+pool fusion assumes even conv output"
    poh, pw = oh // 2, ow // 2
    kp, cout = prep["stem_w"].shape
    k_real = 49 * cin

    # im2col in XLA: only in_c (=3) real channels, so the patch tensor is tiny
    # compared with a 128-lane padded activation.
    xp = jnp.pad(x_nhwc, ((0, 0), (3, 3), (3, 3), (0, 0)))
    cols = []
    for i in range(7):
        for j in range(7):
            cols.append(xp[:, i:i + 2 * oh - 1:2, j:j + 2 * ow - 1:2, :])
    pat = jnp.stack(cols, axis=3).reshape(n, oh * ow, k_real)
    pat = jnp.pad(pat, ((0, 0), (0, 0), (0, kp - k_real))).astype(jnp.bfloat16)

    return pl.pallas_call(
        functools.partial(_stem_kernel, oh=oh, ow=ow),
        out_shape=jax.ShapeDtypeStruct((n, poh, pw, cout), jnp.bfloat16),
        grid=(n,),
        in_specs=[pl.BlockSpec((None, oh * ow, kp), lambda b: (b, 0, 0)),
                  pl.BlockSpec((kp, cout), lambda b: (0, 0)),
                  pl.BlockSpec((1, cout), lambda b: (0, 0)),
                  pl.BlockSpec((1, cout), lambda b: (0, 0))],
        out_specs=pl.BlockSpec((None, poh, pw, cout), lambda b: (b, 0, 0, 0)),
        compiler_params=pltpu.CompilerParams(
            dimension_semantics=("parallel",)),
    )(pat, prep["stem_w"], prep["stem_s"], prep["stem_b"])


def basic_block(x, p, *, head=None):
    """One fused BasicBlock; if `head` is given, GAP + Linear is fused too."""
    n, h, w, c = x.shape
    stride = p["stride"]
    cout = p["w2"].shape[-1]
    has_proj = "wsc" in p
    assert stride in (1, 2)
    assert has_proj == (stride != 1), "only identity or 1x1/s2 projection shortcuts"

    if stride == 1:
        assert c == cout
        oh, ow = h, w
        hps, wps = h + 3, w + 2          # 1 top pad, 1 bottom pad + 2 junk rows
        xk = jnp.pad(x, ((0, 0), (1, 2), (1, 1), (0, 0))).reshape(n, hps * wps, c)
        x_spec = pl.BlockSpec((None, hps * wps, c), lambda b: (b, 0, 0))
    else:
        assert h % 2 == 0 and w % 2 == 0
        oh, ow = h // 2, w // 2
        hps, wps = oh + 2, ow + 1
        xp = jnp.pad(x, ((0, 0), (1, 3), (1, 1), (0, 0)))        # -> (2*hps, 2*wps)
        xk = xp.reshape(n, hps, 2, wps, 2, c).transpose(0, 2, 4, 1, 3, 5)
        xk = xk.reshape(n, 4, hps * wps, c)
        x_spec = pl.BlockSpec((None, 4, hps * wps, c), lambda b: (b, 0, 0, 0))

    # Padded-window invariants (tap windows must stay inside the flat images).
    q = 2 // stride
    assert q * wps + q + oh * wps <= hps * wps
    wps2 = ow + 2
    assert 2 * wps2 + 2 + oh * wps2 <= (oh + 3) * wps2

    def _wspec(a):
        return pl.BlockSpec(a.shape, lambda b: (0,) * a.ndim)

    args = [xk, p["w1"], p["s1"], p["b1"]]
    in_specs = [x_spec, _wspec(p["w1"]), _wspec(p["s1"]), _wspec(p["b1"])]
    if has_proj:
        args += [p["wsc"], p["ssc"], p["bsc"]]
        in_specs += [_wspec(p["wsc"]), _wspec(p["ssc"]), _wspec(p["bsc"])]
    args += [p["w2"], p["s2"], p["b2"]]
    in_specs += [_wspec(p["w2"]), _wspec(p["s2"]), _wspec(p["b2"])]
    if head is not None:
        fw, fb = head
        args += [fw, fb]
        in_specs += [_wspec(fw), _wspec(fb)]
        out_shape = jax.ShapeDtypeStruct((n, 1, 1), jnp.float32)
        out_spec = pl.BlockSpec((None, 1, 1), lambda b: (b, 0, 0))
    else:
        out_shape = jax.ShapeDtypeStruct((n, oh, ow, cout), jnp.bfloat16)
        out_spec = pl.BlockSpec((None, oh, ow, cout), lambda b: (b, 0, 0, 0))

    kern = functools.partial(
        _block_kernel, stride=stride, oh=oh, ow=ow, wps_in=wps, cin=c,
        cout=cout, k_group=K_GROUP, has_proj=has_proj, fuse_head=head is not None)

    return pl.pallas_call(
        kern,
        out_shape=out_shape,
        grid=(n,),
        in_specs=in_specs,
        out_specs=out_spec,
        scratch_shapes=[pltpu.VMEM(((oh + 3) * wps2, cout), jnp.bfloat16)],
        compiler_params=pltpu.CompilerParams(
            dimension_semantics=("parallel",)),
    )(*args)


# ---------------------------------------------------------------------------
# Parameter init (PyTorch-equivalent) and static preparation (fold/pad/cast)
# ---------------------------------------------------------------------------

def conv_init(key, kh, kw, cin, cout):
    # kaiming_normal_(mode='fan_out'): std = sqrt(2 / (cout * kh * kw))
    std = (2.0 / (cout * kh * kw)) ** 0.5
    return jax.random.normal(key, (kh, kw, cin, cout), jnp.float32) * std


def bn_init(c):
    return dict(gamma=jnp.ones((c,), jnp.float32),
                beta=jnp.zeros((c,), jnp.float32),
                mean=jnp.zeros((c,), jnp.float32),
                var=jnp.ones((c,), jnp.float32))


def resnet2d_init(key, in_c=3, num_classes=1, num_blocks=(1, 1)):
    keys = iter(jax.random.split(key, 64))
    channel = 64
    raw = dict(stem_w=conv_init(next(keys), 7, 7, in_c, channel),
               stem_bn=bn_init(channel), blocks=[])
    in_ch, out_ch, stride = channel, channel, 1
    for nb in num_blocks:
        for i in range(nb):
            s = stride if i == 0 else 1
            blk = dict(stride=s,
                       conv1_w=conv_init(next(keys), 3, 3, in_ch, out_ch),
                       bn1=bn_init(out_ch),
                       conv2_w=conv_init(next(keys), 3, 3, out_ch, out_ch),
                       bn2=bn_init(out_ch))
            if s != 1 or in_ch != out_ch:
                blk["sc_w"] = conv_init(next(keys), 1, 1, in_ch, out_ch)
                blk["sc_bn"] = bn_init(out_ch)
            raw["blocks"].append(blk)
            in_ch = out_ch
        out_ch *= 2
        stride = 2
    lim = 1.0 / (in_ch ** 0.5)                       # nn.Linear default init
    raw["fc_w"] = jax.random.uniform(next(keys), (in_ch, num_classes),
                                     jnp.float32, -lim, lim)
    raw["fc_b"] = jax.random.uniform(next(keys), (num_classes,),
                                     jnp.float32, -lim, lim)
    return raw


def _fold_bn(bn, cout, cout_p):
    scale = bn["gamma"] / jnp.sqrt(bn["var"] + EPS)
    bias = bn["beta"] - bn["mean"] * scale
    s = jnp.zeros((1, cout_p), jnp.float32).at[0, :cout].set(scale)
    b = jnp.zeros((1, cout_p), jnp.float32).at[0, :cout].set(bias)
    return s, b


def _prep_conv(w_hwio, bn):
    """Pad channels to the 128-lane width, flatten taps into one bf16 K-slab."""
    kh, kw, cin, cout = w_hwio.shape
    cin_p, cout_p = _cpad(cin), _cpad(cout)
    wp = jnp.zeros((kh * kw, cin_p, cout_p), jnp.float32)
    wp = wp.at[:, :cin, :cout].set(w_hwio.reshape(kh * kw, cin, cout))
    s, b = _fold_bn(bn, cout, cout_p)
    return wp.reshape(kh * kw * cin_p, cout_p).astype(jnp.bfloat16), s, b


def _prep_stem(w_hwio, bn):
    """Stem: pack all 7*7*in_c tap-channels along K (no 3->128 lane padding)."""
    kh, kw, cin, cout = w_hwio.shape
    k = kh * kw * cin
    kp = ((k + 255) // 256) * 256
    cout_p = _cpad(cout)
    wp = jnp.zeros((kp, cout_p), jnp.float32)
    wp = wp.at[:k, :cout].set(w_hwio.reshape(k, cout))
    s, b = _fold_bn(bn, cout, cout_p)
    return wp.astype(jnp.bfloat16), s, b


def prepare_params(raw):
    prep = dict(blocks=[])
    prep["stem_w"], prep["stem_s"], prep["stem_b"] = _prep_stem(
        raw["stem_w"], raw["stem_bn"])
    for blk in raw["blocks"]:
        p = dict(stride=blk["stride"])
        p["w1"], p["s1"], p["b1"] = _prep_conv(blk["conv1_w"], blk["bn1"])
        p["w2"], p["s2"], p["b2"] = _prep_conv(blk["conv2_w"], blk["bn2"])
        if "sc_w" in blk:
            p["wsc"], p["ssc"], p["bsc"] = _prep_conv(blk["sc_w"], blk["sc_bn"])
        prep["blocks"].append(p)
    cin, ncls = raw["fc_w"].shape
    assert ncls == 1, "head fusion specialised to num_classes=1"
    cp = _cpad(cin)
    prep["fc_w"] = jnp.zeros((1, cp), jnp.float32).at[0, :cin].set(raw["fc_w"][:, 0])
    prep["fc_b"] = raw["fc_b"].reshape(1, 1).astype(jnp.float32)
    return prep


# ---------------------------------------------------------------------------
# Forward pass
# ---------------------------------------------------------------------------

def resnet2d_forward(prep, x_nchw):
    x = jnp.transpose(x_nchw, (0, 2, 3, 1)).astype(jnp.float32)   # NCHW -> NHWC
    x = stem_forward(x, prep)                      # (N, H/4, W/4, 128) bf16
    blocks = prep["blocks"]
    for i, p in enumerate(blocks):
        head = (prep["fc_w"], prep["fc_b"]) if i == len(blocks) - 1 else None
        x = basic_block(x, p, head=head)
    return x.reshape(x.shape[0], 1)                # (N, 1) f32 logits


if __name__ == "__main__":
    key = jax.random.PRNGKey(0)
    pkey, xkey = jax.random.split(key)
    raw_params = resnet2d_init(pkey, in_c=3, num_classes=1, num_blocks=(1, 1))
    prep_params = prepare_params(raw_params)
    x = jax.random.normal(xkey, (2, 3, 16, 16), jnp.float32)      # NCHW input
    fwd = jax.jit(lambda inp: resnet2d_forward(prep_params, inp))
    out = fwd(x)
    jax.block_until_ready(out)
    assert out.shape == (2, 1) and out.dtype == jnp.float32
    assert bool(jnp.all(jnp.isfinite(out)))
    print("KERNEL_OK")
</pallas_src>

<mosaic_0001>
module attributes {stable_mosaic.version = 11 : i64} {
  func.func @_stem_kernel(%arg0: i32, %arg1: memref<1x64x256xbf16, #tpu.memory_space<vmem>>, %arg2: memref<256x128xbf16, #tpu.memory_space<vmem>>, %arg3: memref<1x128xf32, #tpu.memory_space<vmem>>, %arg4: memref<1x128xf32, #tpu.memory_space<vmem>>, %arg5: memref<1x4x4x128xbf16, #tpu.memory_space<vmem>>) attributes {dimension_semantics = [#tpu.dimension_semantics<parallel>], iteration_bounds = array<i64: 2>, scalar_prefetch = 0 : i64, scratch_operands = 0 : i64, tpu.core_type = #tpu.core_type<tc>, window_params = [{transform_indices = @transform_0, window_bounds = array<i64: 1, 64, 256>}, {pipeline_mode = #tpu.pipeline_mode<synchronous>, transform_indices = @transform_1, window_bounds = array<i64: 256, 128>}, {pipeline_mode = #tpu.pipeline_mode<synchronous>, transform_indices = @transform_2, window_bounds = array<i64: 1, 128>}, {pipeline_mode = #tpu.pipeline_mode<synchronous>, transform_indices = @transform_3, window_bounds = array<i64: 1, 128>}, {transform_indices = @transform_4, window_bounds = array<i64: 1, 4, 4, 128>}]} {
    %c0 = arith.constant 0 : index
    %c0_0 = arith.constant 0 : index
    %c0_1 = arith.constant 0 : index
    %0 = vector.load %arg1[%c0, %c0_0, %c0_1] : memref<1x64x256xbf16, #tpu.memory_space<vmem>>, vector<1x64x256xbf16>
    %1 = vector.shape_cast %0 : vector<1x64x256xbf16> to vector<64x256xbf16>
    %c0_2 = arith.constant 0 : index
    %c0_3 = arith.constant 0 : index
    %2 = vector.load %arg2[%c0_2, %c0_3] : memref<256x128xbf16, #tpu.memory_space<vmem>>, vector<256x128xbf16>
    %cst = arith.constant dense<0.000000e+00> : vector<64x128xf32>
    %3 = tpu.matmul %1, %2, %cst {dimension_numbers = #tpu.dot_dimension_numbers<[1], [0], [0], [1], [0, 0, 1, 1], [], []>} : vector<64x256xbf16>, vector<256x128xbf16>, vector<64x128xf32> -> vector<64x128xf32>
    %c0_4 = arith.constant 0 : index
    %c0_5 = arith.constant 0 : index
    %4 = vector.load %arg3[%c0_4, %c0_5] : memref<1x128xf32, #tpu.memory_space<vmem>>, vector<1x128xf32>
    %5 = vector.broadcast %4 : vector<1x128xf32> to vector<64x128xf32>
    %6 = arith.mulf %3, %5 : vector<64x128xf32>
    %c0_6 = arith.constant 0 : index
    %c0_7 = arith.constant 0 : index
    %7 = vector.load %arg4[%c0_6, %c0_7] : memref<1x128xf32, #tpu.memory_space<vmem>>, vector<1x128xf32>
    %8 = vector.broadcast %7 : vector<1x128xf32> to vector<64x128xf32>
    %9 = arith.addf %6, %8 : vector<64x128xf32>
    %cst_8 = arith.constant 0.000000e+00 : f32
    %10 = vector.broadcast %cst_8 : f32 to vector<64x128xf32>
    %11 = arith.maximumf %9, %10 : vector<64x128xf32>
    %12 = vector.shape_cast %11 : vector<64x128xf32> to vector<8x8x128xf32>
    %13 = vector.shape_cast %12 : vector<8x8x128xf32> to vector<8x4x2x128xf32>
    %14 = vector.extract_strided_slice %13 {offsets = [0, 0, 0, 0], sizes = [8, 4, 1, 128], strides = [1, 1, 1, 1]} : vector<8x4x2x128xf32> to vector<8x4x1x128xf32>
    %15 = vector.shape_cast %14 : vector<8x4x1x128xf32> to vector<8x4x128xf32>
    %16 = vector.extract_strided_slice %13 {offsets = [0, 0, 1, 0], sizes = [8, 4, 1, 128], strides = [1, 1, 1, 1]} : vector<8x4x2x128xf32> to vector<8x4x1x128xf32>
    %17 = vector.shape_cast %16 : vector<8x4x1x128xf32> to vector<8x4x128xf32>
    %cst_9 = arith.constant 0.000000e+00 : f32
    %18 = vector.broadcast %cst_9 : f32 to vector<8x1x128xf32>
    %19 = vector.extract_strided_slice %17 {offsets = [0, 0, 0], sizes = [8, 3, 128], strides = [1, 1, 1]} : vector<8x4x128xf32> to vector<8x3x128xf32>
    %20 = tpu.concatenate %18, %19 in 1 : vector<8x1x128xf32>, vector<8x3x128xf32> -> vector<8x4x128xf32>
    %21 = arith.maximumf %15, %17 : vector<8x4x128xf32>
    %22 = arith.maximumf %21, %20 : vector<8x4x128xf32>
    %23 = vector.shape_cast %22 : vector<8x4x128xf32> to vector<4x2x4x128xf32>
    %24 = vector.extract_strided_slice %23 {offsets = [0, 0, 0, 0], sizes = [4, 1, 4, 128], strides = [1, 1, 1, 1]} : vector<4x2x4x128xf32> to vector<4x1x4x128xf32>
    %25 = vector.shape_cast %24 : vector<4x1x4x128xf32> to vector<4x4x128xf32>
    %26 = vector.extract_strided_slice %23 {offsets = [0, 1, 0, 0], sizes = [4, 1, 4, 128], strides = [1, 1, 1, 1]} : vector<4x2x4x128xf32> to vector<4x1x4x128xf32>
    %27 = vector.shape_cast %26 : vector<4x1x4x128xf32> to vector<4x4x128xf32>
    %cst_10 = arith.constant 0.000000e+00 : f32
    %28 = vector.broadcast %cst_10 : f32 to vector<1x4x128xf32>
    %29 = vector.extract_strided_slice %27 {offsets = [0, 0, 0], sizes = [3, 4, 128], strides = [1, 1, 1]} : vector<4x4x128xf32> to vector<3x4x128xf32>
    %30 = tpu.concatenate %28, %29 in 0 : vector<1x4x128xf32>, vector<3x4x128xf32> -> vector<4x4x128xf32>
    %31 = arith.maximumf %25, %27 : vector<4x4x128xf32>
    %32 = arith.maximumf %31, %30 : vector<4x4x128xf32>
    %33 = arith.truncf %32 : vector<4x4x128xf32> to vector<4x4x128xbf16>
    %c0_11 = arith.constant 0 : index
    %c0_12 = arith.constant 0 : index
    %c0_13 = arith.constant 0 : index
    %c0_14 = arith.constant 0 : index
    %34 = vector.load %arg5[%c0_11, %c0_12, %c0_13, %c0_14] : memref<1x4x4x128xbf16, #tpu.memory_space<vmem>>, vector<1x4x4x128xbf16>
    %35 = vector.shape_cast %34 : vector<1x4x4x128xbf16> to vector<4x4x128xbf16>
    %36 = vector.shape_cast %33 : vector<4x4x128xbf16> to vector<1x4x4x128xbf16>
    tpu.vector_store %arg5[%c0_11, %c0_12, %c0_13, %c0_14], %36 {strides = array<i32>} : memref<1x4x4x128xbf16, #tpu.memory_space<vmem>>, vector<1x4x4x128xbf16>,
    return
  }
  func.func @transform_0(%arg0: i32) -> (i32, i32, i32) {
    %c0_i32 = arith.constant 0 : i32
    %c0_i32_0 = arith.constant 0 : i32
    %c0_i32_1 = arith.constant 0 : i32
    return %arg0, %c0_i32, %c0_i32_0 : i32, i32, i32
  }
  func.func @transform_1(%arg0: i32) -> (i32, i32) {
    %c0_i32 = arith.constant 0 : i32
    %c0_i32_0 = arith.constant 0 : i32
    %c0_i32_1 = arith.constant 0 : i32
    return %c0_i32, %c0_i32_0 : i32, i32
  }
  func.func @transform_2(%arg0: i32) -> (i32, i32) {
    %c0_i32 = arith.constant 0 : i32
    %c0_i32_0 = arith.constant 0 : i32
    %c0_i32_1 = arith.constant 0 : i32
    return %c0_i32, %c0_i32_0 : i32, i32
  }
  func.func @transform_3(%arg0: i32) -> (i32, i32) {
    %c0_i32 = arith.constant 0 : i32
    %c0_i32_0 = arith.constant 0 : i32
    %c0_i32_1 = arith.constant 0 : i32
    return %c0_i32, %c0_i32_0 : i32, i32
  }
  func.func @transform_4(%arg0: i32) -> (i32, i32, i32, i32) {
    %c0_i32 = arith.constant 0 : i32
    %c0_i32_0 = arith.constant 0 : i32
    %c0_i32_1 = arith.constant 0 : i32
    %c0_i32_2 = arith.constant 0 : i32
    return %arg0, %c0_i32, %c0_i32_0, %c0_i32_1 : i32, i32, i32, i32
  }
}

module attributes {stable_mosaic.version = 11 : i64} {
  func.func @_block_kernel(%arg0: i32, %arg1: memref<1x42x128xbf16, #tpu.memory_space<vmem>>, %arg2: memref<1152x128xbf16, #tpu.memory_space<vmem>>, %arg3: memref<1x128xf32, #tpu.memory_space<vmem>>, %arg4: memref<1x128xf32, #tpu.memory_space<vmem>>, %arg5: memref<1152x128xbf16, #tpu.memory_space<vmem>>, %arg6: memref<1x128xf32, #tpu.memory_space<vmem>>, %arg7: memref<1x128xf32, #tpu.memory_space<vmem>>, %arg8: memref<1x4x4x128xbf16, #tpu.memory_space<vmem>>, %arg9: memref<42x128xbf16, #tpu.memory_space<vmem>>) attributes {dimension_semantics = [#tpu.dimension_semantics<parallel>], iteration_bounds = array<i64: 2>, scalar_prefetch = 0 : i64, scratch_operands = 1 : i64, tpu.core_type = #tpu.core_type<tc>, window_params = [{transform_indices = @transform_0, window_bounds = array<i64: 1, 42, 128>}, {pipeline_mode = #tpu.pipeline_mode<synchronous>, transform_indices = @transform_1, window_bounds = array<i64: 1152, 128>}, {pipeline_mode = #tpu.pipeline_mode<synchronous>, transform_indices = @transform_2, window_bounds = array<i64: 1, 128>}, {pipeline_mode = #tpu.pipeline_mode<synchronous>, transform_indices = @transform_3, window_bounds = array<i64: 1, 128>}, {pipeline_mode = #tpu.pipeline_mode<synchronous>, transform_indices = @transform_4, window_bounds = array<i64: 1152, 128>}, {pipeline_mode = #tpu.pipeline_mode<synchronous>, transform_indices = @transform_5, window_bounds = array<i64: 1, 128>}, {pipeline_mode = #tpu.pipeline_mode<synchronous>, transform_indices = @transform_6, window_bounds = array<i64: 1, 128>}, {transform_indices = @transform_7, window_bounds = array<i64: 1, 4, 4, 128>}]} {
    %cst = arith.constant 0.000000e+00 : f32
    %0 = vector.broadcast %cst : f32 to vector<24x128xf32>
    %c0 = arith.constant 0 : index
    %c0_0 = arith.constant 0 : index
    %c0_1 = arith.constant 0 : index
    %1 = vector.load %arg1[%c0, %c0_0, %c0_1] : memref<1x42x128xbf16, #tpu.memory_space<vmem>>, vector<1x24x128xbf16>
    %2 = vector.shape_cast %1 : vector<1x24x128xbf16> to vector<24x128xbf16>
    %c0_2 = arith.constant 0 : index
    %c1 = arith.constant 1 : index
    %c0_3 = arith.constant 0 : index
    %3 = vector.load %arg1[%c0_2, %c1, %c0_3] : memref<1x42x128xbf16, #tpu.memory_space<vmem>>, vector<1x24x128xbf16>
    %4 = vector.shape_cast %3 : vector<1x24x128xbf16> to vector<24x128xbf16>
    %5 = tpu.concatenate %2, %4 in 1 : vector<24x128xbf16>, vector<24x128xbf16> -> vector<24x256xbf16>
    %c0_4 = arith.constant 0 : index
    %c0_5 = arith.constant 0 : index
    %6 = vector.load %arg2[%c0_4, %c0_5] : memref<1152x128xbf16, #tpu.memory_space<vmem>>, vector<256x128xbf16>
    %cst_6 = arith.constant dense<0.000000e+00> : vector<24x128xf32>
    %7 = tpu.matmul %5, %6, %cst_6 {dimension_numbers = #tpu.dot_dimension_numbers<[1], [0], [0], [1], [0, 0, 1, 1], [], []>} : vector<24x256xbf16>, vector<256x128xbf16>, vector<24x128xf32> -> vector<24x128xf32>
    %8 = arith.addf %0, %7 : vector<24x128xf32>
    %c0_7 = arith.constant 0 : index
    %c2 = arith.constant 2 : index
    %c0_8 = arith.constant 0 : index
    %9 = vector.load %arg1[%c0_7, %c2, %c0_8] : memref<1x42x128xbf16, #tpu.memory_space<vmem>>, vector<1x24x128xbf16>
    %10 = vector.shape_cast %9 : vector<1x24x128xbf16> to vector<24x128xbf16>
    %c0_9 = arith.constant 0 : index
    %c6 = arith.constant 6 : index
    %c0_10 = arith.constant 0 : index
    %11 = vector.load %arg1[%c0_9, %c6, %c0_10] : memref<1x42x128xbf16, #tpu.memory_space<vmem>>, vector<1x24x128xbf16>
    %12 = vector.shape_cast %11 : vector<1x24x128xbf16> to vector<24x128xbf16>
    %13 = tpu.concatenate %10, %12 in 1 : vector<24x128xbf16>, vector<24x128xbf16> -> vector<24x256xbf16>
    %c256 = arith.constant 256 : index
    %c0_11 = arith.constant 0 : index
    %14 = vector.load %arg2[%c256, %c0_11] : memref<1152x128xbf16, #tpu.memory_space<vmem>>, vector<256x128xbf16>
    %cst_12 = arith.constant dense<0.000000e+00> : vector<24x128xf32>
    %15 = tpu.matmul %13, %14, %cst_12 {dimension_numbers = #tpu.dot_dimension_numbers<[1], [0], [0], [1], [0, 0, 1, 1], [], []>} : vector<24x256xbf16>, vector<256x128xbf16>, vector<24x128xf32> -> vector<24x128xf32>
    %16 = arith.addf %8, %15 : vector<24x128xf32>
    %c0_13 = arith.constant 0 : index
    %c7 = arith.constant 7 : index
    %c0_14 = arith.constant 0 : index
    %17 = vector.load %arg1[%c0_13, %c7, %c0_14] : memref<1x42x128xbf16, #tpu.memory_space<vmem>>, vector<1x24x128xbf16>
    %18 = vector.shape_cast %17 : vector<1x24x128xbf16> to vector<24x128xbf16>
    %c0_15 = arith.constant 0 : index
    %c8 = arith.constant 8 : index
    %c0_16 = arith.constant 0 : index
    %19 = vector.load %arg1[%c0_15, %c8, %c0_16] : memref<1x42x128xbf16, #tpu.memory_space<vmem>>, vector<1x24x128xbf16>
    %20 = vector.shape_cast %19 : vector<1x24x128xbf16> to vector<24x128xbf16>
    %21 = tpu.concatenate %18, %20 in 1 : vector<24x128xbf16>, vector<24x128xbf16> -> vector<24x256xbf16>
    %c512 = arith.constant 512 : index
    %c0_17 = arith.constant 0 : index
    %22 = vector.load %arg2[%c512, %c0_17] : memref<1152x128xbf16, #tpu.memory_space<vmem>>, vector<256x128xbf16>
    %cst_18 = arith.constant dense<0.000000e+00> : vector<24x128xf32>
    %23 = tpu.matmul %21, %22, %cst_18 {dimension_numbers = #tpu.dot_dimension_numbers<[1], [0], [0], [1], [0, 0, 1, 1], [], []>} : vector<24x256xbf16>, vector<256x128xbf16>, vector<24x128xf32> -> vector<24x128xf32>
    %24 = arith.addf %16, %23 : vector<24x128xf32>
    %c0_19 = arith.constant 0 : index
    %c12 = arith.constant 12 : index
    %c0_20 = arith.constant 0 : index
    %25 = vector.load %arg1[%c0_19, %c12, %c0_20] : memref<1x42x128xbf16, #tpu.memory_space<vmem>>, vector<1x24x128xbf16>
    %26 = vector.shape_cast %25 : vector<1x24x128xbf16> to vector<24x128xbf16>
    %c0_21 = arith.constant 0 : index
    %c13 = arith.constant 13 : index
    %c0_22 = arith.constant 0 : index
    %27 = vector.load %arg1[%c0_21, %c13, %c0_22] : memref<1x42x128xbf16, #tpu.memory_space<vmem>>, vector<1x24x128xbf16>
    %28 = vector.shape_cast %27 : vector<1x24x128xbf16> to vector<24x128xbf16>
    %29 = tpu.concatenate %26, %28 in 1 : vector<24x128xbf16>, vector<24x128xbf16> -> vector<24x256xbf16>
    %c768 = arith.constant 768 : index
    %c0_23 = arith.constant 0 : index
    %30 = vector.load %arg2[%c768, %c0_23] : memref<1152x128xbf16, #tpu.memory_space<vmem>>, vector<256x128xbf16>
    %cst_24 = arith.constant dense<0.000000e+00> : vector<24x128xf32>
    %31 = tpu.matmul %29, %30, %cst_24 {dimension_numbers = #tpu.dot_dimension_numbers<[1], [0], [0], [1], [0, 0, 1, 1], [], []>} : vector<24x256xbf16>, vector<256x128xbf16>, vector<24x128xf32> -> vector<24x128xf32>
    %32 = arith.addf %24, %31 : vector<24x128xf32>
    %c0_25 = arith.constant 0 : index
    %c14 = arith.constant 14 : index
    %c0_26 = arith.constant 0 : index
    %33 = vector.load %arg1[%c0_25, %c14, %c0_26] : memref<1x42x128xbf16, #tpu.memory_space<vmem>>, vector<1x24x128xbf16>
    %34 = vector.shape_cast %33 : vector<1x24x128xbf16> to vector<24x128xbf16>
    %c1024 = arith.constant 1024 : index
    %c0_27 = arith.constant 0 : index
    %35 = vector.load %arg2[%c1024, %c0_27] : memref<1152x128xbf16, #tpu.memory_space<vmem>>, vector<128x128xbf16>
    %cst_28 = arith.constant dense<0.000000e+00> : vector<24x128xf32>
    %36 = tpu.matmul %34, %35, %cst_28 {dimension_numbers = #tpu.dot_dimension_numbers<[1], [0], [0], [1], [0, 0, 1, 1], [], []>} : vector<24x128xbf16>, vector<128x128xbf16>, vector<24x128xf32> -> vector<24x128xf32>
    %37 = arith.addf %32, %36 : vector<24x128xf32>
    %c0_29 = arith.constant 0 : index
    %c0_30 = arith.constant 0 : index
    %38 = vector.load %arg3[%c0_29, %c0_30] : memref<1x128xf32, #tpu.memory_space<vmem>>, vector<1x128xf32>
    %39 = vector.broadcast %38 : vector<1x128xf32> to vector<24x128xf32>
    %40 = arith.mulf %37, %39 : vector<24x128xf32>
    %c0_31 = arith.constant 0 : index
    %c0_32 = arith.constant 0 : index
    %41 = vector.load %arg4[%c0_31, %c0_32] : memref<1x128xf32, #tpu.memory_space<vmem>>, vector<1x128xf32>
    %42 = vector.broadcast %41 : vector<1x128xf32> to vector<24x128xf32>
    %43 = arith.addf %40, %42 : vector<24x128xf32>
    %cst_33 = arith.constant 0.000000e+00 : f32
    %44 = vector.broadcast %cst_33 : f32 to vector<24x128xf32>
    %45 = arith.maximumf %43, %44 : vector<24x128xf32>
    %46 = vector.shape_cast %45 : vector<24x128xf32> to vector<4x6x128xf32>
    %47 = vector.extract_strided_slice %46 {offsets = [0, 0, 0], sizes = [4, 4, 128], strides = [1, 1, 1]} : vector<4x6x128xf32> to vector<4x4x128xf32>
    %c0_34 = arith.constant 0 : index
    %c7_35 = arith.constant 7 : index
    %c0_36 = arith.constant 0 : index
    %48 = vector.load %arg1[%c0_34, %c7_35, %c0_36] : memref<1x42x128xbf16, #tpu.memory_space<vmem>>, vector<1x24x128xbf16>
    %49 = vector.shape_cast %48 : vector<1x24x128xbf16> to vector<24x128xbf16>
    %50 = arith.extf %49 : vector<24x128xbf16> to vector<24x128xf32>
    %51 = vector.shape_cast %50 : vector<24x128xf32> to vector<4x6x128xf32>
    %52 = vector.extract_strided_slice %51 {offsets = [0, 0, 0], sizes = [4, 4, 128], strides = [1, 1, 1]} : vector<4x6x128xf32> to vector<4x4x128xf32>
    %cst_37 = arith.constant 0.000000e+00 : bf16
    %53 = vector.broadcast %cst_37 : bf16 to vector<42x128xbf16>
    %c0_38 = arith.constant 0 : index
    %c0_39 = arith.constant 0 : index
    %54 = vector.load %arg9[%c0_38, %c0_39] : memref<42x128xbf16, #tpu.memory_space<vmem>>, vector<42x128xbf16>
    tpu.vector_store %arg9[%c0_38, %c0_39], %53 {strides = array<i32>} : memref<42x128xbf16, #tpu.memory_space<vmem>>, vector<42x128xbf16>,
    %cst_40 = arith.constant 0.000000e+00 : f32
    %55 = vector.broadcast %cst_40 : f32 to vector<4x1x128xf32>
    %cst_41 = arith.constant 0.000000e+00 : f32
    %56 = vector.broadcast %cst_41 : f32 to vector<4x1x128xf32>
    %57 = tpu.concatenate %55, %47, %56 in 1 : vector<4x1x128xf32>, vector<4x4x128xf32>, vector<4x1x128xf32> -> vector<4x6x128xf32>
    %58 = vector.shape_cast %57 : vector<4x6x128xf32> to vector<24x128xf32>
    %59 = arith.truncf %58 : vector<24x128xf32> to vector<24x128xbf16>
    %c6_42 = arith.constant 6 : index
    %c0_43 = arith.constant 0 : index
    %60 = vector.load %arg9[%c6_42, %c0_43] : memref<42x128xbf16, #tpu.memory_space<vmem>>, vector<24x128xbf16>
    tpu.vector_store %arg9[%c6_42, %c0_43], %59 {strides = array<i32>} : memref<42x128xbf16, #tpu.memory_space<vmem>>, vector<24x128xbf16>,
    %cst_44 = arith.constant 0.000000e+00 : f32
    %61 = vector.broadcast %cst_44 : f32 to vector<24x128xf32>
    %c0_45 = arith.constant 0 : index
    %c0_46 = arith.constant 0 : index
    %62 = vector.load %arg9[%c0_45, %c0_46] : memref<42x128xbf16, #tpu.memory_space<vmem>>, vector<24x128xbf16>
    %c1_47 = arith.constant 1 : index
    %c0_48 = arith.constant 0 : index
    %63 = vector.load %arg9[%c1_47, %c0_48] : memref<42x128xbf16, #tpu.memory_space<vmem>>, vector<24x128xbf16>
    %64 = tpu.concatenate %62, %63 in 1 : vector<24x128xbf16>, vector<24x128xbf16> -> vector<24x256xbf16>
    %c0_49 = arith.constant 0 : index
    %c0_50 = arith.constant 0 : index
    %65 = vector.load %arg5[%c0_49, %c0_50] : memref<1152x128xbf16, #tpu.memory_space<vmem>>, vector<256x128xbf16>
    %cst_51 = arith.constant dense<0.000000e+00> : vector<24x128xf32>
    %66 = tpu.matmul %64, %65, %cst_51 {dimension_numbers = #tpu.dot_dimension_numbers<[1], [0], [0], [1], [0, 0, 1, 1], [], []>} : vector<24x256xbf16>, vector<256x128xbf16>, vector<24x128xf32> -> vector<24x128xf32>
    %67 = arith.addf %61, %66 : vector<24x128xf32>
    %c2_52 = arith.constant 2 : index
    %c0_53 = arith.constant 0 : index
    %68 = vector.load %arg9[%c2_52, %c0_53] : memref<42x128xbf16, #tpu.memory_space<vmem>>, vector<24x128xbf16>
    %c6_54 = arith.constant 6 : index
    %c0_55 = arith.constant 0 : index
    %69 = vector.load %arg9[%c6_54, %c0_55] : memref<42x128xbf16, #tpu.memory_space<vmem>>, vector<24x128xbf16>
    %70 = tpu.concatenate %68, %69 in 1 : vector<24x128xbf16>, vector<24x128xbf16> -> vector<24x256xbf16>
    %c256_56 = arith.constant 256 : index
    %c0_57 = arith.constant 0 : index
    %71 = vector.load %arg5[%c256_56, %c0_57] : memref<1152x128xbf16, #tpu.memory_space<vmem>>, vector<256x128xbf16>
    %cst_58 = arith.constant dense<0.000000e+00> : vector<24x128xf32>
    %72 = tpu.matmul %70, %71, %cst_58 {dimension_numbers = #tpu.dot_dimension_numbers<[1], [0], [0], [1], [0, 0, 1, 1], [], []>} : vector<24x256xbf16>, vector<256x128xbf16>, vector<24x128xf32> -> vector<24x128xf32>
    %73 = arith.addf %67, %72 : vector<24x128xf32>
    %c7_59 = arith.constant 7 : index
    %c0_60 = arith.constant 0 : index
    %74 = vector.load %arg9[%c7_59, %c0_60] : memref<42x128xbf16, #tpu.memory_space<vmem>>, vector<24x128xbf16>
    %c8_61 = arith.constant 8 : index
    %c0_62 = arith.constant 0 : index
    %75 = vector.load %arg9[%c8_61, %c0_62] : memref<42x128xbf16, #tpu.memory_space<vmem>>, vector<24x128xbf16>
    %76 = tpu.concatenate %74, %75 in 1 : vector<24x128xbf16>, vector<24x128xbf16> -> vector<24x256xbf16>
    %c512_63 = arith.constant 512 : index
    %c0_64 = arith.constant 0 : index
    %77 = vector.load %arg5[%c512_63, %c0_64] : memref<1152x128xbf16, #tpu.memory_space<vmem>>, vector<256x128xbf16>
    %cst_65 = arith.constant dense<0.000000e+00> : vector<24x128xf32>
    %78 = tpu.matmul %76, %77, %cst_65 {dimension_numbers = #tpu.dot_dimension_numbers<[1], [0], [0], [1], [0, 0, 1, 1], [], []>} : vector<24x256xbf16>, vector<256x128xbf16>, vector<24x128xf32> -> vector<24x128xf32>
    %79 = arith.addf %73, %78 : vector<24x128xf32>
    %c12_66 = arith.constant 12 : index
    %c0_67 = arith.constant 0 : index
    %80 = vector.load %arg9[%c12_66, %c0_67] : memref<42x128xbf16, #tpu.memory_space<vmem>>, vector<24x128xbf16>
    %c13_68 = arith.constant 13 : index
    %c0_69 = arith.constant 0 : index
    %81 = vector.load %arg9[%c13_68, %c0_69] : memref<42x128xbf16, #tpu.memory_space<vmem>>, vector<24x128xbf16>
    %82 = tpu.concatenate %80, %81 in 1 : vector<24x128xbf16>, vector<24x128xbf16> -> vector<24x256xbf16>
    %c768_70 = arith.constant 768 : index
    %c0_71 = arith.constant 0 : index
    %83 = vector.load %arg5[%c768_70, %c0_71] : memref<1152x128xbf16, #tpu.memory_space<vmem>>, vector<256x128xbf16>
    %cst_72 = arith.constant dense<0.000000e+00> : vector<24x128xf32>
    %84 = tpu.matmul %82, %83, %cst_72 {dimension_numbers = #tpu.dot_dimension_numbers<[1], [0], [0], [1], [0, 0, 1, 1], [], []>} : vector<24x256xbf16>, vector<256x128xbf16>, vector<24x128xf32> -> vector<24x128xf32>
    %85 = arith.addf %79, %84 : vector<24x128xf32>
    %c14_73 = arith.constant 14 : index
    %c0_74 = arith.constant 0 : index
    %86 = vector.load %arg9[%c14_73, %c0_74] : memref<42x128xbf16, #tpu.memory_space<vmem>>, vector<24x128xbf16>
    %c1024_75 = arith.constant 1024 : index
    %c0_76 = arith.constant 0 : index
    %87 = vector.load %arg5[%c1024_75, %c0_76] : memref<1152x128xbf16, #tpu.memory_space<vmem>>, vector<128x128xbf16>
    %cst_77 = arith.constant dense<0.000000e+00> : vector<24x128xf32>
    %88 = tpu.matmul %86, %87, %cst_77 {dimension_numbers = #tpu.dot_dimension_numbers<[1], [0], [0], [1], [0, 0, 1, 1], [], []>} : vector<24x128xbf16>, vector<128x128xbf16>, vector<24x128xf32> -> vector<24x128xf32>
    %89 = arith.addf %85, %88 : vector<24x128xf32>
    %c0_78 = arith.constant 0 : index
    %c0_79 = arith.constant 0 : index
    %90 = vector.load %arg6[%c0_78, %c0_79] : memref<1x128xf32, #tpu.memory_space<vmem>>, vector<1x128xf32>
    %91 = vector.broadcast %90 : vector<1x128xf32> to vector<24x128xf32>
    %92 = arith.mulf %89, %91 : vector<24x128xf32>
    %c0_80 = arith.constant 0 : index
    %c0_81 = arith.constant 0 : index
    %93 = vector.load %arg7[%c0_80, %c0_81] : memref<1x128xf32, #tpu.memory_space<vmem>>, vector<1x128xf32>
    %94 = vector.broadcast %93 : vector<1x128xf32> to vector<24x128xf32>
    %95 = arith.addf %92, %94 : vector<24x128xf32>
    %96 = vector.shape_cast %95 : vector<24x128xf32> to vector<4x6x128xf32>
    %97 = vector.extract_strided_slice %96 {offsets = [0, 0, 0], sizes = [4, 4, 128], strides = [1, 1, 1]} : vector<4x6x128xf32> to vector<4x4x128xf32>
    %98 = arith.addf %97, %52 : vector<4x4x128xf32>
    %cst_82 = arith.constant 0.000000e+00 : f32
    %99 = vector.broadcast %cst_82 : f32 to vector<4x4x128xf32>
    %100 = arith.maximumf %98, %99 : vector<4x4x128xf32>
    %101 = arith.truncf %100 : vector<4x4x128xf32> to vector<4x4x128xbf16>
    %c0_83 = arith.constant 0 : index
    %c0_84 = arith.constant 0 : index
    %c0_85 = arith.constant 0 : index
    %c0_86 = arith.constant 0 : index
    %102 = vector.load %arg8[%c0_83, %c0_84, %c0_85, %c0_86] : memref<1x4x4x128xbf16, #tpu.memory_space<vmem>>, vector<1x4x4x128xbf16>
    %103 = vector.shape_cast %102 : vector<1x4x4x128xbf16> to vector<4x4x128xbf16>
    %104 = vector.shape_cast %101 : vector<4x4x128xbf16> to vector<1x4x4x128xbf16>
    tpu.vector_store %arg8[%c0_83, %c0_84, %c0_85, %c0_86], %104 {strides = array<i32>} : memref<1x4x4x128xbf16, #tpu.memory_space<vmem>>, vector<1x4x4x128xbf16>,
    return
  }
  func.func @transform_0(%arg0: i32) -> (i32, i32, i32) {
    %c0_i32 = arith.constant 0 : i32
    %c0_i32_0 = arith.constant 0 : i32
    %c0_i32_1 = arith.constant 0 : i32
    return %arg0, %c0_i32, %c0_i32_0 : i32, i32, i32
  }
  func.func @transform_1(%arg0: i32) -> (i32, i32) {
    %c0_i32 = arith.constant 0 : i32
    %c0_i32_0 = arith.constant 0 : i32
    %c0_i32_1 = arith.constant 0 : i32
    return %c0_i32, %c0_i32_0 : i32, i32
  }
  func.func @transform_2(%arg0: i32) -> (i32, i32) {
    %c0_i32 = arith.constant 0 : i32
    %c0_i32_0 = arith.constant 0 : i32
    %c0_i32_1 = arith.constant 0 : i32
    return %c0_i32, %c0_i32_0 : i32, i32
  }
  func.func @transform_3(%arg0: i32) -> (i32, i32) {
    %c0_i32 = arith.constant 0 : i32
    %c0_i32_0 = arith.constant 0 : i32
    %c0_i32_1 = arith.constant 0 : i32
    return %c0_i32, %c0_i32_0 : i32, i32
  }
  func.func @transform_4(%arg0: i32) -> (i32, i32) {
    %c0_i32 = arith.constant 0 : i32
    %c0_i32_0 = arith.constant 0 : i32
    %c0_i32_1 = arith.constant 0 : i32
    return %c0_i32, %c0_i32_0 : i32, i32
  }
  func.func @transform_5(%arg0: i32) -> (i32, i32) {
    %c0_i32 = arith.constant 0 : i32
    %c0_i32_0 = arith.constant 0 : i32
    %c0_i32_1 = arith.constant 0 : i32
    return %c0_i32, %c0_i32_0 : i32, i32
  }
  func.func @transform_6(%arg0: i32) -> (i32, i32) {
    %c0_i32 = arith.constant 0 : i32
    %c0_i32_0 = arith.constant 0 : i32
    %c0_i32_1 = arith.constant 0 : i32
    return %c0_i32, %c0_i32_0 : i32, i32
  }
  func.func @transform_7(%arg0: i32) -> (i32, i32, i32, i32) {
    %c0_i32 = arith.constant 0 : i32
    %c0_i32_0 = arith.constant 0 : i32
    %c0_i32_1 = arith.constant 0 : i32
    %c0_i32_2 = arith.constant 0 : i32
    return %arg0, %c0_i32, %c0_i32_0, %c0_i32_1 : i32, i32, i32, i32
  }
}

module attributes {stable_mosaic.version = 11 : i64} {
  func.func @_block_kernel(%arg0: i32, %arg1: memref<1x4x12x128xbf16, #tpu.memory_space<vmem>>, %arg2: memref<1152x128xbf16, #tpu.memory_space<vmem>>, %arg3: memref<1x128xf32, #tpu.memory_space<vmem>>, %arg4: memref<1x128xf32, #tpu.memory_space<vmem>>, %arg5: memref<128x128xbf16, #tpu.memory_space<vmem>>, %arg6: memref<1x128xf32, #tpu.memory_space<vmem>>, %arg7: memref<1x128xf32, #tpu.memory_space<vmem>>, %arg8: memref<1152x128xbf16, #tpu.memory_space<vmem>>, %arg9: memref<1x128xf32, #tpu.memory_space<vmem>>, %arg10: memref<1x128xf32, #tpu.memory_space<vmem>>, %arg11: memref<1x128xf32, #tpu.memory_space<vmem>>, %arg12: memref<1x1xf32, #tpu.memory_space<vmem>>, %arg13: memref<1x1x1xf32, #tpu.memory_space<vmem>>, %arg14: memref<20x128xbf16, #tpu.memory_space<vmem>>) attributes {dimension_semantics = [#tpu.dimension_semantics<parallel>], iteration_bounds = array<i64: 2>, scalar_prefetch = 0 : i64, scratch_operands = 1 : i64, tpu.core_type = #tpu.core_type<tc>, window_params = [{transform_indices = @transform_0, window_bounds = array<i64: 1, 4, 12, 128>}, {pipeline_mode = #tpu.pipeline_mode<synchronous>, transform_indices = @transform_1, window_bounds = array<i64: 1152, 128>}, {pipeline_mode = #tpu.pipeline_mode<synchronous>, transform_indices = @transform_2, window_bounds = array<i64: 1, 128>}, {pipeline_mode = #tpu.pipeline_mode<synchronous>, transform_indices = @transform_3, window_bounds = array<i64: 1, 128>}, {pipeline_mode = #tpu.pipeline_mode<synchronous>, transform_indices = @transform_4, window_bounds = array<i64: 128, 128>}, {pipeline_mode = #tpu.pipeline_mode<synchronous>, transform_indices = @transform_5, window_bounds = array<i64: 1, 128>}, {pipeline_mode = #tpu.pipeline_mode<synchronous>, transform_indices = @transform_6, window_bounds = array<i64: 1, 128>}, {pipeline_mode = #tpu.pipeline_mode<synchronous>, transform_indices = @transform_7, window_bounds = array<i64: 1152, 128>}, {pipeline_mode = #tpu.pipeline_mode<synchronous>, transform_indices = @transform_8, window_bounds = array<i64: 1, 128>}, {pipeline_mode = #tpu.pipeline_mode<synchronous>, transform_indices = @transform_9, window_bounds = array<i64: 1, 128>}, {pipeline_mode = #tpu.pipeline_mode<synchronous>, transform_indices = @transform_10, window_bounds = array<i64: 1, 128>}, {pipeline_mode = #tpu.pipeline_mode<synchronous>, transform_indices = @transform_11, window_bounds = array<i64: 1, 1>}, {transform_indices = @transform_12, window_bounds = array<i64: 1, 1, 1>}]} {
    %cst = arith.constant 0.000000e+00 : f32
    %0 = vector.broadcast %cst : f32 to vector<6x128xf32>
    %c0 = arith.constant 0 : index
    %c0_0 = arith.constant 0 : index
    %c0_1 = arith.constant 0 : index
    %c0_2 = arith.constant 0 : index
    %1 = vector.load %arg1[%c0, %c0_0, %c0_1, %c0_2] : memref<1x4x12x128xbf16, #tpu.memory_space<vmem>>, vector<1x1x6x128xbf16>
    %2 = vector.shape_cast %1 : vector<1x1x6x128xbf16> to vector<6x128xbf16>
    %c0_3 = arith.constant 0 : index
    %c1 = arith.constant 1 : index
    %c0_4 = arith.constant 0 : index
    %c0_5 = arith.constant 0 : index
    %3 = vector.load %arg1[%c0_3, %c1, %c0_4, %c0_5] : memref<1x4x12x128xbf16, #tpu.memory_space<vmem>>, vector<1x1x6x128xbf16>
    %4 = vector.shape_cast %3 : vector<1x1x6x128xbf16> to vector<6x128xbf16>
    %5 = tpu.concatenate %2, %4 in 1 : vector<6x128xbf16>, vector<6x128xbf16> -> vector<6x256xbf16>
    %c0_6 = arith.constant 0 : index
    %c0_7 = arith.constant 0 : index
    %6 = vector.load %arg2[%c0_6, %c0_7] : memref<1152x128xbf16, #tpu.memory_space<vmem>>, vector<256x128xbf16>
    %cst_8 = arith.constant dense<0.000000e+00> : vector<6x128xf32>
    %7 = tpu.matmul %5, %6, %cst_8 {dimension_numbers = #tpu.dot_dimension_numbers<[1], [0], [0], [1], [0, 0, 1, 1], [], []>} : vector<6x256xbf16>, vector<256x128xbf16>, vector<6x128xf32> -> vector<6x128xf32>
    %8 = arith.addf %0, %7 : vector<6x128xf32>
    %c0_9 = arith.constant 0 : index
    %c0_10 = arith.constant 0 : index
    %c1_11 = arith.constant 1 : index
    %c0_12 = arith.constant 0 : index
    %9 = vector.load %arg1[%c0_9, %c0_10, %c1_11, %c0_12] : memref<1x4x12x128xbf16, #tpu.memory_space<vmem>>, vector<1x1x6x128xbf16>
    %10 = vector.shape_cast %9 : vector<1x1x6x128xbf16> to vector<6x128xbf16>
    %c0_13 = arith.constant 0 : index
    %c2 = arith.constant 2 : index
    %c0_14 = arith.constant 0 : index
    %c0_15 = arith.constant 0 : index
    %11 = vector.load %arg1[%c0_13, %c2, %c0_14, %c0_15] : memref<1x4x12x128xbf16, #tpu.memory_space<vmem>>, vector<1x1x6x128xbf16>
    %12 = vector.shape_cast %11 : vector<1x1x6x128xbf16> to vector<6x128xbf16>
    %13 = tpu.concatenate %10, %12 in 1 : vector<6x128xbf16>, vector<6x128xbf16> -> vector<6x256xbf16>
    %c256 = arith.constant 256 : index
    %c0_16 = arith.constant 0 : index
    %14 = vector.load %arg2[%c256, %c0_16] : memref<1152x128xbf16, #tpu.memory_space<vmem>>, vector<256x128xbf16>
    %cst_17 = arith.constant dense<0.000000e+00> : vector<6x128xf32>
    %15 = tpu.matmul %13, %14, %cst_17 {dimension_numbers = #tpu.dot_dimension_numbers<[1], [0], [0], [1], [0, 0, 1, 1], [], []>} : vector<6x256xbf16>, vector<256x128xbf16>, vector<6x128xf32> -> vector<6x128xf32>
    %16 = arith.addf %8, %15 : vector<6x128xf32>
    %c0_18 = arith.constant 0 : index
    %c3 = arith.constant 3 : index
    %c0_19 = arith.constant 0 : index
    %c0_20 = arith.constant 0 : index
    %17 = vector.load %arg1[%c0_18, %c3, %c0_19, %c0_20] : memref<1x4x12x128xbf16, #tpu.memory_space<vmem>>, vector<1x1x6x128xbf16>
    %18 = vector.shape_cast %17 : vector<1x1x6x128xbf16> to vector<6x128xbf16>
    %c0_21 = arith.constant 0 : index
    %c2_22 = arith.constant 2 : index
    %c1_23 = arith.constant 1 : index
    %c0_24 = arith.constant 0 : index
    %19 = vector.load %arg1[%c0_21, %c2_22, %c1_23, %c0_24] : memref<1x4x12x128xbf16, #tpu.memory_space<vmem>>, vector<1x1x6x128xbf16>
    %20 = vector.shape_cast %19 : vector<1x1x6x128xbf16> to vector<6x128xbf16>
    %21 = tpu.concatenate %18, %20 in 1 : vector<6x128xbf16>, vector<6x128xbf16> -> vector<6x256xbf16>
    %c512 = arith.constant 512 : index
    %c0_25 = arith.constant 0 : index
    %22 = vector.load %arg2[%c512, %c0_25] : memref<1152x128xbf16, #tpu.memory_space<vmem>>, vector<256x128xbf16>
    %cst_26 = arith.constant dense<0.000000e+00> : vector<6x128xf32>
    %23 = tpu.matmul %21, %22, %cst_26 {dimension_numbers = #tpu.dot_dimension_numbers<[1], [0], [0], [1], [0, 0, 1, 1], [], []>} : vector<6x256xbf16>, vector<256x128xbf16>, vector<6x128xf32> -> vector<6x128xf32>
    %24 = arith.addf %16, %23 : vector<6x128xf32>
    %c0_27 = arith.constant 0 : index
    %c0_28 = arith.constant 0 : index
    %c3_29 = arith.constant 3 : index
    %c0_30 = arith.constant 0 : index
    %25 = vector.load %arg1[%c0_27, %c0_28, %c3_29, %c0_30] : memref<1x4x12x128xbf16, #tpu.memory_space<vmem>>, vector<1x1x6x128xbf16>
    %26 = vector.shape_cast %25 : vector<1x1x6x128xbf16> to vector<6x128xbf16>
    %c0_31 = arith.constant 0 : index
    %c1_32 = arith.constant 1 : index
    %c3_33 = arith.constant 3 : index
    %c0_34 = arith.constant 0 : index
    %27 = vector.load %arg1[%c0_31, %c1_32, %c3_33, %c0_34] : memref<1x4x12x128xbf16, #tpu.memory_space<vmem>>, vector<1x1x6x128xbf16>
    %28 = vector.shape_cast %27 : vector<1x1x6x128xbf16> to vector<6x128xbf16>
    %29 = tpu.concatenate %26, %28 in 1 : vector<6x128xbf16>, vector<6x128xbf16> -> vector<6x256xbf16>
    %c768 = arith.constant 768 : index
    %c0_35 = arith.constant 0 : index
    %30 = vector.load %arg2[%c768, %c0_35] : memref<1152x128xbf16, #tpu.memory_space<vmem>>, vector<256x128xbf16>
    %cst_36 = arith.constant dense<0.000000e+00> : vector<6x128xf32>
    %31 = tpu.matmul %29, %30, %cst_36 {dimension_numbers = #tpu.dot_dimension_numbers<[1], [0], [0], [1], [0, 0, 1, 1], [], []>} : vector<6x256xbf16>, vector<256x128xbf16>, vector<6x128xf32> -> vector<6x128xf32>
    %32 = arith.addf %24, %31 : vector<6x128xf32>
    %c0_37 = arith.constant 0 : index
    %c0_38 = arith.constant 0 : index
    %c4 = arith.constant 4 : index
    %c0_39 = arith.constant 0 : index
    %33 = vector.load %arg1[%c0_37, %c0_38, %c4, %c0_39] : memref<1x4x12x128xbf16, #tpu.memory_space<vmem>>, vector<1x1x6x128xbf16>
    %34 = vector.shape_cast %33 : vector<1x1x6x128xbf16> to vector<6x128xbf16>
    %c1024 = arith.constant 1024 : index
    %c0_40 = arith.constant 0 : index
    %35 = vector.load %arg2[%c1024, %c0_40] : memref<1152x128xbf16, #tpu.memory_space<vmem>>, vector<128x128xbf16>
    %cst_41 = arith.constant dense<0.000000e+00> : vector<6x128xf32>
    %36 = tpu.matmul %34, %35, %cst_41 {dimension_numbers = #tpu.dot_dimension_numbers<[1], [0], [0], [1], [0, 0, 1, 1], [], []>} : vector<6x128xbf16>, vector<128x128xbf16>, vector<6x128xf32> -> vector<6x128xf32>
    %37 = arith.addf %32, %36 : vector<6x128xf32>
    %c0_42 = arith.constant 0 : index
    %c0_43 = arith.constant 0 : index
    %38 = vector.load %arg3[%c0_42, %c0_43] : memref<1x128xf32, #tpu.memory_space<vmem>>, vector<1x128xf32>
    %39 = vector.broadcast %38 : vector<1x128xf32> to vector<6x128xf32>
    %40 = arith.mulf %37, %39 : vector<6x128xf32>
    %c0_44 = arith.constant 0 : index
    %c0_45 = arith.constant 0 : index
    %41 = vector.load %arg4[%c0_44, %c0_45] : memref<1x128xf32, #tpu.memory_space<vmem>>, vector<1x128xf32>
    %42 = vector.broadcast %41 : vector<1x128xf32> to vector<6x128xf32>
    %43 = arith.addf %40, %42 : vector<6x128xf32>
    %cst_46 = arith.constant 0.000000e+00 : f32
    %44 = vector.broadcast %cst_46 : f32 to vector<6x128xf32>
    %45 = arith.maximumf %43, %44 : vector<6x128xf32>
    %46 = vector.shape_cast %45 : vector<6x128xf32> to vector<2x3x128xf32>
    %47 = vector.extract_strided_slice %46 {offsets = [0, 0, 0], sizes = [2, 2, 128], strides = [1, 1, 1]} : vector<2x3x128xf32> to vector<2x2x128xf32>
    %c0_47 = arith.constant 0 : index
    %c3_48 = arith.constant 3 : index
    %c0_49 = arith.constant 0 : index
    %c0_50 = arith.constant 0 : index
    %48 = vector.load %arg1[%c0_47, %c3_48, %c0_49, %c0_50] : memref<1x4x12x128xbf16, #tpu.memory_space<vmem>>, vector<1x1x6x128xbf16>
    %49 = vector.shape_cast %48 : vector<1x1x6x128xbf16> to vector<6x128xbf16>
    %c0_51 = arith.constant 0 : index
    %c0_52 = arith.constant 0 : index
    %50 = vector.load %arg5[%c0_51, %c0_52] : memref<128x128xbf16, #tpu.memory_space<vmem>>, vector<128x128xbf16>
    %cst_53 = arith.constant dense<0.000000e+00> : vector<6x128xf32>
    %51 = tpu.matmul %49, %50, %cst_53 {dimension_numbers = #tpu.dot_dimension_numbers<[1], [0], [0], [1], [0, 0, 1, 1], [], []>} : vector<6x128xbf16>, vector<128x128xbf16>, vector<6x128xf32> -> vector<6x128xf32>
    %c0_54 = arith.constant 0 : index
    %c0_55 = arith.constant 0 : index
    %52 = vector.load %arg6[%c0_54, %c0_55] : memref<1x128xf32, #tpu.memory_space<vmem>>, vector<1x128xf32>
    %53 = vector.broadcast %52 : vector<1x128xf32> to vector<6x128xf32>
    %54 = arith.mulf %51, %53 : vector<6x128xf32>
    %c0_56 = arith.constant 0 : index
    %c0_57 = arith.constant 0 : index
    %55 = vector.load %arg7[%c0_56, %c0_57] : memref<1x128xf32, #tpu.memory_space<vmem>>, vector<1x128xf32>
    %56 = vector.broadcast %55 : vector<1x128xf32> to vector<6x128xf32>
    %57 = arith.addf %54, %56 : vector<6x128xf32>
    %58 = vector.shape_cast %57 : vector<6x128xf32> to vector<2x3x128xf32>
    %59 = vector.extract_strided_slice %58 {offsets = [0, 0, 0], sizes = [2, 2, 128], strides = [1, 1, 1]} : vector<2x3x128xf32> to vector<2x2x128xf32>
    %cst_58 = arith.constant 0.000000e+00 : bf16
    %60 = vector.broadcast %cst_58 : bf16 to vector<20x128xbf16>
    %c0_59 = arith.constant 0 : index
    %c0_60 = arith.constant 0 : index
    %61 = vector.load %arg14[%c0_59, %c0_60] : memref<20x128xbf16, #tpu.memory_space<vmem>>, vector<20x128xbf16>
    tpu.vector_store %arg14[%c0_59, %c0_60], %60 {strides = array<i32>} : memref<20x128xbf16, #tpu.memory_space<vmem>>, vector<20x128xbf16>,
    %cst_61 = arith.constant 0.000000e+00 : f32
    %62 = vector.broadcast %cst_61 : f32 to vector<2x1x128xf32>
    %cst_62 = arith.constant 0.000000e+00 : f32
    %63 = vector.broadcast %cst_62 : f32 to vector<2x1x128xf32>
    %64 = tpu.concatenate %62, %47, %63 in 1 : vector<2x1x128xf32>, vector<2x2x128xf32>, vector<2x1x128xf32> -> vector<2x4x128xf32>
    %65 = vector.shape_cast %64 : vector<2x4x128xf32> to vector<8x128xf32>
    %66 = arith.truncf %65 : vector<8x128xf32> to vector<8x128xbf16>
    %c4_63 = arith.constant 4 : index
    %c0_64 = arith.constant 0 : index
    %67 = vector.load %arg14[%c4_63, %c0_64] : memref<20x128xbf16, #tpu.memory_space<vmem>>, vector<8x128xbf16>
    tpu.vector_store %arg14[%c4_63, %c0_64], %66 {strides = array<i32>} : memref<20x128xbf16, #tpu.memory_space<vmem>>, vector<8x128xbf16>,
    %cst_65 = arith.constant 0.000000e+00 : f32
    %68 = vector.broadcast %cst_65 : f32 to vector<8x128xf32>
    %c0_66 = arith.constant 0 : index
    %c0_67 = arith.constant 0 : index
    %69 = vector.load %arg14[%c0_66, %c0_67] : memref<20x128xbf16, #tpu.memory_space<vmem>>, vector<8x128xbf16>
    %c1_68 = arith.constant 1 : index
    %c0_69 = arith.constant 0 : index
    %70 = vector.load %arg14[%c1_68, %c0_69] : memref<20x128xbf16, #tpu.memory_space<vmem>>, vector<8x128xbf16>
    %71 = tpu.concatenate %69, %70 in 1 : vector<8x128xbf16>, vector<8x128xbf16> -> vector<8x256xbf16>
    %c0_70 = arith.constant 0 : index
    %c0_71 = arith.constant 0 : index
    %72 = vector.load %arg8[%c0_70, %c0_71] : memref<1152x128xbf16, #tpu.memory_space<vmem>>, vector<256x128xbf16>
    %cst_72 = arith.constant dense<0.000000e+00> : vector<8x128xf32>
    %73 = tpu.matmul %71, %72, %cst_72 {dimension_numbers = #tpu.dot_dimension_numbers<[1], [0], [0], [1], [0, 0, 1, 1], [], []>} : vector<8x256xbf16>, vector<256x128xbf16>, vector<8x128xf32> -> vector<8x128xf32>
    %74 = arith.addf %68, %73 : vector<8x128xf32>
    %c2_73 = arith.constant 2 : index
    %c0_74 = arith.constant 0 : index
    %75 = vector.load %arg14[%c2_73, %c0_74] : memref<20x128xbf16, #tpu.memory_space<vmem>>, vector<8x128xbf16>
    %c4_75 = arith.constant 4 : index
    %c0_76 = arith.constant 0 : index
    %76 = vector.load %arg14[%c4_75, %c0_76] : memref<20x128xbf16, #tpu.memory_space<vmem>>, vector<8x128xbf16>
    %77 = tpu.concatenate %75, %76 in 1 : vector<8x128xbf16>, vector<8x128xbf16> -> vector<8x256xbf16>
    %c256_77 = arith.constant 256 : index
    %c0_78 = arith.constant 0 : index
    %78 = vector.load %arg8[%c256_77, %c0_78] : memref<1152x128xbf16, #tpu.memory_space<vmem>>, vector<256x128xbf16>
    %cst_79 = arith.constant dense<0.000000e+00> : vector<8x128xf32>
    %79 = tpu.matmul %77, %78, %cst_79 {dimension_numbers = #tpu.dot_dimension_numbers<[1], [0], [0], [1], [0, 0, 1, 1], [], []>} : vector<8x256xbf16>, vector<256x128xbf16>, vector<8x128xf32> -> vector<8x128xf32>
    %80 = arith.addf %74, %79 : vector<8x128xf32>
    %c5 = arith.constant 5 : index
    %c0_80 = arith.constant 0 : index
    %81 = vector.load %arg14[%c5, %c0_80] : memref<20x128xbf16, #tpu.memory_space<vmem>>, vector<8x128xbf16>
    %c6 = arith.constant 6 : index
    %c0_81 = arith.constant 0 : index
    %82 = vector.load %arg14[%c6, %c0_81] : memref<20x128xbf16, #tpu.memory_space<vmem>>, vector<8x128xbf16>
    %83 = tpu.concatenate %81, %82 in 1 : vector<8x128xbf16>, vector<8x128xbf16> -> vector<8x256xbf16>
    %c512_82 = arith.constant 512 : index
    %c0_83 = arith.constant 0 : index
    %84 = vector.load %arg8[%c512_82, %c0_83] : memref<1152x128xbf16, #tpu.memory_space<vmem>>, vector<256x128xbf16>
    %cst_84 = arith.constant dense<0.000000e+00> : vector<8x128xf32>
    %85 = tpu.matmul %83, %84, %cst_84 {dimension_numbers = #tpu.dot_dimension_numbers<[1], [0], [0], [1], [0, 0, 1, 1], [], []>} : vector<8x256xbf16>, vector<256x128xbf16>, vector<8x128xf32> -> vector<8x128xf32>
    %86 = arith.addf %80, %85 : vector<8x128xf32>
    %c8 = arith.constant 8 : index
    %c0_85 = arith.constant 0 : index
    %87 = vector.load %arg14[%c8, %c0_85] : memref<20x128xbf16, #tpu.memory_space<vmem>>, vector<8x128xbf16>
    %c9 = arith.constant 9 : index
    %c0_86 = arith.constant 0 : index
    %88 = vector.load %arg14[%c9, %c0_86] : memref<20x128xbf16, #tpu.memory_space<vmem>>, vector<8x128xbf16>
    %89 = tpu.concatenate %87, %88 in 1 : vector<8x128xbf16>, vector<8x128xbf16> -> vector<8x256xbf16>
    %c768_87 = arith.constant 768 : index
    %c0_88 = arith.constant 0 : index
    %90 = vector.load %arg8[%c768_87, %c0_88] : memref<1152x128xbf16, #tpu.memory_space<vmem>>, vector<256x128xbf16>
    %cst_89 = arith.constant dense<0.000000e+00> : vector<8x128xf32>
    %91 = tpu.matmul %89, %90, %cst_89 {dimension_numbers = #tpu.dot_dimension_numbers<[1], [0], [0], [1], [0, 0, 1, 1], [], []>} : vector<8x256xbf16>, vector<256x128xbf16>, vector<8x128xf32> -> vector<8x128xf32>
    %92 = arith.addf %86, %91 : vector<8x128xf32>
    %c10 = arith.constant 10 : index
    %c0_90 = arith.constant 0 : index
    %93 = vector.load %arg14[%c10, %c0_90] : memref<20x128xbf16, #tpu.memory_space<vmem>>, vector<8x128xbf16>
    %c1024_91 = arith.constant 1024 : index
    %c0_92 = arith.constant 0 : index
    %94 = vector.load %arg8[%c1024_91, %c0_92] : memref<1152x128xbf16, #tpu.memory_space<vmem>>, vector<128x128xbf16>
    %cst_93 = arith.constant dense<0.000000e+00> : vector<8x128xf32>
    %95 = tpu.matmul %93, %94, %cst_93 {dimension_numbers = #tpu.dot_dimension_numbers<[1], [0], [0], [1], [0, 0, 1, 1], [], []>} : vector<8x128xbf16>, vector<128x128xbf16>, vector<8x128xf32> -> vector<8x128xf32>
    %96 = arith.addf %92, %95 : vector<8x128xf32>
    %c0_94 = arith.constant 0 : index
    %c0_95 = arith.constant 0 : index
    %97 = vector.load %arg9[%c0_94, %c0_95] : memref<1x128xf32, #tpu.memory_space<vmem>>, vector<1x128xf32>
    %98 = vector.broadcast %97 : vector<1x128xf32> to vector<8x128xf32>
    %99 = arith.mulf %96, %98 : vector<8x128xf32>
    %c0_96 = arith.constant 0 : index
    %c0_97 = arith.constant 0 : index
    %100 = vector.load %arg10[%c0_96, %c0_97] : memref<1x128xf32, #tpu.memory_space<vmem>>, vector<1x128xf32>
    %101 = vector.broadcast %100 : vector<1x128xf32> to vector<8x128xf32>
    %102 = arith.addf %99, %101 : vector<8x128xf32>
    %103 = vector.shape_cast %102 : vector<8x128xf32> to vector<2x4x128xf32>
    %104 = vector.extract_strided_slice %103 {offsets = [0, 0, 0], sizes = [2, 2, 128], strides = [1, 1, 1]} : vector<2x4x128xf32> to vector<2x2x128xf32>
    %105 = arith.addf %104, %59 : vector<2x2x128xf32>
    %cst_98 = arith.constant 0.000000e+00 : f32
    %106 = vector.broadcast %cst_98 : f32 to vector<2x2x128xf32>
    %107 = arith.maximumf %105, %106 : vector<2x2x128xf32>
    %108 = vector.shape_cast %107 : vector<2x2x128xf32> to vector<4x128xf32>
    %cst_99 = arith.constant dense<0.000000e+00> : vector<128xf32>
    %109 = vector.multi_reduction <add>, %108, %cst_99 [0] : vector<4x128xf32> to vector<128xf32>
    %110 = vector.shape_cast %109 : vector<128xf32> to vector<1x128xf32>
    %cst_100 = arith.constant 2.500000e-01 : f32
    %111 = vector.broadcast %cst_100 : f32 to vector<1x128xf32>
    %112 = arith.mulf %110, %111 : vector<1x128xf32>
    %c0_101 = arith.constant 0 : index
    %c0_102 = arith.constant 0 : index
    %113 = vector.load %arg11[%c0_101, %c0_102] : memref<1x128xf32, #tpu.memory_space<vmem>>, vector<1x128xf32>
    %114 = arith.mulf %112, %113 : vector<1x128xf32>
    %cst_103 = arith.constant dense<0.000000e+00> : vector<1xf32>
    %115 = vector.multi_reduction <add>, %114, %cst_103 [1] : vector<1x128xf32> to vector<1xf32>
    %116 = vector.shape_cast %115 : vector<1xf32> to vector<1x1xf32>
    %c0_104 = arith.constant 0 : index
    %c0_105 = arith.constant 0 : index
    %117 = vector.load %arg12[%c0_104, %c0_105] : memref<1x1xf32, #tpu.memory_space<vmem>>, vector<1x1xf32>
    %118 = arith.addf %116, %117 : vector<1x1xf32>
    %c0_106 = arith.constant 0 : index
    %c0_107 = arith.constant 0 : index
    %c0_108 = arith.constant 0 : index
    %119 = vector.load %arg13[%c0_106, %c0_107, %c0_108] : memref<1x1x1xf32, #tpu.memory_space<vmem>>, vector<1x1x1xf32>
    %120 = vector.shape_cast %119 : vector<1x1x1xf32> to vector<1x1xf32>
    %121 = vector.shape_cast %118 : vector<1x1xf32> to vector<1x1x1xf32>
    tpu.vector_store %arg13[%c0_106, %c0_107, %c0_108], %121 {strides = array<i32>} : memref<1x1x1xf32, #tpu.memory_space<vmem>>, vector<1x1x1xf32>,
    return
  }
  func.func @transform_0(%arg0: i32) -> (i32, i32, i32, i32) {
    %c0_i32 = arith.constant 0 : i32
    %c0_i32_0 = arith.constant 0 : i32
    %c0_i32_1 = arith.constant 0 : i32
    %c0_i32_2 = arith.constant 0 : i32
    return %arg0, %c0_i32, %c0_i32_0, %c0_i32_1 : i32, i32, i32, i32
  }
  func.func @transform_1(%arg0: i32) -> (i32, i32) {
    %c0_i32 = arith.constant 0 : i32
    %c0_i32_0 = arith.constant 0 : i32
    %c0_i32_1 = arith.constant 0 : i32
    return %c0_i32, %c0_i32_0 : i32, i32
  }
  func.func @transform_2(%arg0: i32) -> (i32, i32) {
    %c0_i32 = arith.constant 0 : i32
    %c0_i32_0 = arith.constant 0 : i32
    %c0_i32_1 = arith.constant 0 : i32
    return %c0_i32, %c0_i32_0 : i32, i32
  }
  func.func @transform_3(%arg0: i32) -> (i32, i32) {
    %c0_i32 = arith.constant 0 : i32
    %c0_i32_0 = arith.constant 0 : i32
    %c0_i32_1 = arith.constant 0 : i32
    return %c0_i32, %c0_i32_0 : i32, i32
  }
  func.func @transform_4(%arg0: i32) -> (i32, i32) {
    %c0_i32 = arith.constant 0 : i32
    %c0_i32_0 = arith.constant 0 : i32
    %c0_i32_1 = arith.constant 0 : i32
    return %c0_i32, %c0_i32_0 : i32, i32
  }
  func.func @transform_5(%arg0: i32) -> (i32, i32) {
    %c0_i32 = arith.constant 0 : i32
    %c0_i32_0 = arith.constant 0 : i32
    %c0_i32_1 = arith.constant 0 : i32
    return %c0_i32, %c0_i32_0 : i32, i32
  }
  func.func @transform_6(%arg0: i32) -> (i32, i32) {
    %c0_i32 = arith.constant 0 : i32
    %c0_i32_0 = arith.constant 0 : i32
    %c0_i32_1 = arith.constant 0 : i32
    return %c0_i32, %c0_i32_0 : i32, i32
  }
  func.func @transform_7(%arg0: i32) -> (i32, i32) {
    %c0_i32 = arith.constant 0 : i32
    %c0_i32_0 = arith.constant 0 : i32
    %c0_i32_1 = arith.constant 0 : i32
    return %c0_i32, %c0_i32_0 : i32, i32
  }
  func.func @transform_8(%arg0: i32) -> (i32, i32) {
    %c0_i32 = arith.constant 0 : i32
    %c0_i32_0 = arith.constant 0 : i32
    %c0_i32_1 = arith.constant 0 : i32
    return %c0_i32, %c0_i32_0 : i32, i32
  }
  func.func @transform_9(%arg0: i32) -> (i32, i32) {
    %c0_i32 = arith.constant 0 : i32
    %c0_i32_0 = arith.constant 0 : i32
    %c0_i32_1 = arith.constant 0 : i32
    return %c0_i32, %c0_i32_0 : i32, i32
  }
  func.func @transform_10(%arg0: i32) -> (i32, i32) {
    %c0_i32 = arith.constant 0 : i32
    %c0_i32_0 = arith.constant 0 : i32
    %c0_i32_1 = arith.constant 0 : i32
    return %c0_i32, %c0_i32_0 : i32, i32
  }
  func.func @transform_11(%arg0: i32) -> (i32, i32) {
    %c0_i32 = arith.constant 0 : i32
    %c0_i32_0 = arith.constant 0 : i32
    %c0_i32_1 = arith.constant 0 : i32
    return %c0_i32, %c0_i32_0 : i32, i32
  }
  func.func @transform_12(%arg0: i32) -> (i32, i32, i32) {
    %c0_i32 = arith.constant 0 : i32
    %c0_i32_0 = arith.constant 0 : i32
    %c0_i32_1 = arith.constant 0 : i32
    return %arg0, %c0_i32, %c0_i32_0 : i32, i32, i32
  }
}

</mosaic_0001>

<bundles_post_ra>
// kernel: _lambda_.3
= control target key start
LH: loop header
LB: loop body
LE: loop exit
PB: predicated region body
PF: predicated region fallthrough
CT: control target
= control target key end

     0   :  { %s1395_s15 = smov 0   ;;  %s1756_s0 = inlined_call_operand.vmem [shape: bf16[2,64,256], index: 0, kind: input, shape index: {}]   ;;  %s1757_s1 = inlined_call_operand.vmem [shape: bf16[256,128], index: 1, kind: input, shape index: {}]   ;;  %s1758_s2 = inlined_call_operand.vmem [shape: f32[1,128], index: 2, kind: input, shape index: {}]   ;;  %s1759_s3 = inlined_call_operand.vmem [shape: f32[1,128], index: 3, kind: input, shape index: {}]   ;;  %s1760_s4 = inlined_call_operand.vmem [shape: bf16[2,4,4,128], index: 4, kind: output, shape index: {}]  }
   0x1 LB: > { %s1169_s16 = sadd.s32 4294967295, %s1367_s15   ;;  %p1173_p0 = scmp.ge.s32.totalorder %s1367_s15, 1  ;;  %s1367_s15 = sphi %s1395_s15, %s14_s15  }
   0x2   : > { %p162_p1 = scmp.lt.s32.totalorder %s1367_s15, 3 }
   0x4   : > { %p163_p2 = pnand %p1173_p0, %p162_p1 }
   0x5   : > { %p188_p3 = scmp.lt.s32.totalorder (!%p163_p2), %s1169_s16, 1 }
   0x6   : > { %166 = sbr.rel (%p163_p2) target bundleno = 292 (0x124), region = 36 }
   0xb   : > { %v1325_v0 = vld [vmem:[%s1757_s1 + $0x38] sm:$0xff]  ;;  %v1324_v2 = vld [vmem:[%s1757_s1 + $0x30] sm:$0xff]  ;;  %v1323_v4 = vld [vmem:[%s1757_s1 + $0x28] sm:$0xff]  ;;  %s1764_s16 = smov (!%p188_p3, %s1169_s16), 1  ;;  %vm544_vm0 = vcmask 1042434   ;;  %vm546_vm1 = vcmask 1043459  }
   0xc   : > { %v1333_v1 = vld [vmem:[%s1757_s1 + $0x78] sm:$0xff]  ;;  %374 = vmatpush.bf16.msra.mxu0 %v1325_v0  ;;  %1334 = vmatpush.bf16.msra.mxu2 %v1325_v0  ;;  %v1332_v3 = vld [vmem:[%s1757_s1 + $0x70] sm:$0xff]  ;;  %v1331_v5 = vld [vmem:[%s1757_s1 + $0x68] sm:$0xff]  ;;  %s1308_s17 = sshll.u32 %s1764_s16, 6  ;;  %v1369_v61 = vmov 0.0   ;;  %vm570_vm2 = vcmask 1040384  }
   0xd   : > { %403 = vmatpush.bf16.msra.mxu1 %v1333_v1  ;;  %1342 = vmatpush.bf16.msra.mxu3 %v1333_v1  ;;  %v1322_v6 = vld [vmem:[%s1757_s1 + $0x20] sm:$0xff]  ;;  %v1321_v8 = vld [vmem:[%s1757_s1 + $0x18] sm:$0xff]  ;;  %v1320_v10 = vld [vmem:[%s1757_s1 + $0x10] sm:$0xff]  ;;  %s1452_s22 = scalar_lea.vmem %s1756_s0, %s1308_s17  ;;  %v1492_v62 = vrot.slane %v1369_v61, 2  ;;  %vm946_vm3 = vcmask 1041408   ;;  %vm827_vm4 = vcmask 1041409  }
   0xe   : > { %v1330_v7 = vld [vmem:[%s1757_s1 + $0x60] sm:$0xff]  ;;  %v1329_v9 = vld [vmem:[%s1757_s1 + $0x58] sm:$0xff]  ;;  %v1328_v11 = vld [vmem:[%s1757_s1 + $0x50] sm:$0xff]  ;;  %s1309_s7 = sshll.u32 %s1764_s16, 3 }
   0xf   : > { %v1319_v12 = vld [vmem:[%s1757_s1 + $0x8] sm:$0xff]  ;;  %v1318_v14 = vld [vmem:[%s1757_s1] sm:$0xff]  ;;  %v1188_v28 = vld [vmem:[%s1452_s22 + $0x10] sm:$0xf]  ;;  %s1683_s9 = scalar_lea.vmem %s1760_s4, %s1309_s7 }
  0x10   : > { %375 = vmatpush.bf16.msra.mxu0 %v1324_v2  ;;  %1335 = vmatpush.bf16.msra.mxu2 %v1324_v2  ;;  %v1327_v13 = vld [vmem:[%s1757_s1 + $0x48] sm:$0xff]  ;;  %v1326_v15 = vld [vmem:[%s1757_s1 + $0x40] sm:$0xff]  ;;  %v1313_v29 = vld [vmem:[%s1452_s22 + $0x14] sm:$0xf0] }
  0x11   : > { %404 = vmatpush.bf16.msra.mxu1 %v1332_v3  ;;  %1343 = vmatpush.bf16.msra.mxu3 %v1332_v3  ;;  %v1180_v16 = vld [vmem:[%s1452_s22] sm:$0xf]  ;;  %v1311_v17 = vld [vmem:[%s1452_s22 + $0x4] sm:$0xf0]  ;;  %v1310_v20 = vld [vmem:[%s1452_s22 + $0x4] sm:$0xf]  ;;  %v1189_v36 = vor.u32 %v1313_v29, %v1188_v28 }
  0x12   : > { %v1196_v18 = vld [vmem:[%s1452_s22 + $0x20] sm:$0xf]  ;;  %v1315_v19 = vld [vmem:[%s1452_s22 + $0x24] sm:$0xf0]  ;;  %v1182_v21 = vld [vmem:[%s1452_s22 + $0x8] sm:$0xf0]  ;;  %v1181_v24 = vor.u32 %v1311_v17, %v1180_v16 }
  0x13   : > { %v1314_v22 = vld [vmem:[%s1452_s22 + $0x24] sm:$0xf]  ;;  %v1198_v23 = vld [vmem:[%s1452_s22 + $0x28] sm:$0xf0]  ;;  %v1197_v25 = vor.u32 %v1315_v19, %v1196_v18  ;;  %v1185_v26 = vor.u32 %v1310_v20, %v1182_v21  ;;  %v1204_v30 = vld [vmem:[%s1452_s22 + $0x30] sm:$0xf] }
  0x14   : > { %376 = vmatpush.bf16.msra.mxu0 %v1323_v4  ;;  %1336 = vmatpush.bf16.msra.mxu2 %v1323_v4  ;;  %v1201_v27 = vor.u32 %v1314_v22, %v1198_v23  ;;  %v1317_v31 = vld [vmem:[%s1452_s22 + $0x34] sm:$0xf0]  ;;  %v1312_v32 = vld [vmem:[%s1452_s22 + $0x14] sm:$0xf]  ;;  %v1190_v33 = vld [vmem:[%s1452_s22 + $0x18] sm:$0xf0] }
  0x15   : > { %405 = vmatpush.bf16.msra.mxu1 %v1331_v5  ;;  %1344 = vmatpush.bf16.msra.mxu3 %v1331_v5  ;;  %v1316_v34 = vld [vmem:[%s1452_s22 + $0x34] sm:$0xf]  ;;  %v1206_v35 = vld [vmem:[%s1452_s22 + $0x38] sm:$0xf0]  ;;  %v1205_v37 = vor.u32 %v1317_v31, %v1204_v30  ;;  %v1193_v38 = vor.u32 %v1312_v32, %v1190_v33  ;;  %v1482_v41 = vld [vmem:[%s1758_s2] ss:$0 sm:$0xff] }
  0x16   : > { %v1209_v39 = vor.u32 %v1316_v34, %v1206_v35  ;;  %v1487_v44 = vld [vmem:[%s1759_s3] ss:$0 sm:$0xff] }
  0x18   : > { %377 = vmatpush.bf16.msra.mxu0 %v1322_v6  ;;  %1337 = vmatpush.bf16.msra.mxu2 %v1322_v6 }
  0x19   : > { %406 = vmatpush.bf16.msra.mxu1 %v1330_v7  ;;  %1345 = vmatpush.bf16.msra.mxu3 %v1330_v7 }
  0x1c   : > { %378 = vmatpush.bf16.msra.mxu0 %v1321_v8  ;;  %1338 = vmatpush.bf16.msra.mxu2 %v1321_v8 }
  0x1d   : > { %407 = vmatpush.bf16.msra.mxu1 %v1329_v9  ;;  %1346 = vmatpush.bf16.msra.mxu3 %v1329_v9  ;;  %v1501_v9 = vrot.slane %v1369_v61, 1 }
  0x20   : > { %379 = vmatpush.bf16.msra.mxu0 %v1320_v10  ;;  %1339 = vmatpush.bf16.msra.mxu2 %v1320_v10  ;;  %v859_v10 = vrot.slane %v1492_v62, 1 }
  0x21   : > { %408 = vmatpush.bf16.msra.mxu1 %v1328_v11  ;;  %1347 = vmatpush.bf16.msra.mxu3 %v1328_v11 }
  0x24   : > { %380 = vmatpush.bf16.msra.mxu0 %v1319_v12  ;;  %1340 = vmatpush.bf16.msra.mxu2 %v1319_v12 }
  0x25   : > { %409 = vmatpush.bf16.msra.mxu1 %v1327_v13  ;;  %1348 = vmatpush.bf16.msra.mxu3 %v1327_v13 }
  0x28   : > { %381 = vmatpush.bf16.msra.mxu0 %v1318_v14  ;;  %1341 = vmatpush.bf16.msra.mxu2 %v1318_v14 }
  0x29   : > { %410 = vmatpush.bf16.msra.mxu1 %v1326_v15  ;;  %1349 = vmatpush.bf16.msra.mxu3 %v1326_v15 }
  0x2b   : > { %382 = vmatmul.bf16.vlgmr.msra.gmra.mxu0 %v1181_v24  ;;  %392 = vmatmul.bf16.vlgmr.msra.gmra.mxu2 %v1197_v25 }
  0x2c   : > { %411 = vmatmul.bf16.vlgmr.msra.gmra.mxu1 %v1185_v26  ;;  %421 = vmatmul.bf16.vlgmr.msra.gmra.mxu3 %v1201_v27 }
  0x3b   : > { %387 = vmatmul.bf16.gmra.mxu0 %v1189_v36  ;;  %397 = vmatmul.bf16.gmra.mxu2 %v1205_v37 }
  0x3c   : > { %416 = vmatmul.bf16.gmra.mxu1 %v1193_v38  ;;  %426 = vmatmul.bf16.gmra.mxu3 %v1209_v39 }
  0xa8   : > { %v383_v40 = vpop.f32.mrf.mxu0 }
  0xa9   : > { %v412_v42 = vpop.f32.mrf.mxu1 }
  0xaa   : > { %v413_v43 = vadd.f32 %v412_v42, %v383_v40 }
  0xac   : > { %v436_v45 = vmul.f32 %v1482_v41, %v413_v43 }
  0xae   : > { %v448_v46 = vadd.f32 %v1487_v44, %v436_v45  ;;  %v393_v47 = vpop.f32.mrf.mxu2 }
  0xaf   : > { %v422_v48 = vpop.f32.mrf.mxu3 }
  0xb0   : > { %v456_v49 = vmax.f32 %v448_v46, 0.0  ;;  %v423_v50 = vadd.f32 %v422_v48, %v393_v47  ;;  %v385_v51 = vpop.f32.mrf.mxu0 }
  0xb1   : > { %v414_v52 = vpop.f32.mrf.mxu1 }
  0xb2   : > { %v472_v53 = vrot.slane %v456_v49, 2  ;;  %v473_v54 = vrot.slane %v456_v49, 4  ;;  %v474_v55 = vrot.slane %v456_v49, 6  ;;  %v440_v56 = vmul.f32 %v1482_v41, %v423_v50 }
  0xb3   : > { %v415_v57 = vadd.f32 %v414_v52, %v385_v51  ;;  %v520_v58 = vperm.slane %v456_v49, 1  ;;  %v1274_v2 = vrot.slane %v456_v49, 9 }
  0xb4   : > { %v521_v59 = vperm.slane %v472_v53, 1  ;;  %v522_v60 = vperm.slane %v473_v54, 1  ;;  %v452_v63 = vadd.f32 %v1487_v44, %v440_v56  ;;  %v1275_v3 = vrot.slane %v472_v53, 9 }
  0xb5   : > { %v437_v0 = vmul.f32 %v1482_v41, %v415_v57  ;;  %v1276_v5 = vrot.slane %v473_v54, 9  ;;  %v1277_v6 = vrot.slane %v474_v55, 9  ;;  %v1507_v17 = vmax.f32 %v456_v49, %v1274_v2 }
  0xb6   : > { %v545_v1 = vsel %vm544_vm0, %v521_v59, %v520_v58  ;;  %v460_v7 = vmax.f32 %v452_v63, 0.0  ;;  %v395_v15 = vpop.f32.mrf.mxu2  ;;  %v676_v21 = vmax.f32 %v472_v53, %v1275_v3 }
  0xb7   : > { %v547_v4 = vsel %vm546_vm1, %v522_v60, %v545_v1  ;;  %v449_v14 = vadd.f32 %v1487_v44, %v437_v0  ;;  %v424_v16 = vpop.f32.mrf.mxu3  ;;  %v677_v22 = vmax.f32 %v473_v54, %v1276_v5  ;;  %v1509_v23 = vmax.f32 %v474_v55, %v1277_v6 }
  0xb8   : > { %v1499_v8 = vsel %vm570_vm2, 0.0, %v547_v4  ;;  %v484_v13 = vrot.slane %v460_v7, 2  ;;  %v485_v18 = vrot.slane %v460_v7, 4  ;;  %v486_v19 = vrot.slane %v460_v7, 6  ;;  %v388_v29 = vpop.f32.mrf.mxu0 }
  0xb9   : > { %v715_v11 = vrot.slane %v1499_v8, 2  ;;  %v723_v12 = vrot.slane %v1499_v8, 1  ;;  %v532_v20 = vperm.slane %v460_v7, 1  ;;  %v1290_v27 = vrot.slane %v460_v7, 9  ;;  %v417_v30 = vpop.f32.mrf.mxu1 }
  0xba   : > { %v533_v24 = vperm.slane %v484_v13, 1  ;;  %v534_v26 = vperm.slane %v485_v18, 1  ;;  %v425_v28 = vadd.f32 %v424_v16, %v395_v15  ;;  %v771_v31 = vmax.f32 %v1507_v17, %v1499_v8 }
  0xbb   : > { %v1511_v25 = vrot.slane %v715_v11, 1  ;;  %v1515_v32 = vmax.f32 %v676_v21, %v723_v12  ;;  %v457_v34 = vmax.f32 %v449_v14, 0.0  ;;  %v1291_v36 = vrot.slane %v484_v13, 9 }
  0xbc   : > { %v554_v33 = vsel %vm544_vm0, %v533_v24, %v532_v20  ;;  %v1292_v37 = vrot.slane %v485_v18, 9  ;;  %v1293_v38 = vrot.slane %v486_v19, 9  ;;  %v1519_v39 = vmax.f32 %v677_v22, %v715_v11 }
  0xbd   : > { %v555_v35 = vsel %vm546_vm1, %v534_v26, %v554_v33  ;;  %v475_v40 = vrot.slane %v457_v34, 2  ;;  %v476_v42 = vrot.slane %v457_v34, 4  ;;  %v477_v43 = vrot.slane %v457_v34, 6 }
  0xbe   : > { %v774_v45 = vmax.f32 %v1509_v23, %v1511_v25  ;;  %v1524_v46 = vsel %vm570_vm2, 0.0, %v555_v35  ;;  %v1526_v47 = vmax.f32 %v460_v7, %v1290_v27  ;;  %v523_v48 = vperm.slane %v457_v34, 1  ;;  %v398_v2 = vpop.f32.mrf.mxu2 }
  0xbf   : > { %v524_v49 = vperm.slane %v475_v40, 1  ;;  %v525_v50 = vperm.slane %v476_v42, 1  ;;  %v1278_v51 = vrot.slane %v457_v34, 9  ;;  %v1279_v52 = vrot.slane %v475_v40, 9  ;;  %v427_v3 = vpop.f32.mrf.mxu3 }
  0xc0   : > { %v692_v53 = vmax.f32 %v484_v13, %v1291_v36  ;;  %v1528_v54 = vmax.f32 %v485_v18, %v1292_v37  ;;  %v1530_v55 = vmax.f32 %v486_v19, %v1293_v38  ;;  %v1280_v56 = vrot.slane %v476_v42, 9  ;;  %v390_v14 = vpop.f32.mrf.mxu0 }
  0xc1   : > { %v719_v57 = vrot.slane %v1524_v46, 2  ;;  %v731_v58 = vrot.slane %v1524_v46, 1  ;;  %v548_v59 = vsel %vm544_vm0, %v524_v49, %v523_v48  ;;  %v1281_v60 = vrot.slane %v477_v43, 9  ;;  %v419_v15 = vpop.f32.mrf.mxu1 }
  0xc2   : > { %v549_v61 = vsel %vm546_vm1, %v525_v50, %v548_v59  ;;  %v679_v63 = vmax.f32 %v457_v34, %v1278_v51  ;;  %v680_v0 = vmax.f32 %v475_v40, %v1279_v52  ;;  %v441_v1 = vmul.f32 %v1482_v41, %v425_v28 }
  0xc3   : > { %v572_v4 = vsel %vm570_vm2, 0.0, %v549_v61  ;;  %v681_v5 = vmax.f32 %v476_v42, %v1280_v56  ;;  %v418_v6 = vadd.f32 %v417_v30, %v388_v29  ;;  %v428_v7 = vadd.f32 %v427_v3, %v398_v2 }
  0xc4   : > { %v716_v8 = vrot.slane %v572_v4, 2  ;;  %v725_v11 = vrot.slane %v572_v4, 1  ;;  %v1538_v12 = vmax.f32 %v679_v63, %v572_v4  ;;  %v453_v13 = vadd.f32 %v1487_v44, %v441_v1 }
  0xc5   : > { %v1543_v16 = vrot.slane %v719_v57, 1  ;;  %v787_v17 = vmax.f32 %v1526_v47, %v1524_v46  ;;  %v682_v18 = vmax.f32 %v477_v43, %v1281_v60  ;;  %v438_v19 = vmul.f32 %v1482_v41, %v418_v6 }
  0xc6   : > { %v726_v20 = vrot.slane %v716_v8, 1  ;;  %v776_v21 = vmax.f32 %v680_v0, %v725_v11  ;;  %v1548_v22 = vmax.f32 %v681_v5, %v716_v8  ;;  %v442_v23 = vmul.f32 %v1482_v41, %v428_v7 }
  0xc7   : > { %v1551_v24 = vmax.f32 %v692_v53, %v731_v58  ;;  %v837_v25 = vmax.f32 %v771_v31, %v1538_v12  ;;  %v461_v26 = vmax.f32 %v453_v13, 0.0  ;;  %v1554_v27 = vadd.f32 %v419_v15, %v390_v14 }
  0xc8   : > { %v1556_v28 = vmax.f32 %v682_v18, %v726_v20  ;;  %v815_v29 = vperm.slane %v1538_v12, 0  ;;  %v838_v30 = vmax.f32 %v1515_v32, %v776_v21  ;;  %v450_v33 = vadd.f32 %v1487_v44, %v438_v19 }
  0xc9   : > { %v839_v34 = vmax.f32 %v1519_v39, %v1548_v22  ;;  %v882_v35 = vmax.f32 %v837_v25, 0.0  ;;  %v487_v36 = vrot.slane %v461_v26, 2  ;;  %v488_v37 = vrot.slane %v461_v26, 4 }
  0xca   : > { %v816_v38 = vperm.slane %v776_v21, 0  ;;  %v840_v31 = vmax.f32 %v774_v45, %v1556_v28  ;;  %v883_v40 = vmax.f32 %v838_v30, %v1501_v9  ;;  %v454_v42 = vadd.f32 %v1487_v44, %v442_v23 }
  0xcb   : > { %v884_v43 = vmax.f32 %v839_v34, %v1492_v62  ;;  %v898_v48 = vpack.c.bf16 %v882_v35, %v882_v35  ;;  %v489_v49 = vrot.slane %v461_v26, 6  ;;  %v535_v32 = vperm.slane %v461_v26, 1 }
  0xcc   : > { %v885_v50 = vmax.f32 %v840_v31, %v859_v10  ;;  %v899_v51 = vpack.c.bf16 %v883_v40, %v883_v40  ;;  %v536_v39 = vperm.slane %v487_v36, 1  ;;  %v537_v52 = vperm.slane %v488_v37, 1 }
  0xcd   : > { %v900_v53 = vpack.c.bf16 %v884_v43, %v884_v43  ;;  %v930_v56 = vrot.slane %v898_v48, 2  ;;  %v1294_v58 = vrot.slane %v461_v26, 9  ;;  %v1295_v59 = vrot.slane %v487_v36, 9 }
  0xce   : > { %v901_v45 = vpack.c.bf16 %v885_v50, %v885_v50  ;;  %v931_v60 = vrot.slane %v899_v51, 2  ;;  %v556_v9 = vsel %vm544_vm0, %v536_v39, %v535_v32  ;;  %v1296_v61 = vrot.slane %v488_v37, 9 }
  0xcf   : > { %v932_v63 = vrot.slane %v900_v53, 2  ;;  %v949_v0 = vsel %vm946_vm3, %v898_v48, %v930_v56  ;;  %v557_v1 = vsel %vm546_vm1, %v537_v52, %v556_v9  ;;  %v1297_v2 = vrot.slane %v489_v49, 9 }
  0xd0   : > { %v933_v62 = vrot.slane %v901_v45, 2  ;;  %v952_v10 = vsel %vm946_vm3, %v899_v51, %v931_v60  ;;  %995 = vst [vmem:[#allocation1] ss:$2 sm:$0xff] %v949_v0  ;;  %v576_v3 = vsel %vm570_vm2, 0.0, %v557_v1  ;;  %v695_v4 = vmax.f32 %v461_v26, %v1294_v58 }
  0xd1   : > { %v817_v5 = vperm.slane %v1548_v22, 0  ;;  %v955_v6 = vsel %vm946_vm3, %v900_v53, %v932_v63  ;;  %999 = vst [vmem:[#allocation1 + $0x10] ss:$2 sm:$0xff] %v952_v10  ;;  %v696_v7 = vmax.f32 %v487_v36, %v1295_v59  ;;  %v697_v8 = vmax.f32 %v488_v37, %v1296_v61 }
  0xd2   : > { %v958_v11 = vsel %vm946_vm3, %v901_v45, %v933_v62  ;;  %1003 = vst [vmem:[#allocation1 + $0x20] ss:$2 sm:$0xff] %v955_v6  ;;  %v720_v12 = vrot.slane %v576_v3, 2  ;;  %v733_v13 = vrot.slane %v576_v3, 1  ;;  %v791_v14 = vmax.f32 %v695_v4, %v576_v3 }
  0xd3   : > { %v1580_v15 = vmax.f32 %v1528_v54, %v719_v57  ;;  %v790_v18 = vmax.f32 %v1530_v55, %v1543_v16  ;;  %v828_v19 = vsel %vm827_vm4, %v816_v38, %v815_v29  ;;  %1007 = vst [vmem:[#allocation1 + $0x30] ss:$2 sm:$0xff] %v958_v11  ;;  %v458_v20 = vmax.f32 %v450_v33, 0.0 }
  0xd4   : > { %v698_v21 = vmax.f32 %v489_v49, %v1297_v2  ;;  %v734_v22 = vrot.slane %v720_v12, 1  ;;  %v1585_v23 = vmax.f32 %v696_v7, %v733_v13  ;;  %v1587_v25 = vmax.f32 %v697_v8, %v720_v12 }
  0xd5   : > { %v818_v26 = vperm.slane %v1556_v28, 0  ;;  %v478_v30 = vrot.slane %v458_v20, 2  ;;  %v479_v34 = vrot.slane %v458_v20, 4  ;;  %v462_v35 = vmax.f32 %v454_v42, 0.0 }
  0xd6   : > { %v1590_v54 = vmax.f32 %v698_v21, %v734_v22  ;;  %v823_v57 = vperm.slane %v791_v14, 0  ;;  %v439_v55 = vmul.f32 %v1482_v41, %v1554_v27  ;;  %v829_v16 = vsel %vm544_vm0, %v817_v5, %v828_v19 }
  0xd7   : > { %v824_v29 = vperm.slane %v1585_v23, 0  ;;  %v526_v33 = vperm.slane %v458_v20, 1  ;;  %v527_v36 = vperm.slane %v478_v30, 1  ;;  %v528_v37 = vperm.slane %v479_v34, 1 }
  0xd8   : > { %v825_v38 = vperm.slane %v1587_v25, 0  ;;  %v1600_v28 = vmax.f32 %v787_v17, %v791_v14  ;;  %v846_v31 = vmax.f32 %v1551_v24, %v1585_v23  ;;  %v480_v40 = vrot.slane %v458_v20, 6  ;;  %v1000_v21 = vld.sshfl [vmem:[#allocation1 + $0x10] sm:$0xff pattern:$0x75643120] }
  0xd9   : > { %v847_v42 = vmax.f32 %v1580_v15, %v1587_v25  ;;  %v550_v43 = vsel %vm544_vm0, %v527_v36, %v526_v33  ;;  %v1282_v48 = vrot.slane %v458_v20, 9  ;;  %v1283_v32 = vrot.slane %v478_v30, 9  ;;  %v1004_v33 = vld.sshfl [vmem:[#allocation1 + $0x20] sm:$0xff pattern:$0x75643120] }
  0xda   : > { %v551_v49 = vsel %vm546_vm1, %v528_v37, %v550_v43  ;;  %v490_v50 = vrot.slane %v462_v35, 2  ;;  %v491_v51 = vrot.slane %v462_v35, 4  ;;  %v1610_v46 = vsel %vm827_vm4, %v824_v29, %v823_v57  ;;  %v996_v57 = vld.sshfl [vmem:[#allocation1] sm:$0xff pattern:$0x75643120] }
  0xdb   : > { %v1613_v47 = vmax.f32 %v790_v18, %v1590_v54  ;;  %v1616_v17 = vsel %vm570_vm2, 0.0, %v551_v49  ;;  %v1284_v39 = vrot.slane %v479_v34, 9  ;;  %v1285_v52 = vrot.slane %v480_v40, 9  ;;  %v1008_v43 = vld.sshfl [vmem:[#allocation1 + $0x30] sm:$0xff pattern:$0x75643120] }
  0xdc   : > { %v717_v53 = vrot.slane %v1616_v17, 2  ;;  %v727_v56 = vrot.slane %v1616_v17, 1  ;;  %v492_v58 = vrot.slane %v462_v35, 6  ;;  %v538_v59 = vperm.slane %v462_v35, 1 }
  0xdd   : > { %v539_v45 = vperm.slane %v490_v50, 1  ;;  %v540_v60 = vperm.slane %v491_v51, 1  ;;  %v1298_v9 = vrot.slane %v462_v35, 9  ;;  %v1620_v61 = vmax.f32 %v458_v20, %v1282_v48 }
  0xde   : > { %v684_v63 = vmax.f32 %v478_v30, %v1283_v32  ;;  %v1622_v0 = vrot.slane %v717_v53, 1  ;;  %v1299_v1 = vrot.slane %v490_v50, 9  ;;  %v685_v2 = vmax.f32 %v479_v34, %v1284_v39 }
  0xdf   : > { %v558_v62 = vsel %vm544_vm0, %v539_v45, %v538_v59  ;;  %v1300_v10 = vrot.slane %v491_v51, 9  ;;  %v1301_v3 = vrot.slane %v492_v58, 9  ;;  %v1625_v4 = vmax.f32 %v480_v40, %v1285_v52 }
  0xe0   : > { %v559_v5 = vsel %vm546_vm1, %v540_v60, %v558_v62  ;;  %v1628_v6 = vmax.f32 %v462_v35, %v1298_v9  ;;  %v451_v7 = vadd.f32 %v1487_v44, %v439_v55  ;;  %v779_v8 = vmax.f32 %v1620_v61, %v1616_v17 }
  0xe1   : > { %v1633_v11 = vmax.f32 %v684_v63, %v727_v56  ;;  %v1636_v12 = vsel %vm570_vm2, 0.0, %v559_v5  ;;  %v1639_v13 = vsel %vm546_vm1, %v818_v26, %v829_v16  ;;  %v1641_v14 = vmax.f32 %v685_v2, %v717_v53  ;;  %v400_v56 = vpop.f32.mrf.mxu2 }
  0xe2   : > { %v782_v18 = vmax.f32 %v1625_v4, %v1622_v0  ;;  %v700_v19 = vmax.f32 %v490_v50, %v1299_v1  ;;  %v459_v20 = vmax.f32 %v451_v7, 0.0  ;;  %v1645_v22 = vmax.f32 %v491_v51, %v1300_v10 }
  0xe3   : > { %v1647_v30 = vmax.f32 %v492_v58, %v1301_v3  ;;  %v721_v34 = vrot.slane %v1636_v12, 2  ;;  %v735_v35 = vrot.slane %v1636_v12, 1  ;;  %v855_v16 = vrot.slane %v1639_v13, 2  ;;  %v429_v58 = vpop.f32.mrf.mxu3 }
  0xe4   : > { %v481_v55 = vrot.slane %v459_v20, 2  ;;  %v860_v29 = vrot.slane %v1639_v13, 1  ;;  %v482_v36 = vrot.slane %v459_v20, 4  ;;  %v483_v37 = vrot.slane %v459_v20, 6 }
  0xe5   : > { %v1286_v40 = vrot.slane %v459_v20, 9  ;;  %v1047_v48 = vunpack.c.l.b16 %v1000_v21  ;;  %v529_v49 = vperm.slane %v459_v20, 1  ;;  %v1046_v51 = vunpack.c.l.b16 %v996_v57 }
  0xe6   : > { %v530_v32 = vperm.slane %v481_v55, 1  ;;  %v1287_v50 = vrot.slane %v481_v55, 9  ;;  %v1657_v17 = vrot.slane %v721_v34, 1  ;;  %v531_v39 = vperm.slane %v482_v36, 1 }
  0xe7   : > { %v1288_v52 = vrot.slane %v482_v36, 9  ;;  %v1289_v53 = vrot.slane %v483_v37, 9  ;;  %v687_v45 = vmax.f32 %v459_v20, %v1286_v40  ;;  %v1048_v60 = vunpack.c.l.b16 %v1004_v33 }
  0xe8   : > { %v552_v59 = vsel %vm544_vm0, %v530_v32, %v529_v49  ;;  %v1049_v9 = vunpack.c.l.b16 %v1008_v43  ;;  %v688_v63 = vmax.f32 %v481_v55, %v1287_v50  ;;  %v1062_v2 = vrot.slane %v1047_v48, 7 }
  0xe9   : > { %v553_v61 = vsel %vm546_vm1, %v531_v39, %v552_v59  ;;  %v689_v1 = vmax.f32 %v482_v36, %v1288_v52  ;;  %v1064_v10 = vrot.slane %v1048_v60, 6  ;;  %v430_v5 = vadd.f32 %v429_v58, %v400_v56 }
  0xea   : > { %v574_v62 = vsel %vm570_vm2, 0.0, %v553_v61  ;;  %v1066_v3 = vrot.slane %v1049_v9, 5  ;;  %v1063_v26 = vsel %vm827_vm4, %v1062_v2, %v1046_v51  ;;  %v1663_v27 = vmax.f32 %v700_v19, %v735_v35 }
  0xeb   : > { %v718_v7 = vrot.slane %v574_v62, 2  ;;  %v729_v21 = vrot.slane %v574_v62, 1  ;;  %v783_v57 = vmax.f32 %v687_v45, %v574_v62  ;;  %v861_v20 = vrot.slane %v855_v16, 1 }
  0xec   : > { %v1065_v33 = vsel %vm544_vm0, %v1064_v10, %v1063_v26  ;;  %v443_v55 = vmul.f32 %v1482_v41, %v430_v5  ;;  %v690_v36 = vmax.f32 %v483_v37, %v1289_v53  ;;  %v835_v24 = vsel %vm544_vm0, %v825_v38, %v1610_v46 }
  0xed   : > { %v730_v40 = vrot.slane %v718_v7, 1  ;;  %v784_v43 = vmax.f32 %v688_v63, %v729_v21  ;;  %v785_v48 = vmax.f32 %v689_v1, %v718_v7  ;;  %v819_v49 = vperm.slane %v783_v57, 0 }
  0xee   : > { %v841_v32 = vmax.f32 %v779_v8, %v783_v57  ;;  %v1067_v50 = vsel %vm546_vm1, %v1066_v3, %v1065_v33  ;;  %v455_v39 = vadd.f32 %v1487_v44, %v443_v55 }
  0xef   : > { %v786_v52 = vmax.f32 %v690_v36, %v730_v40  ;;  %v820_v51 = vperm.slane %v784_v43, 0  ;;  %v821_v19 = vperm.slane %v785_v48, 0  ;;  %v842_v35 = vmax.f32 %v1633_v11, %v784_v43 }
  0xf0   : > { %v843_v26 = vmax.f32 %v1641_v14, %v785_v48  ;;  %v886_v41 = vmax.f32 %v841_v32, %v1639_v13  ;;  %v1086_v37 = vpack.c.b16 %v1067_v50, %v1067_v50  ;;  %v1673_v53 = vmax.f32 %v455_v39, 0.0 }
  0xf1   : > { %v822_v56 = vperm.slane %v786_v52, 0  ;;  %v831_v8 = vsel %vm827_vm4, %v820_v51, %v819_v49  ;;  %v844_v44 = vmax.f32 %v782_v18, %v786_v52  ;;  %v887_v58 = vmax.f32 %v842_v35, %v860_v29 }
  0xf2   : > { %v832_v59 = vsel %vm544_vm0, %v821_v19, %v831_v8  ;;  %v888_v45 = vmax.f32 %v843_v26, %v855_v16  ;;  %v902_v11 = vpack.c.bf16 %v886_v41, %v886_v41  ;;  %v1090_v60 = vrot.slane %v1086_v37, 2 }
  0xf3   : > { %v833_v13 = vsel %vm546_vm1, %v822_v56, %v832_v59  ;;  %v889_v14 = vmax.f32 %v844_v44, %v861_v20  ;;  %v903_v9 = vpack.c.bf16 %v887_v58, %v887_v58  ;;  %v1687_v61 = vrot.slane %v1673_v53, 2 }
  0xf4   : > { %v856_v0 = vrot.slane %v833_v13, 2  ;;  %v862_v4 = vrot.slane %v833_v13, 1  ;;  %v890_v18 = vmax.f32 %v1600_v28, %v833_v13  ;;  %v904_v16 = vpack.c.bf16 %v888_v45, %v888_v45 }
  0xf5   : > { %v905_v29 = vpack.c.bf16 %v889_v14, %v889_v14  ;;  %v934_v63 = vrot.slane %v902_v11, 2  ;;  %v935_v1 = vrot.slane %v903_v9, 2  ;;  %v1096_v2 = vsel %vm946_vm3, %v1086_v37, %v1090_v60 }
  0xf6   : > { %v863_v62 = vrot.slane %v856_v0, 1  ;;  %v891_v10 = vmax.f32 %v846_v31, %v862_v4  ;;  %v892_v3 = vmax.f32 %v847_v42, %v856_v0  ;;  %v906_v5 = vpack.c.bf16 %v890_v18, %v890_v18  ;;  %1110 = vst [vmem:[%s1683_s9] sm:$0x3] %v1096_v2 }
  0xf7   : > { %v936_v7 = vrot.slane %v904_v16, 2  ;;  %v937_v21 = vrot.slane %v905_v29, 2  ;;  %v961_v28 = vsel %vm946_vm3, %v902_v11, %v934_v63  ;;  %v964_v57 = vsel %vm946_vm3, %v903_v9, %v935_v1 }
  0xf8   : > { %v893_v20 = vmax.f32 %v1613_v47, %v863_v62  ;;  %v907_v33 = vpack.c.bf16 %v891_v10, %v891_v10  ;;  %v908_v55 = vpack.c.bf16 %v892_v3, %v892_v3  ;;  %1010 = vst [vmem:[#allocation1] ss:$2 sm:$0xff] %v961_v28  ;;  %v494_v31 = vrot.slane %v1673_v53, 4 }
  0xf9   : > { %v967_v15 = vsel %vm946_vm3, %v904_v16, %v936_v7  ;;  %v970_v23 = vsel %vm946_vm3, %v905_v29, %v937_v21  ;;  %1013 = vst [vmem:[#allocation1 + $0x10] ss:$2 sm:$0xff] %v964_v57  ;;  %v495_v42 = vrot.slane %v1673_v53, 6  ;;  %v938_v40 = vrot.slane %v906_v5, 2 }
  0xfa   : > { %v909_v36 = vpack.c.bf16 %v893_v20, %v893_v20  ;;  %v939_v47 = vrot.slane %v907_v33, 2  ;;  %v940_v43 = vrot.slane %v908_v55, 2  ;;  %1016 = vst [vmem:[#allocation1 + $0x20] ss:$2 sm:$0xff] %v967_v15  ;;  %v541_v48 = vperm.slane %v1673_v53, 1 }
  0xfb   : > { %1019 = vst [vmem:[#allocation1 + $0x30] ss:$2 sm:$0xff] %v970_v23  ;;  %v542_v25 = vperm.slane %v1687_v61, 1  ;;  %v543_v38 = vperm.slane %v494_v31, 1  ;;  %v1302_v46 = vrot.slane %v1673_v53, 9  ;;  %v797_v49 = vmax.f32 %v1645_v22, %v721_v34 }
  0xfc   : > { %v798_v32 = vmax.f32 %v1647_v30, %v1657_v17  ;;  %v941_v50 = vrot.slane %v909_v36, 2  ;;  %v1761_v39 = vperm.slane %v1590_v54, 0  ;;  %v1303_v19 = vrot.slane %v1687_v61, 9 }
  0xfd   : > { %v560_v51 = vsel %vm544_vm0, %v542_v25, %v541_v48  ;;  %v1304_v35 = vrot.slane %v494_v31, 9  ;;  %v1305_v26 = vrot.slane %v495_v42, 9  ;;  %v973_v41 = vsel %vm946_vm3, %v906_v5, %v938_v40 }
  0xfe   : > { %v836_v52 = vsel %vm546_vm1, %v1761_v39, %v835_v24  ;;  %v976_v37 = vsel %vm946_vm3, %v907_v33, %v939_v47  ;;  %v561_v22 = vsel %vm546_vm1, %v543_v38, %v560_v51  ;;  %v703_v34 = vmax.f32 %v1673_v53, %v1302_v46 }
  0xff   : > { %v979_v30 = vsel %vm946_vm3, %v908_v55, %v940_v43  ;;  %v1011_v17 = vld.sshfl [vmem:[#allocation1] sm:$0xff pattern:$0x75643120]  ;;  %v578_v54 = vsel %vm570_vm2, 0.0, %v561_v22  ;;  %v857_v56 = vrot.slane %v836_v52, 2  ;;  %v864_v8 = vrot.slane %v836_v52, 1 }
 0x100   : > { %v982_v44 = vsel %vm946_vm3, %v909_v36, %v941_v50  ;;  %v1014_v58 = vld.sshfl [vmem:[#allocation1 + $0x10] sm:$0xff pattern:$0x75643120]  ;;  %1022 = vst [vmem:[#allocation1] ss:$2 sm:$0xff] %v973_v41  ;;  %v705_v59 = vmax.f32 %v494_v31, %v1304_v35  ;;  %v722_v45 = vrot.slane %v578_v54, 2  ;;  %v799_v11 = vmax.f32 %v703_v34, %v578_v54 }
 0x101   : > { %v1017_v60 = vld.sshfl [vmem:[#allocation1 + $0x20] sm:$0xff pattern:$0x75643120]  ;;  %1025 = vst [vmem:[#allocation1 + $0x10] ss:$2 sm:$0xff] %v976_v37  ;;  %v1051_v13 = vunpack.c.l.b16 %v1014_v58  ;;  %v704_v14 = vmax.f32 %v1687_v61, %v1303_v19  ;;  %v706_v53 = vmax.f32 %v495_v42, %v1305_v26  ;;  %v737_v9 = vrot.slane %v578_v54, 1 }
 0x102   : > { %v1020_v0 = vld.sshfl [vmem:[#allocation1 + $0x30] sm:$0xff pattern:$0x75643120]  ;;  %1028 = vst [vmem:[#allocation1 + $0x20] ss:$2 sm:$0xff] %v979_v30  ;;  %v1052_v4 = vunpack.c.l.b16 %v1017_v60  ;;  %v738_v18 = vrot.slane %v722_v45, 1  ;;  %v801_v16 = vmax.f32 %v705_v59, %v722_v45  ;;  %v1762_v29 = vmax.f32 %v1628_v6, %v1636_v12 }
 0x103   : > { %1031 = vst [vmem:[#allocation1 + $0x30] ss:$2 sm:$0xff] %v982_v44  ;;  %v1050_v1 = vunpack.c.l.b16 %v1011_v17  ;;  %v1053_v2 = vunpack.c.l.b16 %v1020_v0  ;;  %v1068_v62 = vrot.slane %v1051_v13, 7  ;;  %v800_v10 = vmax.f32 %v704_v14, %v737_v9 }
 0x104   : > { %v849_v63 = vmax.f32 %v1762_v29, %v799_v11  ;;  %v1070_v3 = vrot.slane %v1052_v4, 6  ;;  %v802_v5 = vmax.f32 %v706_v53, %v738_v18  ;;  %v851_v7 = vmax.f32 %v797_v49, %v801_v16 }
 0x105   : > { %v1069_v21 = vsel %vm827_vm4, %v1068_v62, %v1050_v1  ;;  %v1072_v28 = vrot.slane %v1053_v2, 5  ;;  %v850_v57 = vmax.f32 %v1663_v27, %v800_v10  ;;  %v865_v20 = vrot.slane %v857_v56, 1 }
 0x106   : > { %v894_v61 = vmax.f32 %v849_v63, %v836_v52  ;;  %v1071_v33 = vsel %vm544_vm0, %v1070_v3, %v1069_v21  ;;  %v852_v55 = vmax.f32 %v798_v32, %v802_v5  ;;  %v896_v6 = vmax.f32 %v851_v7, %v857_v56 }
 0x107   : > { %v1073_v24 = vsel %vm546_vm1, %v1072_v28, %v1071_v33  ;;  %v895_v15 = vmax.f32 %v850_v57, %v864_v8  ;;  %v1023_v23 = vld.sshfl [vmem:[#allocation1] sm:$0xff pattern:$0x75643120] }
 0x108   : > { %v910_v12 = vpack.c.bf16 %v894_v61, %v894_v61  ;;  %v1087_v31 = vpack.c.b16 %v1073_v24, %v1073_v24  ;;  %v897_v42 = vmax.f32 %v852_v55, %v865_v20  ;;  %v912_v36 = vpack.c.bf16 %v896_v6, %v896_v6  ;;  %v1026_v47 = vld.sshfl [vmem:[#allocation1 + $0x10] sm:$0xff pattern:$0x75643120] }
 0x109   : > { %v911_v43 = vpack.c.bf16 %v895_v15, %v895_v15  ;;  %v1029_v48 = vld.sshfl [vmem:[#allocation1 + $0x20] sm:$0xff pattern:$0x75643120]  ;;  %v1054_v25 = vunpack.c.l.b16 %v1023_v23  ;;  %v1055_v27 = vunpack.c.l.b16 %v1026_v47 }
 0x10a   : > { %v942_v40 = vrot.slane %v910_v12, 2  ;;  %v1091_v38 = vrot.slane %v1087_v31, 2  ;;  %v913_v46 = vpack.c.bf16 %v897_v42, %v897_v42  ;;  %v944_v49 = vrot.slane %v912_v36, 2  ;;  %v1032_v50 = vld.sshfl [vmem:[#allocation1 + $0x30] sm:$0xff pattern:$0x75643120] }
 0x10b   : > { %v943_v39 = vrot.slane %v911_v43, 2  ;;  %v1056_v52 = vunpack.c.l.b16 %v1029_v48  ;;  %v1057_v51 = vunpack.c.l.b16 %v1032_v50  ;;  %v1074_v19 = vrot.slane %v1055_v27, 7 }
 0x10c   : > { %v985_v32 = vsel %vm946_vm3, %v910_v12, %v942_v40  ;;  %v1099_v35 = vsel %vm946_vm3, %v1087_v31, %v1091_v38  ;;  %v945_v26 = vrot.slane %v913_v46, 2  ;;  %v991_v30 = vsel %vm946_vm3, %v912_v36, %v944_v49 }
 0x10d   : > { %1034 = vst [vmem:[#allocation1] ss:$2 sm:$0xff] %v985_v32  ;;  %v988_v41 = vsel %vm946_vm3, %v911_v43, %v943_v39  ;;  %v1075_v37 = vsel %vm827_vm4, %v1074_v19, %v1054_v25  ;;  %v1076_v22 = vrot.slane %v1056_v52, 6  ;;  %v1078_v34 = vrot.slane %v1057_v51, 5 }
 0x10e   : > { %1111 = vst [vmem:[%s1683_s9 + $0x2] sm:$0x3] %v1099_v35  ;;  %v994_v17 = vsel %vm946_vm3, %v913_v46, %v945_v26 }
 0x10f   : > { %1037 = vst [vmem:[#allocation1 + $0x10] ss:$2 sm:$0xff] %v988_v41  ;;  %v1077_v54 = vsel %vm544_vm0, %v1076_v22, %v1075_v37 }
 0x110   : > { %1040 = vst [vmem:[#allocation1 + $0x20] ss:$2 sm:$0xff] %v991_v30  ;;  %v1079_v56 = vsel %vm546_vm1, %v1078_v34, %v1077_v54 }
 0x111   : > { %1043 = vst [vmem:[#allocation1 + $0x30] ss:$2 sm:$0xff] %v994_v17  ;;  %v1088_v8 = vpack.c.b16 %v1079_v56, %v1079_v56 }
 0x113   : > { %v1092_v44 = vrot.slane %v1088_v8, 2 }
 0x114   : > { %v1035_v58 = vld.sshfl [vmem:[#allocation1] sm:$0xff pattern:$0x75643120] }
 0x115   : > { %v1102_v45 = vsel %vm946_vm3, %v1088_v8, %v1092_v44  ;;  %v1058_v53 = vunpack.c.l.b16 %v1035_v58 }
 0x116   : > { %v1038_v59 = vld.sshfl [vmem:[#allocation1 + $0x10] sm:$0xff pattern:$0x75643120]  ;;  %1112 = vst [vmem:[%s1683_s9 + $0x4] sm:$0x3] %v1102_v45 }
 0x117   : > { %v1041_v11 = vld.sshfl [vmem:[#allocation1 + $0x20] sm:$0xff pattern:$0x75643120]  ;;  %v1059_v60 = vunpack.c.l.b16 %v1038_v59 }
 0x118   : > { %v1044_v13 = vld.sshfl [vmem:[#allocation1 + $0x30] sm:$0xff pattern:$0x75643120]  ;;  %v1060_v14 = vunpack.c.l.b16 %v1041_v11 }
 0x119   : > { %v1061_v9 = vunpack.c.l.b16 %v1044_v13  ;;  %v1080_v0 = vrot.slane %v1059_v60, 7 }
 0x11a   : > { %v1082_v4 = vrot.slane %v1060_v14, 6 }
 0x11b   : > { %v1081_v18 = vsel %vm827_vm4, %v1080_v0, %v1058_v53  ;;  %v1084_v16 = vrot.slane %v1061_v9, 5 }
 0x11c   : > { %v1083_v29 = vsel %vm544_vm0, %v1082_v4, %v1081_v18 }
 0x11d   : > { %v1085_v63 = vsel %vm546_vm1, %v1084_v16, %v1083_v29 }
 0x11e   : > { %v1089_v1 = vpack.c.b16 %v1085_v63, %v1085_v63 }
 0x120   : > { %v1093_v2 = vrot.slane %v1089_v1, 2 }
 0x122   : > { %v1105_v62 = vsel %vm946_vm3, %v1089_v1, %v1093_v2 }
 0x123   : > { %1113 = vst [vmem:[%s1683_s9 + $0x6] sm:$0x3] %v1105_v62 }
 0x124 PF: > { %s14_s15 = sadd.s32 1, %s1367_s15  }
 0x125   : > { %p11_p4 = scmp.ge.s32.totalorder %s14_s15, 4  }
 0x127   :  { %13 = sbr.rel (!%p11_p4) target bundleno = 1 (0x1), region = 69 }

// kernel: _lambda_.4
= control target key start
LH: loop header
LB: loop body
LE: loop exit
PB: predicated region body
PF: predicated region fallthrough
CT: control target
= control target key end

     0   :  { %s3287_s24 = smov 0   ;;  %s4036_s0 = inlined_call_operand.vmem [shape: bf16[2,42,128], index: 0, kind: input, shape index: {}]   ;;  %s4037_s1 = inlined_call_operand.vmem [shape: bf16[1152,128], index: 1, kind: input, shape index: {}]   ;;  %s4038_s2 = inlined_call_operand.vmem [shape: f32[1,128], index: 2, kind: input, shape index: {}, may-alias: {2,5}]   ;;  %s4039_s3 = inlined_call_operand.vmem [shape: f32[1,128], index: 3, kind: input, shape index: {}, may-alias: {3,6}]   ;;  %s4040_s4 = inlined_call_operand.vmem [shape: bf16[1152,128], index: 4, kind: input, shape index: {}]   ;;  %s4041_s5 = inlined_call_operand.vmem [shape: f32[1,128], index: 5, kind: input, shape index: {}, may-alias: {2,5}]   ;;  %s4042_s6 = inlined_call_operand.vmem [shape: f32[1,128], index: 6, kind: input, shape index: {}, may-alias: {3,6}]   ;;  %s4043_s7 = inlined_call_operand.vmem [shape: bf16[2,4,4,128], index: 7, kind: output, shape index: {}]  }
   0x1 LB: > { %s2459_s25 = sadd.s32 4294967295, %s3244_s24   ;;  %p2463_p0 = scmp.ge.s32.totalorder %s3244_s24, 1  ;;  %s3244_s24 = sphi %s3287_s24, %s17_s24  }
   0x2   : > { %p237_p1 = scmp.lt.s32.totalorder %s3244_s24, 3 }
   0x4   : > { %p238_p2 = pnand %p2463_p0, %p237_p1 }
   0x5   : > { %p269_p3 = scmp.lt.s32.totalorder (!%p238_p2), %s2459_s25, 1 }
   0x6   : > { %241 = sbr.rel (%p238_p2) target bundleno = 536 (0x218), region = 48 }
   0xb   : > { %v3073_v0 = vld [vmem:[%s4037_s1 + $0xb8] sm:$0xff]  ;;  %v3072_v4 = vld [vmem:[%s4037_s1 + $0xb0] sm:$0xff]  ;;  %s4049_s25 = smov (!%p269_p3, %s2459_s25), 1  ;;  %v3071_v8 = vld [vmem:[%s4037_s1 + $0xa8] sm:$0xff]  ;;  %vm359_vm0 = vcmask 1045504   ;;  %vm395_vm1 = vcmask 1046528  }
   0xc   : > { %v3081_v1 = vld [vmem:[%s4037_s1 + $0xf8] sm:$0xff]  ;;  %502 = vmatpush.bf16.msra.mxu0 %v3073_v0  ;;  %v3080_v5 = vld [vmem:[%s4037_s1 + $0xf0] sm:$0xff]  ;;  %s3224_s19 = smul.u32 24, %s4049_s25  ;;  %v3079_v9 = vld [vmem:[%s4037_s1 + $0xe8] sm:$0xff]  ;;  %vm297_vm2 = vsmask.f32 7424 }
   0xd   : > { %v3057_v2 = vld [vmem:[%s4037_s1 + $0x38] sm:$0xff]  ;;  %520 = vmatpush.bf16.msra.mxu1 %v3081_v1  ;;  %v3056_v6 = vld [vmem:[%s4037_s1 + $0x30] sm:$0xff]  ;;  %v3055_v10 = vld [vmem:[%s4037_s1 + $0x28] sm:$0xff]  ;;  %vm676_vm3 = vsmask.f32 3328  ;;  %vm1130_vm5 = vcmask 1044480  }
   0xe   : > { %v3065_v3 = vld [vmem:[%s4037_s1 + $0x78] sm:$0xff]  ;;  %634 = vmatpush.bf16.msra.mxu2 %v3057_v2  ;;  %v3064_v7 = vld [vmem:[%s4037_s1 + $0x70] sm:$0xff]  ;;  %v3063_v11 = vld [vmem:[%s4037_s1 + $0x68] sm:$0xff]  ;;  %s3337_s9 = scalar_lea.vmem %s4036_s0, %s3224_s19  ;;  %vm726_vm4 = vsmask.f32 4352  ;;  %vm1262_vm6 = vcmask 1040384  }
   0xf   : > { %652 = vmatpush.bf16.msra.mxu3 %v3065_v3  ;;  %v3070_v12 = vld [vmem:[%s4037_s1 + $0xa0] sm:$0xff]  ;;  %v282_v17 = vld [vmem:[%s3337_s9 + $0x8] sm:$0xf]  ;;  %v283_v18 = vld [vmem:[%s3337_s9 + $0xc] sm:$0x1]  ;;  %vm1386_vm7 = vcmask 1042432  }
  0x10   : > { %503 = vmatpush.bf16.msra.mxu0 %v3072_v4  ;;  %v3078_v13 = vld [vmem:[%s4037_s1 + $0xe0] sm:$0xff]  ;;  %v3356_v21 = vunpack.c.l.b16 %v282_v17  ;;  %v349_v23 = vld [vmem:[%s3337_s9 + $0xc] sm:$0x7]  ;;  %v3069_v29 = vld [vmem:[%s4037_s1 + $0x98] sm:$0xff]  ;;  %v295_v32 = vunpack.c.l.b16 %v283_v18  ;;  %v1233_v41 = vunpack.c.l.bf16 %v282_v17  ;;  %vm1387_vm8 = vcmask 1046532   ;;  %s3049_s14 = sshll.u32 %s4049_s25, 3 }
  0x11   : > { %521 = vmatpush.bf16.msra.mxu1 %v3080_v5  ;;  %v3054_v14 = vld [vmem:[%s4037_s1 + $0x20] sm:$0xff]  ;;  %v356_v26 = vunpack.c.l.b16 %v349_v23  ;;  %v3077_v30 = vld [vmem:[%s4037_s1 + $0xd8] sm:$0xff]  ;;  %v3068_v38 = vld [vmem:[%s4037_s1 + $0x90] sm:$0xff]  ;;  %vm1263_vm10 = vcmask 1042434   ;;  %vm1265_vm12 = vcmask 1044484   ;;  %vm1267_vm14 = vcmask 1046534   ;;  %s278_s17 = scalar_lea.vmem %s4043_s7, %s3049_s14 }
  0x12   : > { %635 = vmatpush.bf16.msra.mxu2 %v3056_v6  ;;  %v281_v15 = vld [vmem:[%s3337_s9 + $0x4] sm:$0xf]  ;;  %v348_v22 = vld [vmem:[%s3337_s9] sm:$0x8]  ;;  %v3053_v31 = vld [vmem:[%s4037_s1 + $0x18] sm:$0xff]  ;;  %v3394_v44 = vpack.c.b16 %v295_v32, %v3356_v21 }
  0x13   : > { %653 = vmatpush.bf16.msra.mxu3 %v3064_v7  ;;  %v3062_v16 = vld [vmem:[%s4037_s1 + $0x60] sm:$0xff]  ;;  %v3354_v19 = vunpack.c.l.b16 %v281_v15  ;;  %v1232_v20 = vunpack.c.l.bf16 %v281_v15  ;;  %v355_v25 = vunpack.c.l.b16 %v348_v22  ;;  %v1231_v27 = vunpack.c.l.bf16 %v348_v22  ;;  %v3061_v33 = vld [vmem:[%s4037_s1 + $0x58] sm:$0xff]  ;;  %v3076_v39 = vld [vmem:[%s4037_s1 + $0xd0] sm:$0xff] }
  0x14   : > { %504 = vmatpush.bf16.msra.mxu0 %v3071_v8  ;;  %v280_v24 = vld [vmem:[%s3337_s9] sm:$0xf]  ;;  %v358_v36 = vpack.c.b16 %v356_v26, %v3356_v21  ;;  %v3052_v42 = vld [vmem:[%s4037_s1 + $0x10] sm:$0xff]  ;;  %v3067_v48 = vld [vmem:[%s4037_s1 + $0x88] sm:$0xff]  ;;  %v306_v57 = vshll.u32 %v3394_v44, 16  ;;  %v397_v62 = vrot.slane %v3394_v44, 1 }
  0x15   : > { %522 = vmatpush.bf16.msra.mxu1 %v3079_v9  ;;  %1240 = vst.sshfl [vmem:[#allocation1 + $0x20] sm:$0xff pattern:$0x73625140] %v1232_v20  ;;  %v287_v28 = vunpack.c.l.b16 %v280_v24  ;;  %v347_v34 = vld [vmem:[%s3337_s9] sm:$0xe]  ;;  %v3375_v35 = vpack.c.b16 %v3354_v19, %v355_v25  ;;  %v3060_v43 = vld [vmem:[%s4037_s1 + $0x50] sm:$0xff]  ;;  %vm3806_vm9 = vmor %vm1386_vm7, %vm1387_vm8 }
  0x16   : > { %636 = vmatpush.bf16.msra.mxu2 %v3055_v10  ;;  %1239 = vst.sshfl [vmem:[#allocation1] sm:$0xff pattern:$0x73625140] %v1231_v27  ;;  %v351_v40 = vunpack.c.l.b16 %v347_v34  ;;  %v361_v46 = vrot.slane %v358_v36, 2  ;;  %v3075_v49 = vld [vmem:[%s4037_s1 + $0xc8] sm:$0xff]  ;;  %v3066_v59 = vld [vmem:[%s4037_s1 + $0x80] sm:$0xff]  ;;  %v674_v10 = vpack.c.b16 %v3356_v21, %v3354_v19  ;;  %vm1264_vm11 = vmor %vm1262_vm6, %vm1263_vm10 }
  0x17   : > { %654 = vmatpush.bf16.msra.mxu3 %v3063_v11  ;;  %v3379_v37 = vpack.c.b16 %v3354_v19, %v287_v28  ;;  %v360_v45 = vrot.slane %v3375_v35, 2  ;;  %v3051_v50 = vld [vmem:[%s4037_s1 + $0x8] sm:$0xff]  ;;  %v3074_v60 = vld [vmem:[%s4037_s1 + $0xc0] sm:$0xff]  ;;  %v3434_v4 = vrot.slane %v306_v57, 1  ;;  %v3089_v6 = vld [vmem:[%s4037_s1 + $0x138] sm:$0xff] }
  0x18   : > { %505 = vmatpush.bf16.msra.mxu0 %v3070_v12  ;;  %v3059_v51 = vld [vmem:[%s4037_s1 + $0x48] sm:$0xff]  ;;  %v352_v52 = vpack.c.b16 %v3354_v19, %v351_v40  ;;  %v3426_v0 = vrot.slane %v361_v46, 1  ;;  %v3050_v1 = vld [vmem:[%s4037_s1] sm:$0xff]  ;;  %v3097_v7 = vld [vmem:[%s4037_s1 + $0x178] sm:$0xff]  ;;  %v678_v19 = vshrl.u32 %v674_v10, 16  ;;  %v681_v20 = vshll.u32 %v674_v10, 16 }
  0x19   : > { %523 = vmatpush.bf16.msra.mxu1 %v3078_v13  ;;  %v301_v47 = vshll.u32 %v3379_v37, 16  ;;  %v362_v54 = vsel %vm359_vm0, %v360_v45, %v361_v46  ;;  %v299_v55 = vshrl.u32 %v3379_v37, 16  ;;  %v3417_v58 = vld [vmem:[%s3337_s9 + $0xc] sm:$0xf]  ;;  %v3058_v2 = vld [vmem:[%s4037_s1 + $0x40] sm:$0xff]  ;;  %v3105_v12 = vld [vmem:[%s4037_s1 + $0x1b8] sm:$0xff] }
  0x1a   : > { %637 = vmatpush.bf16.msra.mxu2 %v3054_v14  ;;  %v396_v61 = vrot.slane %v352_v52, 1  ;;  %v399_v63 = vrot.slane %v362_v54, 1  ;;  %v3437_v5 = vunpack.c.l.b16 %v3417_v58  ;;  %v3113_v13 = vld [vmem:[%s4037_s1 + $0x1f8] sm:$0xff]  ;;  %v3088_v15 = vld [vmem:[%s4037_s1 + $0x130] sm:$0xff]  ;;  %v900_v17 = vld [vmem:[%s3337_s9 + $0x4] sm:$0xc] }
  0x1b   : > { %655 = vmatpush.bf16.msra.mxu3 %v3062_v16  ;;  %v303_v56 = vrot.slane %v301_v47, 1  ;;  %v3096_v16 = vld [vmem:[%s4037_s1 + $0x170] sm:$0xff]  ;;  %v3470_v18 = vld [vmem:[%s3337_s9 + $0x8] sm:$0xff]   ;;  %v683_v32 = vrot.slane %v681_v20, 5  ;;  %v3086_v40 = vld [vmem:[%s4037_s1 + $0x120] sm:$0xff] }
  0x1c   : > { %506 = vmatpush.bf16.msra.mxu0 %v3069_v29  ;;  %v398_v8 = vsel %vm395_vm1, %v396_v61, %v397_v62  ;;  %v401_v9 = vsel %vm395_vm1, %v399_v63, %v3426_v0  ;;  %v675_v14 = vpack.c.b16 %v3437_v5, %v3437_v5  ;;  %v3104_v22 = vld [vmem:[%s4037_s1 + $0x1b0] sm:$0xff]  ;;  %v3087_v26 = vld [vmem:[%s4037_s1 + $0x128] sm:$0xff]  ;;  %v3196_v28 = vunpack.c.l.b16 %v3470_v18  ;;  %v3102_v45 = vld [vmem:[%s4037_s1 + $0x1a0] sm:$0xff] }
  0x1d   : > { %524 = vmatpush.bf16.msra.mxu1 %v3077_v30  ;;  %v3411_v53 = vld [vmem:[#allocation1 + $0x3] ss:$4 sm:$0xff]  ;;  %v304_v3 = vor.u32 %v303_v56, %v299_v55  ;;  %v904_v29 = vld [vmem:[%s3337_s9 + $0x10] sm:$0x7]  ;;  %v909_v30 = vunpack.c.l.b16 %v900_v17  ;;  %v673_v54 = vpack.c.b16 %v3437_v5, %v3356_v21  ;;  %v291_v55 = vpack.c.b16 %v3356_v21, %v3356_v21  ;;  %vm1266_vm13 = vmor %vm1264_vm11, %vm1265_vm12 }
  0x1e   : > { %638 = vmatpush.bf16.msra.mxu2 %v3053_v31  ;;  %1251 = vst.sshfl [vmem:[#allocation1] sm:$0xff pattern:$0x73625140] %v1233_v41  ;;  %v3112_v23 = vld [vmem:[%s4037_s1 + $0x1f0] sm:$0xff]  ;;  %v686_v24 = vshrl.u32 %v675_v14, 16  ;;  %v689_v25 = vshll.u32 %v675_v14, 16  ;;  %vm3994_vm15 = vmor %vm1266_vm13, %vm1267_vm14 }
  0x1f   : > { %656 = vmatpush.bf16.msra.mxu3 %v3061_v33  ;;  %v309_v11 = vsel %vm297_vm2, %v304_v3, %v3434_v4  ;;  %v3095_v27 = vld [vmem:[%s4037_s1 + $0x168] sm:$0xff]  ;;  %v680_v31 = vrot.slane %v678_v19, 4  ;;  %v3094_v41 = vld [vmem:[%s4037_s1 + $0x160] sm:$0xff]  ;;  %v3101_v57 = vld [vmem:[%s4037_s1 + $0x198] sm:$0xff]  ;;  %v731_v5 = vshll.u32 %v3375_v35, 16 }
  0x20   : > { %507 = vmatpush.bf16.msra.mxu0 %v3068_v38  ;;  %v3103_v33 = vld [vmem:[%s4037_s1 + $0x1a8] sm:$0xff]  ;;  %v688_v36 = vrot.slane %v686_v24, 4  ;;  %v3197_v38 = vunpack.c.h.b16 %v3470_v18  ;;  %v3110_v46 = vld [vmem:[%s4037_s1 + $0x1e0] sm:$0xff]  ;;  %v3084_v21 = vld [vmem:[%s4037_s1 + $0x110] sm:$0xff] }
  0x21   : > { %525 = vmatpush.bf16.msra.mxu1 %v3076_v39  ;;  %v3111_v34 = vld [vmem:[%s4037_s1 + $0x1e8] sm:$0xff]  ;;  %v916_v39 = vunpack.c.l.b16 %v904_v29  ;;  %v684_v47 = vor.u32 %v683_v32, %v680_v31  ;;  %v3092_v63 = vld [vmem:[%s4037_s1 + $0x150] sm:$0xff]  ;;  %v733_v17 = vrot.slane %v731_v5, 4  ;;  %v3082_v31 = vld [vmem:[%s4037_s1 + $0x100] sm:$0xff] }
  0x22   : > { %639 = vmatpush.bf16.msra.mxu2 %v3052_v42  ;;  %v3502_v42 = vpack.c.b16 %v3196_v28, %v909_v30  ;;  %v3091_v14 = vld [vmem:[%s4037_s1 + $0x148] sm:$0xff]  ;;  %v3090_v32 = vld [vmem:[%s4037_s1 + $0x140] sm:$0xff] }
  0x23   : > { %657 = vmatpush.bf16.msra.mxu3 %v3060_v43  ;;  %v310_v43 = vshrl.u32 %v3394_v44, 16  ;;  %v3100_v44 = vld [vmem:[%s4037_s1 + $0x190] sm:$0xff] }
  0x24   : > { %508 = vmatpush.bf16.msra.mxu0 %v3067_v48  ;;  %v921_v52 = vshll.u32 %v3502_v42, 16 }
  0x25   : > { %526 = vmatpush.bf16.msra.mxu1 %v3075_v49  ;;  %v3513_v49 = vpack.c.b16 %v916_v39, %v3197_v38  ;;  %v312_v56 = vor.u32 %v310_v43, %v3434_v4  ;;  %v728_v4 = vshrl.u32 %v3375_v35, 16  ;;  %v965_v43 = vrot.slane %v3502_v42, 2 }
  0x26   : > { %640 = vmatpush.bf16.msra.mxu2 %v3051_v50  ;;  %v3085_v50 = vld [vmem:[%s4037_s1 + $0x118] sm:$0xff]  ;;  %v923_v3 = vrot.slane %v921_v52, 1 }
  0x27   : > { %658 = vmatpush.bf16.msra.mxu3 %v3059_v51  ;;  %v3093_v51 = vld [vmem:[%s4037_s1 + $0x158] sm:$0xff]  ;;  %v926_v61 = vshll.u32 %v3513_v49, 16 }
  0x28   : > { %509 = vmatpush.bf16.msra.mxu0 %v3066_v59  ;;  %v3109_v59 = vld [vmem:[%s4037_s1 + $0x1d8] sm:$0xff] }
  0x29   : > { %527 = vmatpush.bf16.msra.mxu1 %v3074_v60  ;;  %v928_v35 = vrot.slane %v926_v61, 1  ;;  %v3115_v61 = vld [vmem:[%s4037_s1 + $0x208] sm:$0xff] }
  0x2a   : > { %641 = vmatpush.bf16.msra.mxu2 %v3050_v1  ;;  %v903_v1 = vld [vmem:[%s3337_s9 + $0x10] sm:$0x3] }
  0x2b   : > { %659 = vmatpush.bf16.msra.mxu3 %v3058_v2  ;;  %510 = vmatmul.bf16.vlgmr.msra.gmra.mxu0 %v398_v8  ;;  %v919_v2 = vshrl.u32 %v3502_v42, 16  ;;  %v745_v8 = vshrl.u32 %v684_v47, 16  ;;  %v3120_v42 = vld [vmem:[%s4037_s1 + $0x230] sm:$0xff] }
  0x2c   : > { %861 = vmatpush.bf16.msrb.mxu0 %v3089_v6  ;;  %528 = vmatmul.bf16.vlgmr.msra.gmra.mxu1 %v401_v9  ;;  %v736_v6 = vshrl.u32 %v673_v54, 16  ;;  %v748_v9 = vshll.u32 %v684_v47, 16 }
  0x2d   : > { %879 = vmatpush.bf16.msrb.mxu1 %v3097_v7  ;;  %642 = vmatmul.bf16.vlgmr.msra.gmra.mxu2 %v3379_v37  ;;  %v691_v37 = vrot.slane %v689_v25, 5  ;;  %v739_v7 = vshll.u32 %v673_v54, 16  ;;  %v3119_v54 = vld [vmem:[%s4037_s1 + $0x228] sm:$0xff] }
  0x2e   : > { %660 = vmatmul.bf16.vlgmr.msra.gmra.mxu3 %v309_v11  ;;  %1071 = vmatpush.bf16.msrb.mxu2 %v3105_v12  ;;  %v930_v12 = vshrl.u32 %v3513_v49, 16  ;;  %v738_v19 = vrot.slane %v736_v6, 3 }
  0x2f   : > { %1089 = vmatpush.bf16.msrb.mxu3 %v3113_v13  ;;  %v692_v48 = vor.u32 %v691_v37, %v688_v36  ;;  %v3083_v13 = vld [vmem:[%s4037_s1 + $0x108] sm:$0xff]  ;;  %v741_v20 = vrot.slane %v739_v7, 4 }
  0x30   : > { %862 = vmatpush.bf16.msrb.mxu0 %v3088_v15  ;;  %v924_v15 = vor.u32 %v923_v3, %v919_v2  ;;  %v932_v30 = vor.u32 %v930_v12, %v928_v35  ;;  %v1132_v2 = vrot.slane %v3513_v49, 3 }
  0x31   : > { %880 = vmatpush.bf16.msrb.mxu1 %v3096_v16  ;;  %v693_v60 = vsel %vm676_vm3, %v684_v47, %v692_v48  ;;  %v730_v16 = vrot.slane %v728_v4, 3  ;;  %v742_v37 = vor.u32 %v741_v20, %v738_v19  ;;  %v3623_v19 = vld [vmem:[#allocation1 + $0x22] ss:$4 sm:$0xff]  ;;  %v3625_v20 = vld [vmem:[#allocation1 + $0x23] ss:$4 sm:$0xff] }
  0x32   : > { %1072 = vmatpush.bf16.msrb.mxu2 %v3104_v22  ;;  %v753_v10 = vshrl.u32 %v693_v60, 16  ;;  %v756_v11 = vshll.u32 %v693_v60, 16  ;;  %v747_v22 = vrot.slane %v745_v8, 3  ;;  %v969_v47 = vrot.slane %v932_v30, 2 }
  0x33   : > { %1090 = vmatpush.bf16.msrb.mxu3 %v3112_v23  ;;  %v750_v23 = vrot.slane %v748_v9, 4  ;;  %v734_v36 = vor.u32 %v733_v17, %v730_v16  ;;  %v3619_v16 = vld [vmem:[#allocation1 + $0x21] ss:$4 sm:$0xff]  ;;  %v3621_v17 = vld [vmem:[#allocation1 + $0x20] ss:$4 sm:$0xff] }
  0x34   : > { %863 = vmatpush.bf16.msrb.mxu0 %v3087_v26  ;;  %v755_v24 = vrot.slane %v753_v10, 3  ;;  %v758_v25 = vrot.slane %v756_v11, 4  ;;  %v3099_v26 = vld [vmem:[%s4037_s1 + $0x188] sm:$0xff] }
  0x35   : > { %881 = vmatpush.bf16.msrb.mxu1 %v3095_v27  ;;  %v3107_v27 = vld [vmem:[%s4037_s1 + $0x1c8] sm:$0xff]  ;;  %v743_v48 = vsel %vm726_vm4, %v734_v36, %v742_v37 }
  0x36   : > { %1073 = vmatpush.bf16.msrb.mxu2 %v3103_v33  ;;  %v929_v33 = vsel %vm297_vm2, %v924_v15, %v928_v35  ;;  %v759_v39 = vor.u32 %v758_v25, %v755_v24  ;;  %v1234_v15 = vunpack.c.l.bf16 %v3417_v58 }
  0x37   : > { %1091 = vmatpush.bf16.msrb.mxu3 %v3111_v34  ;;  %v3121_v34 = vld [vmem:[%s4037_s1 + $0x238] sm:$0xff] }
  0x38   : > { %864 = vmatpush.bf16.msrb.mxu0 %v3086_v40  ;;  %v3098_v40 = vld [vmem:[%s4037_s1 + $0x180] sm:$0xff]  ;;  %1252 = vst.sshfl [vmem:[#allocation1 + $0x20] sm:$0xff pattern:$0x73625140] %v1234_v15  ;;  %v3125_v15 = vld [vmem:[%s4040_s4 + $0x18] sm:$0xff] }
  0x39   : > { %882 = vmatpush.bf16.msrb.mxu1 %v3094_v41  ;;  %v3106_v41 = vld [vmem:[%s4037_s1 + $0x1c0] sm:$0xff] }
  0x3a   : > { %1074 = vmatpush.bf16.msrb.mxu2 %v3102_v45 }
  0x3b   : > { %1092 = vmatpush.bf16.msrb.mxu3 %v3110_v46  ;;  %515 = vmatmul.bf16.gmra.mxu0 %v397_v62  ;;  %v3108_v62 = vld [vmem:[%s4037_s1 + $0x1d0] sm:$0xff]  ;;  %v968_v46 = vrot.slane %v929_v33, 2 }
  0x3c   : > { %865 = vmatpush.bf16.msrb.mxu0 %v3085_v50  ;;  %533 = vmatmul.bf16.gmra.mxu1 %v3426_v0  ;;  %v912_v0 = vunpack.c.l.b16 %v903_v1 }
  0x3d   : > { %883 = vmatpush.bf16.msrb.mxu1 %v3093_v51  ;;  %647 = vmatmul.bf16.gmra.mxu2 %v291_v55  ;;  %v970_v52 = vsel %vm359_vm0, %v968_v46, %v969_v47  ;;  %v3118_v55 = vld [vmem:[%s4037_s1 + $0x220] sm:$0xff] }
  0x3e   : > { %665 = vmatmul.bf16.gmra.mxu3 %v312_v56  ;;  %1075 = vmatpush.bf16.msrb.mxu2 %v3101_v57  ;;  %v914_v29 = vpack.c.b16 %v912_v0, %v3197_v38  ;;  %v751_v38 = vor.u32 %v750_v23, %v747_v22  ;;  %v3117_v56 = vld [vmem:[%s4037_s1 + $0x218] sm:$0xff]  ;;  %v3116_v57 = vld [vmem:[%s4037_s1 + $0x210] sm:$0xff]  ;;  %v3630_v46 = vld [vmem:[%s4038_s2] ss:$0 sm:$0xff] }
  0x3f   : > { %1093 = vmatpush.bf16.msrb.mxu3 %v3109_v59  ;;  %v1110_v59 = vld [vmem:[%s3337_s9 + $0x4] sm:$0x8] }
  0x40   : > { %866 = vmatpush.bf16.msrb.mxu0 %v3084_v21  ;;  %v966_v45 = vrot.slane %v914_v29, 2  ;;  %v760_v50 = vsel %vm726_vm4, %v751_v38, %v759_v39  ;;  %v1128_v60 = vunpack.c.l.b16 %v1110_v59  ;;  %v3128_v59 = vld [vmem:[%s4040_s4 + $0x30] sm:$0xff] }
  0x41   : > { %884 = vmatpush.bf16.msrb.mxu1 %v3092_v63  ;;  %v3114_v63 = vld [vmem:[%s4037_s1 + $0x200] sm:$0xff] }
  0x42   : > { %1076 = vmatpush.bf16.msrb.mxu2 %v3100_v44  ;;  %v967_v51 = vsel %vm359_vm0, %v965_v43, %v966_v45  ;;  %v1129_v21 = vpack.c.b16 %v3196_v28, %v1128_v60 }
  0x43   : > { %1094 = vmatpush.bf16.msrb.mxu3 %v3108_v62 }
  0x44   : > { %867 = vmatpush.bf16.msrb.mxu0 %v3083_v13  ;;  %v1131_v1 = vrot.slane %v1129_v21, 3 }
  0x45   : > { %885 = vmatpush.bf16.msrb.mxu1 %v3091_v14 }
  0x46   : > { %1077 = vmatpush.bf16.msrb.mxu2 %v3099_v26  ;;  %v1133_v3 = vsel %vm1130_vm5, %v1131_v1, %v1132_v2 }
  0x47   : > { %1095 = vmatpush.bf16.msrb.mxu3 %v3107_v27 }
  0x48   : > { %868 = vmatpush.bf16.msrb.mxu0 %v3082_v31 }
  0x49   : > { %886 = vmatpush.bf16.msrb.mxu1 %v3090_v32 }
  0x4a   : > { %1078 = vmatpush.bf16.msrb.mxu2 %v3098_v40 }
  0x4b   : > { %1096 = vmatpush.bf16.msrb.mxu3 %v3106_v41  ;;  %869 = vmatmul.bf16.vlgmr.msrb.gmra.mxu0 %v743_v48 }
  0x4c   : > { %1184 = vmatpush.bf16.msra.mxu0 %v3121_v34  ;;  %887 = vmatmul.bf16.vlgmr.msrb.gmra.mxu1 %v760_v50  ;;  %v3129_v50 = vld [vmem:[%s4040_s4 + $0x38] sm:$0xff] }
  0x4d   : > { %1079 = vmatmul.bf16.vlgmr.msrb.gmra.mxu2 %v967_v51 }
  0x4e   : > { %1097 = vmatmul.bf16.vlgmr.msrb.gmra.mxu3 %v970_v52 }
  0x4f   : > { %1756 = vmatpush.bf16.msra.mxu3 %v3129_v50 }
  0x50   : > { %1185 = vmatpush.bf16.msra.mxu0 %v3120_v42 }
  0x53   : > { %1757 = vmatpush.bf16.msra.mxu3 %v3128_v59  ;;  %v3141_v59 = vld [vmem:[%s4040_s4 + $0x98] sm:$0xff] }
  0x54   : > { %1186 = vmatpush.bf16.msra.mxu0 %v3119_v54  ;;  %v3638_v54 = vld [vmem:[%s4039_s3] ss:$0 sm:$0xff] }
  0x58   : > { %1187 = vmatpush.bf16.msra.mxu0 %v3118_v55 }
  0x5b   : > { %874 = vmatmul.bf16.gmra.mxu0 %v742_v37 }
  0x5c   : > { %1188 = vmatpush.bf16.msra.mxu0 %v3117_v56  ;;  %892 = vmatmul.bf16.gmra.mxu1 %v759_v39 }
  0x5d   : > { %1084 = vmatmul.bf16.gmra.mxu2 %v966_v45 }
  0x5e   : > { %1102 = vmatmul.bf16.gmra.mxu3 %v969_v47 }
  0x60   : > { %1189 = vmatpush.bf16.msra.mxu0 %v3116_v57 }
  0x64   : > { %1190 = vmatpush.bf16.msra.mxu0 %v3115_v61 }
  0x68   : > { %1191 = vmatpush.bf16.msra.mxu0 %v3114_v63  ;;  %v3645_v63 = vld [vmem:[#allocation1] ss:$4 sm:$0xff] }
  0x6b   : > { %1192 = vmatmul.bf16.vlgmr.msra.gmra.mxu0 %v1133_v3 }
  0x7b   : > { %1197 = vmatmul.bf16.gmra.mxu0 %v1132_v2 }
  0xa8   : > { %v511_v4 = vpop.f32.mrf.mxu0 }
  0xa9   : > { %v529_v5 = vpop.f32.mrf.mxu1 }
  0xaa   : > { %v530_v31 = vadd.f32 %v529_v5, %v511_v4  ;;  %v3127_v4 = vld [vmem:[%s4040_s4 + $0x28] sm:$0xff] }
  0xab   : > { %v3650_v5 = vld [vmem:[#allocation1 + $0x1] ss:$4 sm:$0xff]  ;;  %1758 = vmatpush.bf16.msra.mxu3 %v3127_v4 }
  0xb0   : > { %v643_v6 = vpop.f32.mrf.mxu2  ;;  %v513_v18 = vpop.f32.mrf.mxu0 }
  0xb1   : > { %v661_v7 = vpop.f32.mrf.mxu3  ;;  %v531_v28 = vpop.f32.mrf.mxu1  ;;  %v644_v32 = vadd.f32 %v643_v6, %v530_v31  ;;  %v3124_v31 = vld [vmem:[%s4040_s4 + $0x10] sm:$0xff] }
  0xb2   : > { %v532_v40 = vadd.f32 %v531_v28, %v513_v18 }
  0xb3   : > { %v662_v38 = vadd.f32 %v661_v7, %v644_v32  ;;  %v3136_v32 = vld [vmem:[%s4040_s4 + $0x70] sm:$0xff] }
  0xb8   : > { %v645_v8 = vpop.f32.mrf.mxu2  ;;  %v516_v10 = vpop.f32.mrf.mxu0 }
  0xb9   : > { %v663_v9 = vpop.f32.mrf.mxu3  ;;  %v534_v11 = vpop.f32.mrf.mxu1  ;;  %v646_v43 = vadd.f32 %v645_v8, %v532_v40  ;;  %v3652_v8 = vld [vmem:[#allocation1 + $0x20] ss:$4 sm:$0xff] }
  0xba   : > { %v535_v60 = vadd.f32 %v534_v11, %v516_v10  ;;  %v3123_v40 = vld [vmem:[%s4040_s4 + $0x8] sm:$0xff] }
  0xbb   : > { %v664_v55 = vadd.f32 %v663_v9, %v646_v43  ;;  %v3151_v43 = vld [vmem:[%s4040_s4 + $0xe8] sm:$0xff] }
  0xc0   : > { %v648_v44 = vpop.f32.mrf.mxu2  ;;  %v518_v49 = vpop.f32.mrf.mxu0 }
  0xc1   : > { %v3616_v62 = vpop.f32.mrf.mxu3  ;;  %v536_v0 = vpop.f32.mrf.mxu1  ;;  %v649_v1 = vadd.f32 %v648_v44, %v535_v60  ;;  %v3126_v49 = vld [vmem:[%s4040_s4 + $0x20] sm:$0xff] }
  0xc2   : > { %1759 = vmatpush.bf16.msra.mxu3 %v3126_v49  ;;  %v3150_v60 = vld [vmem:[%s4040_s4 + $0xe0] sm:$0xff]  ;;  %v3148_v49 = vld [vmem:[%s4040_s4 + $0xd0] sm:$0xff] }
  0xc3   : > { %v667_v10 = vadd.f32 %v3616_v62, %v649_v1 }
  0xc6   : > { %1760 = vmatpush.bf16.msra.mxu3 %v3125_v15 }
  0xc8   : > { %v650_v35 = vpop.f32.mrf.mxu2  ;;  %v870_v13 = vpop.f32.mrf.mxu0 }
  0xc9   : > { %v668_v12 = vpop.f32.mrf.mxu3  ;;  %v888_v14 = vpop.f32.mrf.mxu1 }
  0xca   : > { %v889_v37 = vadd.f32 %v888_v14, %v870_v13  ;;  %v3145_v12 = vld [vmem:[%s4040_s4 + $0xb8] sm:$0xff]  ;;  %1761 = vmatpush.bf16.msra.mxu3 %v3124_v31  ;;  %v3138_v31 = vld [vmem:[%s4040_s4 + $0x80] sm:$0xff] }
  0xcb   : > { %v3663_v13 = vld [vmem:[#allocation1 + $0x21] ss:$4 sm:$0xff]  ;;  %1624 = vmatpush.bf16.msra.mxu1 %v3145_v12 }
  0xcc   : > { %v897_v41 = vadd.f32 %v889_v37, %v662_v38  ;;  %v3143_v37 = vld [vmem:[%s4040_s4 + $0xa8] sm:$0xff] }
  0xcd   : > { %v3139_v12 = vld [vmem:[%s4040_s4 + $0x88] sm:$0xff] }
  0xce   : > { %1762 = vmatpush.bf16.msra.mxu3 %v3123_v40  ;;  %v3173_v40 = vld [vmem:[%s4040_s4 + $0x198] sm:$0xff] }
  0xd0   : > { %v1080_v22 = vpop.f32.mrf.mxu2  ;;  %v872_v24 = vpop.f32.mrf.mxu0 }
  0xd1   : > { %v1098_v23 = vpop.f32.mrf.mxu3  ;;  %v890_v25 = vpop.f32.mrf.mxu1 }
  0xd2   : > { %v1099_v39 = vadd.f32 %v1098_v23, %v1080_v22  ;;  %v891_v52 = vadd.f32 %v890_v25, %v872_v24  ;;  %v3137_v22 = vld [vmem:[%s4040_s4 + $0x78] sm:$0xff]  ;;  %v3144_v23 = vld [vmem:[%s4040_s4 + $0xb0] sm:$0xff] }
  0xd3   : > { %v3153_v25 = vld [vmem:[%s4040_s4 + $0xf8] sm:$0xff]  ;;  %1774 = vmatpush.bf16.msrb.mxu0 %v3137_v22  ;;  %1625 = vmatpush.bf16.msra.mxu1 %v3144_v23 }
  0xd4   : > { %v1107_v45 = vadd.f32 %v1099_v39, %v897_v41  ;;  %v898_v61 = vadd.f32 %v891_v52, %v664_v55  ;;  %1642 = vmatpush.bf16.msra.mxu2 %v3153_v25  ;;  %v3135_v41 = vld [vmem:[%s4040_s4 + $0x68] sm:$0xff] }
  0xd5   : > { %v3711_v55 = vld [vmem:[#allocation1 + $0x3] ss:$4 sm:$0xff] }
  0xd7   : > { %1775 = vmatpush.bf16.msrb.mxu0 %v3136_v32  ;;  %1626 = vmatpush.bf16.msra.mxu1 %v3143_v37 }
  0xd8   : > { %v1082_v26 = vpop.f32.mrf.mxu2  ;;  %v875_v29 = vpop.f32.mrf.mxu0 }
  0xd9   : > { %v1100_v27 = vpop.f32.mrf.mxu3  ;;  %v893_v30 = vpop.f32.mrf.mxu1 }
  0xda   : > { %v1101_v56 = vadd.f32 %v1100_v27, %v1082_v26  ;;  %v894_v7 = vadd.f32 %v893_v30, %v875_v29  ;;  %v3246_v26 = vmov 0  }
  0xdb   : > { %1305 = vst [vmem:[#allocation2] sm:$0xf] %v3246_v26  ;;  %1776 = vmatpush.bf16.msrb.mxu0 %v3135_v41  ;;  %v3783_v41 = vld [vmem:[%s4040_s4 + $0x1f8] sm:$0xff] }
  0xdc   : > { %v1108_v3 = vadd.f32 %v1101_v56, %v898_v61  ;;  %v899_v0 = vadd.f32 %v894_v7, %v667_v10  ;;  %1306 = vst [vmem:[#allocation2 + $0x4] sm:$0xf] %v3246_v26  ;;  %v3713_v56 = vld [vmem:[#allocation1 + $0x2] ss:$4 sm:$0xff] }
  0xdd   : > { %1307 = vst [vmem:[#allocation2 + $0x8] sm:$0xf] %v3246_v26  ;;  %v3133_v7 = vld [vmem:[%s4040_s4 + $0x58] sm:$0xff] }
  0xde   : > { %1308 = vst [vmem:[#allocation2 + $0xc] sm:$0xf] %v3246_v26 }
  0xdf   : > { %1309 = vst [vmem:[#allocation2 + $0x10] sm:$0xf] %v3246_v26  ;;  %v3175_v26 = vld [vmem:[%s4040_s4 + $0x1a8] sm:$0xff] }
  0xe0   : > { %v1085_v58 = vpop.f32.mrf.mxu2  ;;  %v877_v34 = vpop.f32.mrf.mxu0 }
  0xe1   : > { %v1103_v33 = vpop.f32.mrf.mxu3  ;;  %v895_v36 = vpop.f32.mrf.mxu1 }
  0xe2   : > { %v1104_v11 = vadd.f32 %v1103_v33, %v1085_v58  ;;  %v3152_v33 = vld [vmem:[%s4040_s4 + $0xf0] sm:$0xff] }
  0xe3   : > { %1643 = vmatpush.bf16.msra.mxu2 %v3152_v33  ;;  %v3174_v33 = vld [vmem:[%s4040_s4 + $0x1a0] sm:$0xff] }
  0xe4   : > { %v1109_v14 = vadd.f32 %v1104_v11, %v899_v0  ;;  %v3132_v11 = vld [vmem:[%s4040_s4 + $0x50] sm:$0xff] }
  0xe5   : > { %v3746_v0 = vld [vmem:[#allocation1 + $0x22] ss:$4 sm:$0xff] }
  0xe7   : > { %1644 = vmatpush.bf16.msra.mxu2 %v3151_v43  ;;  %v3160_v43 = vld [vmem:[%s4040_s4 + $0x130] sm:$0xff] }
  0xe8   : > { %v1087_v47 = vpop.f32.mrf.mxu2  ;;  %v1193_v51 = vpop.f32.mrf.mxu0 }
  0xe9   : > { %v1105_v48 = vpop.f32.mrf.mxu3  ;;  %v1202_v42 = vadd.f32 %v1193_v51, %v1107_v45  ;;  %v3142_v47 = vld [vmem:[%s4040_s4 + $0xa0] sm:$0xff] }
  0xea   : > { %1627 = vmatpush.bf16.msra.mxu1 %v3142_v47 }
  0xeb   : > { %v1209_v57 = vmul.f32 %v3630_v46, %v1202_v42  ;;  %v3122_v42 = vld [vmem:[%s4040_s4] sm:$0xff]  ;;  %1645 = vmatpush.bf16.msra.mxu2 %v3150_v60 }
  0xec   : > { %1763 = vmatpush.bf16.msra.mxu3 %v3122_v42 }
  0xed   : > { %v1216_v21 = vadd.f32 %v3638_v54, %v1209_v57 }
  0xee   : > { %1628 = vmatpush.bf16.msra.mxu1 %v3141_v59  ;;  %v3814_v59 = vld [vmem:[%s4040_s4 + $0x1e8] sm:$0xff] }
  0xef   : > { %v1219_v2 = vmax.f32 %v1216_v21, 0.0 }
  0xf0   : > { %v1195_v6 = vpop.f32.mrf.mxu0 }
  0xf1   : > { %v1225_v18 = vrot.slane %v1219_v2, 2  ;;  %v1226_v28 = vrot.slane %v1219_v2, 6  ;;  %1311 = vst [vmem:[#allocation1] ss:$4 sm:$0xff] %v1219_v2  ;;  %v1203_v9 = vadd.f32 %v1195_v6, %v1108_v3 }
  0xf3   : > { %1313 = vst [vmem:[#allocation1 + $0x1] ss:$4 sm:$0xff] %v1225_v18  ;;  %v1210_v44 = vmul.f32 %v3630_v46, %v1203_v9  ;;  %v3177_v18 = vld [vmem:[%s4040_s4 + $0x1b8] sm:$0xff]  ;;  %v3140_v9 = vld [vmem:[%s4040_s4 + $0x90] sm:$0xff] }
  0xf4   : > { %1316 = vst [vmem:[#allocation1 + $0x20] ss:$4 sm:$0xff] %v1226_v28  ;;  %v3149_v28 = vld [vmem:[%s4040_s4 + $0xd8] sm:$0xff]  ;;  %2191 = vmatpush.bf16.msrb.mxu3 %v3177_v18  ;;  %1629 = vmatpush.bf16.msra.mxu1 %v3140_v9  ;;  %v3170_v18 = vld [vmem:[%s4040_s4 + $0x180] sm:$0xff] }
  0xf5   : > { %v1217_v35 = vadd.f32 %v3638_v54, %v1210_v44  ;;  %1646 = vmatpush.bf16.msra.mxu2 %v3149_v28  ;;  %v3176_v44 = vld [vmem:[%s4040_s4 + $0x1b0] sm:$0xff] }
  0xf7   : > { %v1220_v62 = vmax.f32 %v1217_v35, 0.0 }
  0xf8   : > { %v1198_v24 = vpop.f32.mrf.mxu0  ;;  %2192 = vmatpush.bf16.msrb.mxu3 %v3176_v44  ;;  %1630 = vmatpush.bf16.msra.mxu1 %v3139_v12 }
  0xf9   : > { %v1227_v27 = vrot.slane %v1220_v62, 4  ;;  %v1228_v29 = vrot.slane %v1220_v62, 6  ;;  %1318 = vst [vmem:[#allocation1 + $0x21] ss:$4 sm:$0xff] %v1220_v62  ;;  %v1204_v30 = vadd.f32 %v1198_v24, %v1109_v14  ;;  %1647 = vmatpush.bf16.msra.mxu2 %v3148_v49  ;;  %v3131_v24 = vld [vmem:[%s4040_s4 + $0x48] sm:$0xff] }
  0xfa   : > { %v1314_v58 = vld.sshfl [vmem:[#allocation1] sm:$0xff pattern:$0x73625140] }
  0xfb   : > { %1320 = vst [vmem:[#allocation1] ss:$4 sm:$0xff] %v1227_v27  ;;  %v1326_v34 = vrot.slane %v1314_v58, 7  ;;  %v1211_v36 = vmul.f32 %v3630_v46, %v1204_v30  ;;  %v3147_v27 = vld [vmem:[%s4040_s4 + $0xc8] sm:$0xff]  ;;  %v3130_v58 = vld [vmem:[%s4040_s4 + $0x40] sm:$0xff] }
  0xfc   : > { %1321 = vst [vmem:[#allocation1 + $0x1] ss:$4 sm:$0xff] %v1228_v29  ;;  %2193 = vmatpush.bf16.msrb.mxu3 %v3175_v26  ;;  %1631 = vmatpush.bf16.msra.mxu1 %v3138_v31  ;;  %v3870_v26 = vld [vmem:[%s4040_s4 + $0x230] sm:$0xff] }
  0xfd   : > { %v1334_v38 = vsel %vm1262_vm6, 0.0, %v1326_v34  ;;  %v1218_v39 = vadd.f32 %v3638_v54, %v1211_v36  ;;  %v3134_v54 = vld [vmem:[%s4040_s4 + $0x60] sm:$0xff]  ;;  %1648 = vmatpush.bf16.msra.mxu2 %v3147_v27  ;;  %v3164_v31 = vld [vmem:[%s4040_s4 + $0x150] sm:$0xff] }
  0xfe   : > { %v1339_v45 = vsel %vm1130_vm5, %v1334_v38, 0.0  ;;  %1777 = vmatpush.bf16.msrb.mxu0 %v3134_v54  ;;  %v3146_v38 = vld [vmem:[%s4040_s4 + $0xc0] sm:$0xff] }
  0xff   : > { %v1221_v46 = vmax.f32 %v1218_v39, 0.0  ;;  %v1347_v57 = vrot.slane %v1339_v45, 2  ;;  %v1348_v3 = vrot.slane %v1339_v45, 4  ;;  %v3161_v39 = vld [vmem:[%s4040_s4 + $0x138] sm:$0xff] }
 0x100   : > { %v1319_v48 = vld.sshfl [vmem:[#allocation1 + $0x20] sm:$0xff pattern:$0x73625140]  ;;  %v1200_v50 = vpop.f32.mrf.mxu0  ;;  %2194 = vmatpush.bf16.msrb.mxu3 %v3174_v33  ;;  %1981 = vmatpush.bf16.msrb.mxu1 %v3161_v39 }
 0x101   : > { %v1327_v51 = vrot.slane %v1319_v48, 7  ;;  %v1229_v52 = vrot.slane %v1221_v46, 2  ;;  %v1230_v4 = vrot.slane %v1221_v46, 4  ;;  %1649 = vmatpush.bf16.msra.mxu2 %v3146_v38  ;;  %v3795_v46 = vld [vmem:[%s4040_s4 + $0x1f0] sm:$0xff] }
 0x102   : > { %1778 = vmatpush.bf16.msrb.mxu0 %v3133_v7  ;;  %v3172_v48 = vld [vmem:[%s4040_s4 + $0x190] sm:$0xff]  ;;  %v3831_v7 = vld [vmem:[%s4040_s4 + $0x1e0] sm:$0xff] }
 0x103   : > { %v1322_v61 = vld.sshfl [vmem:[#allocation1] sm:$0xff pattern:$0x73625140]  ;;  %v1335_v21 = vsel %vm1262_vm6, 0.0, %v1327_v51  ;;  %1323 = vst [vmem:[#allocation1 + $0x20] ss:$4 sm:$0xff] %v1229_v52 }
 0x104   : > { %v1328_v1 = vrot.slane %v1322_v61, 7  ;;  %v1340_v2 = vsel %vm1130_vm5, %v1335_v21, 0.0  ;;  %1355 = vst [vmem:[#allocation1] ss:$4 sm:$0xff] %v1339_v45  ;;  %v3169_v45 = vld [vmem:[%s4040_s4 + $0x178] sm:$0xff]  ;;  %2195 = vmatpush.bf16.msrb.mxu3 %v3173_v40  ;;  %v3168_v50 = vld [vmem:[%s4040_s4 + $0x170] sm:$0xff]  ;;  %1982 = vmatpush.bf16.msrb.mxu1 %v3160_v43 }
 0x105   : > { %1357 = vst [vmem:[#allocation1 + $0x1] ss:$4 sm:$0xff] %v1347_v57  ;;  %v1349_v14 = vrot.slane %v1340_v2, 2  ;;  %v1350_v15 = vrot.slane %v1340_v2, 4  ;;  %1999 = vmatpush.bf16.msrb.mxu2 %v3169_v45  ;;  %v3159_v52 = vld [vmem:[%s4040_s4 + $0x128] sm:$0xff] }
 0x106   : > { %1359 = vst [vmem:[#allocation1 + $0x2] ss:$4 sm:$0xff] %v1348_v3  ;;  %v1336_v6 = vsel %vm1262_vm6, 0.0, %v1328_v1  ;;  %1779 = vmatpush.bf16.msrb.mxu0 %v3132_v11  ;;  %v3171_v61 = vld [vmem:[%s4040_s4 + $0x188] sm:$0xff]  ;;  %v3158_v3 = vld [vmem:[%s4040_s4 + $0x120] sm:$0xff] }
 0x107   : > { %1361 = vst [vmem:[#allocation1 + $0x3] ss:$4 sm:$0xff] %v1340_v2  ;;  %v1341_v10 = vsel %vm1130_vm5, %v1336_v6, 0.0  ;;  %v3167_v21 = vld [vmem:[%s4040_s4 + $0x168] sm:$0xff]  ;;  %v3166_v11 = vld [vmem:[%s4040_s4 + $0x160] sm:$0xff] }
 0x108   : > { %1324 = vst [vmem:[#allocation1 + $0x21] ss:$4 sm:$0xff] %v1230_v4  ;;  %v1352_v35 = vrot.slane %v1341_v10, 4  ;;  %v1351_v29 = vrot.slane %v1341_v10, 2  ;;  %2196 = vmatpush.bf16.msrb.mxu3 %v3172_v48  ;;  %1983 = vmatpush.bf16.msrb.mxu1 %v3159_v52  ;;  %v3889_v40 = vld [vmem:[%s4040_s4 + $0x1c8] sm:$0xff]  ;;  %v3154_v48 = vld [vmem:[%s4040_s4 + $0x100] sm:$0xff] }
 0x109   : > { %2000 = vmatpush.bf16.msrb.mxu2 %v3168_v50  ;;  %v3191_v43 = vld [vmem:[%s4040_s4 + $0x228] sm:$0xff] }
 0x10a   : > { %1780 = vmatpush.bf16.msrb.mxu0 %v3131_v24  ;;  %v3163_v50 = vld [vmem:[%s4040_s4 + $0x148] sm:$0xff] }
 0x10c   : > { %2197 = vmatpush.bf16.msrb.mxu3 %v3171_v61  ;;  %1984 = vmatpush.bf16.msrb.mxu1 %v3158_v3 }
 0x10d   : > { %2001 = vmatpush.bf16.msrb.mxu2 %v3167_v21 }
 0x10e   : > { %v1370_v62 = vld.sshfl [vmem:[#allocation1] sm:$0xff pattern:$0x73625140]  ;;  %1781 = vmatpush.bf16.msrb.mxu0 %v3130_v58 }
 0x10f   : > { %1372 = vst [vmem:[#allocation1] ss:$4 sm:$0xff] %v1352_v35  ;;  %v1325_v22 = vld.sshfl [vmem:[#allocation1 + $0x20] sm:$0xff pattern:$0x73625140]  ;;  %v1380_v23 = vpack.c.bf16 %v1370_v62, %v1370_v62  ;;  %v3850_v62 = vld [vmem:[%s4040_s4 + $0x1d8] sm:$0xff] }
 0x110   : > { %v1329_v25 = vrot.slane %v1325_v22, 7  ;;  %1363 = vst [vmem:[#allocation1 + $0x20] ss:$4 sm:$0xff] %v1349_v14  ;;  %2198 = vmatpush.bf16.msrb.mxu3 %v3170_v18  ;;  %v3193_v14 = vld [vmem:[%s4040_s4 + $0x238] sm:$0xff] }
 0x111   : > { %1365 = vst [vmem:[#allocation1 + $0x21] ss:$4 sm:$0xff] %v1350_v15  ;;  %v1389_v30 = vrot.slane %v1380_v23, 5  ;;  %2002 = vmatpush.bf16.msrb.mxu2 %v3166_v11  ;;  %v3156_v15 = vld [vmem:[%s4040_s4 + $0x110] sm:$0xff]  ;;  %v3165_v22 = vld [vmem:[%s4040_s4 + $0x158] sm:$0xff] }
 0x112   : > { %v1337_v32 = vsel %vm1262_vm6, 0.0, %v1329_v25  ;;  %1367 = vst [vmem:[#allocation1 + $0x22] ss:$4 sm:$0xff] %v1341_v10  ;;  %2209 = vmatpush.bf16.msra.mxu0 %v3783_v41  ;;  %v3157_v10 = vld [vmem:[%s4040_s4 + $0x118] sm:$0xff]  ;;  %v3865_v25 = vld [vmem:[%s4040_s4 + $0x1d0] sm:$0xff] }
 0x113   : > { %v1342_v34 = vsel %vm1130_vm5, %v1337_v32, 0.0  ;;  %1369 = vst [vmem:[#allocation1 + $0x23] ss:$4 sm:$0xff] %v1351_v29  ;;  %v1390_v54 = vrot.slane %v1389_v30, 4  ;;  %1985 = vmatpush.bf16.msrb.mxu1 %v3157_v10  ;;  %v3162_v10 = vld [vmem:[%s4040_s4 + $0x140] sm:$0xff] }
 0x114   : > { %v1353_v36 = vrot.slane %v1342_v34, 2  ;;  %v1354_v37 = vrot.slane %v1342_v34, 4  ;;  %1373 = vst [vmem:[#allocation1 + $0x1] ss:$4 sm:$0xff] %v1342_v34 }
 0x115   : > { %1401 = vst [vmem:[#allocation2] sm:$0x8] %v1389_v30  ;;  %2003 = vmatpush.bf16.msrb.mxu2 %v3165_v22  ;;  %v3155_v30 = vld [vmem:[%s4040_s4 + $0x108] sm:$0xff]  ;;  %v2023_v22 = vld [vmem:[#allocation2 + $0x10] sm:$0x3] }
 0x116   : > { %1374 = vst [vmem:[#allocation1 + $0x2] ss:$4 sm:$0xff] %v1353_v36  ;;  %2210 = vmatpush.bf16.msra.mxu0 %v3795_v46 }
 0x117   : > { %1375 = vst [vmem:[#allocation1 + $0x3] ss:$4 sm:$0xff] %v1354_v37  ;;  %1986 = vmatpush.bf16.msrb.mxu1 %v3156_v15 }
 0x119   : > { %2004 = vmatpush.bf16.msrb.mxu2 %v3164_v31  ;;  %v3188_v31 = vld [vmem:[%s4040_s4 + $0x210] sm:$0xff] }
 0x11a   : > { %v1371_v47 = vld.sshfl [vmem:[#allocation1 + $0x20] sm:$0xff pattern:$0x73625140]  ;;  %2211 = vmatpush.bf16.msra.mxu0 %v3814_v59 }
 0x11b   : > { %v1381_v51 = vpack.c.bf16 %v1371_v47, %v1371_v47  ;;  %1987 = vmatpush.bf16.msrb.mxu1 %v3155_v30  ;;  %v2032_v30 = vunpack.c.l.b16 %v2023_v22 }
 0x11c   : > { %v1472_v49 = vld [vmem:[#allocation2] sm:$0x8] }
 0x11d   : > { %v1391_v57 = vrot.slane %v1381_v51, 5  ;;  %v1471_v35 = vld [vmem:[#allocation2] sm:$0xe]  ;;  %v1479_v29 = vunpack.c.l.b16 %v1472_v49  ;;  %2005 = vmatpush.bf16.msrb.mxu2 %v3163_v50 }
 0x11e   : > { %v1376_v60 = vld.sshfl [vmem:[#allocation1] sm:$0xff pattern:$0x73625140]  ;;  %2212 = vmatpush.bf16.msra.mxu0 %v3831_v7  ;;  %v1475_v24 = vunpack.c.l.b16 %v1471_v35 }
 0x11f   : > { %v1382_v1 = vpack.c.bf16 %v1376_v60, %v1376_v60  ;;  %v1392_v2 = vsel %vm3806_vm9, %v1390_v54, %v1391_v57  ;;  %v1393_v4 = vrot.slane %v1391_v57, 4  ;;  %1988 = vmatpush.bf16.msrb.mxu1 %v3154_v48 }
 0x120   : > { %1402 = vst [vmem:[#allocation2 + $0x4] sm:$0xf] %v1392_v2 }
 0x121   : > { %v1394_v6 = vrot.slane %v1382_v1, 5  ;;  %v3190_v1 = vld [vmem:[%s4040_s4 + $0x220] sm:$0xff]  ;;  %2006 = vmatpush.bf16.msrb.mxu2 %v3162_v10 }
 0x122   : > { %2213 = vmatpush.bf16.msra.mxu0 %v3850_v62 }
 0x123   : > { %v1395_v28 = vsel %vm3806_vm9, %v1393_v4, %v1394_v6  ;;  %v1396_v9 = vrot.slane %v1394_v6, 4 }
 0x124   : > { %1403 = vst [vmem:[#allocation2 + $0x8] sm:$0xf] %v1395_v28  ;;  %v3920_v28 = vld [vmem:[%s4040_s4 + $0x1c0] sm:$0xff] }
 0x125   : > { %1404 = vst [vmem:[#allocation2 + $0xc] sm:$0x7] %v1396_v9 }
 0x126   : > { %2214 = vmatpush.bf16.msra.mxu0 %v3865_v25 }
 0x127   : > { %v3199_v44 = vld [vmem:[#allocation2] sm:$0xff]  }
 0x128   : > { %v3845_v12 = vunpack.c.h.b16 %v3199_v44  ;;  %1764 = vmatmul.bf16.vlgmr.msra.gmra.mxu3 %v3199_v44  ;;  %v1425_v23 = vshll.u32 %v3199_v44, 16  ;;  %v1423_v52 = vshrl.u32 %v3199_v44, 16 }
 0x129   : > { %3216 = vmatpush.bf16.msra.mxu3 %v3193_v14 }
 0x12a   : > { %v1476_v33 = vpack.c.b16 %v3845_v12, %v1475_v24  ;;  %v3882_v36 = vpack.c.b16 %v3845_v12, %v1479_v29  ;;  %v1427_v39 = vrot.slane %v1425_v23, 1  ;;  %2215 = vmatpush.bf16.msra.mxu0 %v3889_v40  ;;  %v2020_v24 = vld [vmem:[#allocation2 + $0x4] sm:$0xc]  ;;  %v2024_v29 = vld [vmem:[#allocation2 + $0x10] sm:$0x7] }
 0x12b   : > { %v1407_v27 = vld [vmem:[#allocation2 + $0x8] sm:$0xf] }
 0x12c   : > { %v3878_v32 = vunpack.c.l.b16 %v1407_v27  ;;  %v1408_v58 = vld [vmem:[#allocation2 + $0xc] sm:$0x1]  ;;  %v1518_v42 = vrot.slane %v1476_v33, 1  ;;  %v1483_v60 = vrot.slane %v3882_v36, 2  ;;  %v1428_v21 = vor.u32 %v1427_v39, %v1423_v52 }
 0x12d   : > { %v1473_v34 = vld [vmem:[#allocation2 + $0xc] sm:$0x7]  ;;  %v1420_v37 = vunpack.c.l.b16 %v1408_v58  ;;  %3217 = vmatpush.bf16.msra.mxu3 %v3870_v26  ;;  %v2036_v39 = vunpack.c.l.b16 %v2024_v29 }
 0x12e   : > { %v1480_v38 = vunpack.c.l.b16 %v1473_v34  ;;  %v1792_v51 = vld [vmem:[#allocation2 + $0xc] sm:$0xf]  ;;  %v1416_v44 = vpack.c.b16 %v3878_v32, %v3878_v32  ;;  %v1796_v35 = vpack.c.b16 %v3878_v32, %v3845_v12  ;;  %2216 = vmatpush.bf16.msra.mxu0 %v3920_v28 }
 0x12f   : > { %v3895_v45 = vpack.c.b16 %v1420_v37, %v3878_v32  ;;  %v1794_v2 = vunpack.c.l.b16 %v1792_v51  ;;  %v3932_v15 = vld [vmem:[#allocation2 + $0x8] sm:$0xff]  }
 0x130   : > { %v1482_v47 = vpack.c.b16 %v1480_v38, %v3878_v32  ;;  %v3204_v12 = vunpack.c.l.b16 %v3932_v15  ;;  %v3205_v27 = vunpack.c.h.b16 %v3932_v15  ;;  %v1799_v58 = vshrl.u32 %v1796_v35, 16 }
 0x131   : > { %v1519_v54 = vrot.slane %v3895_v45, 1  ;;  %v1430_v57 = vshll.u32 %v3895_v45, 16  ;;  %3218 = vmatpush.bf16.msra.mxu3 %v3191_v43  ;;  %v1797_v23 = vpack.c.b16 %v1794_v2, %v1794_v2  ;;  %v1802_v33 = vshll.u32 %v1796_v35, 16 }
 0x132   : > { %v1484_v61 = vrot.slane %v1482_v47, 2  ;;  %v2029_v38 = vunpack.c.l.b16 %v2020_v24  ;;  %v3187_v47 = vld [vmem:[%s4040_s4 + $0x208] sm:$0xff]  ;;  %v1801_v48 = vrot.slane %v1799_v58, 4 }
 0x133   : > { %v1520_v3 = vsel %vm395_vm1, %v1518_v42, %v1519_v54  ;;  %v1432_v4 = vrot.slane %v1430_v57, 1  ;;  %v1807_v34 = vshrl.u32 %v1797_v23, 16  ;;  %v1810_v37 = vshll.u32 %v1797_v23, 16 }
 0x134   : > { %v1485_v6 = vsel %vm359_vm0, %v1483_v60, %v1484_v61  ;;  %v3915_v18 = vrot.slane %v1484_v61, 1  ;;  %1632 = vmatmul.bf16.vlgmr.msra.gmra.mxu1 %v1520_v3  ;;  %v1804_v50 = vrot.slane %v1802_v33, 5  ;;  %v3953_v42 = vpack.c.b16 %v2036_v39, %v3205_v27  ;;  %v3186_v60 = vld [vmem:[%s4040_s4 + $0x200] sm:$0xff] }
 0x135   : > { %v1521_v9 = vrot.slane %v1485_v6, 1  ;;  %v1433_v11 = vsel %vm297_vm2, %v1428_v21, %v1432_v4  ;;  %2303 = vmatpush.bf16.msra.mxu1 %v3193_v14  ;;  %3219 = vmatpush.bf16.msra.mxu3 %v3190_v1  ;;  %v3189_v14 = vld [vmem:[%s4040_s4 + $0x218] sm:$0xff]  ;;  %v1809_v51 = vrot.slane %v1807_v34, 4  ;;  %v1812_v52 = vrot.slane %v1810_v37, 5 }
 0x136   : > { %1782 = vmatmul.bf16.vlgmr.msrb.gmra.mxu0 %v1433_v11  ;;  %v1795_v21 = vpack.c.b16 %v1794_v2, %v3878_v32  ;;  %v1805_v3 = vor.u32 %v1804_v50, %v1801_v48  ;;  %v2251_v50 = vrot.slane %v3953_v42, 3 }
 0x137   : > { %v1523_v49 = vsel %vm395_vm1, %v1521_v9, %v3915_v18  ;;  %v1813_v6 = vor.u32 %v1812_v52, %v1809_v51  ;;  %v2230_v51 = vld [vmem:[#allocation2 + $0x4] sm:$0x8] }
 0x138   : > { %1650 = vmatmul.bf16.vlgmr.msra.gmra.mxu2 %v1523_v49  ;;  %1769 = vmatmul.bf16.gmra.mxu3 %v1416_v44  ;;  %v1856_v11 = vshrl.u32 %v1795_v21, 16  ;;  %v1859_v32 = vshll.u32 %v1795_v21, 16  ;;  %v1868_v24 = vshll.u32 %v1805_v3, 16 }
 0x139   : > { %3208 = vmatpush.bf16.msra.mxu2 %v3783_v41  ;;  %2304 = vmatpush.bf16.msra.mxu1 %v3870_v26  ;;  %v2033_v41 = vpack.c.b16 %v3204_v12, %v2029_v38  ;;  %v3948_v26 = vpack.c.b16 %v2032_v30, %v3205_v27  ;;  %v1814_v2 = vsel %vm676_vm3, %v1805_v3, %v1813_v6 }
 0x13a   : > { %3220 = vmatpush.bf16.msra.mxu3 %v3189_v14  ;;  %v1873_v49 = vshrl.u32 %v1814_v2, 16  ;;  %v1876_v35 = vshll.u32 %v1814_v2, 16  ;;  %v1858_v22 = vrot.slane %v1856_v11, 3  ;;  %v1861_v23 = vrot.slane %v1859_v32, 4 }
 0x13b   : > { %v2041_v57 = vshll.u32 %v2033_v41, 16  ;;  %v2086_v61 = vrot.slane %v3948_v26, 2  ;;  %v1870_v34 = vrot.slane %v1868_v24, 4 }
 0x13c   : > { %v1875_v58 = vrot.slane %v1873_v49, 3 }
 0x13d   : > { %3209 = vmatpush.bf16.msra.mxu2 %v3795_v46  ;;  %2305 = vmatpush.bf16.msra.mxu1 %v3191_v43  ;;  %v1434_v46 = vshrl.u32 %v3895_v45, 16  ;;  %v2085_v43 = vrot.slane %v2033_v41, 2  ;;  %v2043_v9 = vrot.slane %v2041_v57, 1  ;;  %v2039_v45 = vshrl.u32 %v2033_v41, 16 }
 0x13e   : > { %3221 = vmatpush.bf16.msra.mxu3 %v3188_v31 }
 0x13f   : > { %v2087_v10 = vsel %vm359_vm0, %v2085_v43, %v2086_v61 }
 0x141   : > { %3210 = vmatpush.bf16.msra.mxu2 %v3814_v59  ;;  %2306 = vmatpush.bf16.msra.mxu1 %v3190_v1  ;;  %v1436_v59 = vor.u32 %v1434_v46, %v1432_v4  ;;  %v2046_v1 = vshll.u32 %v3953_v42, 16  ;;  %v1851_v4 = vshll.u32 %v3882_v36, 16 }
 0x142   : > { %3222 = vmatpush.bf16.msra.mxu3 %v3187_v47 }
 0x143   : > { %v2048_v44 = vrot.slane %v2046_v1, 1  ;;  %v1853_v29 = vrot.slane %v1851_v4, 4 }
 0x144   : > { %1637 = vmatmul.bf16.gmra.mxu1 %v1519_v54  ;;  %v1848_v54 = vshrl.u32 %v3882_v36, 16 }
 0x145   : > { %3211 = vmatpush.bf16.msra.mxu2 %v3831_v7  ;;  %2307 = vmatpush.bf16.msra.mxu1 %v3189_v14  ;;  %v2044_v7 = vor.u32 %v2043_v9, %v2039_v45  ;;  %v1865_v14 = vshrl.u32 %v1805_v3, 16 }
 0x146   : > { %1787 = vmatmul.bf16.gmra.mxu0 %v1436_v59  ;;  %3223 = vmatpush.bf16.msra.mxu3 %v3186_v60  ;;  %v1850_v27 = vrot.slane %v1848_v54, 3 }
 0x147   : > { %v2049_v36 = vsel %vm297_vm2, %v2044_v7, %v2048_v44  ;;  %v1867_v33 = vrot.slane %v1865_v14, 3 }
 0x148   : > { %1655 = vmatmul.bf16.gmra.mxu2 %v3915_v18  ;;  %2199 = vmatmul.bf16.vlgmr.msrb.gmra.mxu3 %v2087_v10  ;;  %v2050_v18 = vshrl.u32 %v3953_v42, 16  ;;  %v1854_v37 = vor.u32 %v1853_v29, %v1850_v27  ;;  %v2088_v38 = vrot.slane %v2049_v36, 2 }
 0x149   : > { %3212 = vmatpush.bf16.msra.mxu2 %v3850_v62  ;;  %2308 = vmatpush.bf16.msra.mxu1 %v3188_v31  ;;  %v1878_v62 = vrot.slane %v1876_v35, 4  ;;  %v1862_v31 = vor.u32 %v1861_v23, %v1858_v22  ;;  %v1871_v48 = vor.u32 %v1870_v34, %v1867_v33 }
 0x14a   : > { %v2052_v30 = vor.u32 %v2050_v18, %v2048_v44 }
 0x14b   : > { %v1879_v41 = vor.u32 %v1878_v62, %v1875_v58  ;;  %v1863_v26 = vsel %vm726_vm4, %v1854_v37, %v1862_v31  ;;  %v1271_v37 = vrot.slane %v3621_v17, 7  ;;  %v3237_v17 = vld [vmem:[%s4042_s6] ss:$0 sm:$0xff] }
 0x14c   : > { %v2089_v39 = vrot.slane %v2052_v30, 2 }
 0x14d   : > { %3213 = vmatpush.bf16.msra.mxu2 %v3865_v25  ;;  %2309 = vmatpush.bf16.msra.mxu1 %v3187_v47  ;;  %v1880_v47 = vsel %vm726_vm4, %v1871_v48, %v1879_v41 }
 0x14e   : > { %v2090_v25 = vsel %vm359_vm0, %v2088_v38, %v2089_v39 }
 0x151   : > { %3214 = vmatpush.bf16.msra.mxu2 %v3889_v40  ;;  %2310 = vmatpush.bf16.msra.mxu1 %v3186_v60  ;;  %v2248_v40 = vunpack.c.l.b16 %v2230_v51 }
 0x153   : > { %v2249_v52 = vpack.c.b16 %v3204_v12, %v2248_v40 }
 0x154   : > { %1989 = vmatmul.bf16.vlgmr.msrb.gmra.mxu1 %v1863_v26  ;;  %v2755_v26 = vrot.slane %v3411_v53, 9  ;;  %v1278_v53 = vrot.slane %v3625_v20, 7 }
 0x155   : > { %3215 = vmatpush.bf16.msra.mxu2 %v3920_v28  ;;  %v2250_v46 = vrot.slane %v2249_v52, 3 }
 0x156   : > { %2217 = vmatmul.bf16.vlgmr.msra.gmra.mxu0 %v2090_v25 }
 0x157   : > { %v2252_v43 = vsel %vm1130_vm5, %v2250_v46, %v2251_v50  ;;  %v1273_v46 = vrot.slane %v1271_v37, 2 }
 0x158   : > { %2007 = vmatmul.bf16.vlgmr.msrb.gmra.mxu2 %v1880_v47  ;;  %2204 = vmatmul.bf16.gmra.mxu3 %v2086_v61 }
 0x164   : > { %1994 = vmatmul.bf16.gmra.mxu1 %v1862_v31 }
 0x168   : > { %2012 = vmatmul.bf16.gmra.mxu2 %v1879_v41  ;;  %2316 = vmatmul.bf16.vlgmr.msra.gmra.mxu3 %v2251_v50  ;;  %v3236_v41 = vld [vmem:[%s4041_s5] ss:$0 sm:$0xff] }
 0x174   : > { %2311 = vmatmul.bf16.vlgmr.msra.gmra.mxu1 %v2252_v43  ;;  %v1274_v43 = vrot.slane %v3619_v16, 7 }
 0x178   : > { %2222 = vmatmul.bf16.vlgmr.msra.gmra.mxu2 %v2089_v39 }
 0x1ab   : > { %v1765_v28 = vpop.f32.mrf.mxu3 }
 0x1b1   : > { %v1633_v57 = vpop.f32.mrf.mxu1 }
 0x1b3   : > { %v1767_v60 = vpop.f32.mrf.mxu3  ;;  %v1783_v21 = vpop.f32.mrf.mxu0 }
 0x1b9   : > { %v1635_v61 = vpop.f32.mrf.mxu1 }
 0x1bb   : > { %v1651_v3 = vpop.f32.mrf.mxu2  ;;  %v1770_v6 = vpop.f32.mrf.mxu3 }
 0x1bc   : > { %v1785_v42 = vpop.f32.mrf.mxu0  ;;  %v1652_v35 = vadd.f32 %v1651_v3, %v1633_v57 }
 0x1be   : > { %v1766_v18 = vadd.f32 %v1765_v28, %v1652_v35  ;;  %v2756_v28 = vrot.slane %v3623_v19, 9  ;;  %v1285_v19 = vrot.slane %v3713_v56, 7  ;;  %v1292_v56 = vrot.slane %v3663_v13, 7 }
 0x1c0   : > { %v1784_v30 = vadd.f32 %v1783_v21, %v1766_v18  ;;  %v1279_v16 = vsel %vm3994_vm15, %v2756_v28, %v1278_v53 }
 0x1c1   : > { %v1638_v59 = vpop.f32.mrf.mxu1 }
 0x1c3   : > { %v1653_v1 = vpop.f32.mrf.mxu2  ;;  %v1772_v9 = vpop.f32.mrf.mxu3 }
 0x1c4   : > { %v1788_v10 = vpop.f32.mrf.mxu0  ;;  %v1654_v29 = vadd.f32 %v1653_v1, %v1635_v61  ;;  %v1272_v61 = vsel %vm3994_vm15, %v2755_v26, %v1271_v37  ;;  %v1275_v1 = vsel %vm3994_vm15, %v1273_v46, %v1274_v43 }
 0x1c6   : > { %v1768_v31 = vadd.f32 %v1767_v60, %v1654_v29 }
 0x1c8   : > { %v1786_v47 = vadd.f32 %v1785_v42, %v1768_v31 }
 0x1c9   : > { %v1640_v11 = vpop.f32.mrf.mxu1 }
 0x1cb   : > { %v1656_v15 = vpop.f32.mrf.mxu2  ;;  %v2200_v12 = vpop.f32.mrf.mxu3 }
 0x1cc   : > { %v1790_v32 = vpop.f32.mrf.mxu0  ;;  %v1657_v33 = vadd.f32 %v1656_v15, %v1638_v59 }
 0x1cd   : > { %v1281_v32 = vrot.slane %v3645_v63, 7 }
 0x1ce   : > { %v1771_v25 = vadd.f32 %v1770_v6, %v1657_v33 }
 0x1d0   : > { %v1789_v6 = vadd.f32 %v1788_v10, %v1771_v25  ;;  %v1288_v10 = vrot.slane %v3711_v55, 7 }
 0x1d1   : > { %v1990_v2 = vpop.f32.mrf.mxu1 }
 0x1d3   : > { %v1658_v45 = vpop.f32.mrf.mxu2  ;;  %v2202_v54 = vpop.f32.mrf.mxu3 }
 0x1d4   : > { %v2218_v24 = vpop.f32.mrf.mxu0 }
 0x1d5   : > { %v2219_v34 = vadd.f32 %v2218_v24, %v2200_v12  ;;  %v1280_v12 = vrot.slane %v1278_v53, 2 }
 0x1d9   : > { %v1992_v4 = vpop.f32.mrf.mxu1 }
 0x1db   : > { %v2008_v44 = vpop.f32.mrf.mxu2  ;;  %v3984_v7 = vpop.f32.mrf.mxu3 }
 0x1dc   : > { %v2009_v14 = vadd.f32 %v2008_v44, %v1990_v2  ;;  %v2220_v52 = vpop.f32.mrf.mxu0  ;;  %v2757_v2 = vrot.slane %v3650_v5, 9  ;;  %v1282_v5 = vsel %vm3994_vm15, %v1280_v12, %v1281_v32 }
 0x1dd   : > { %v2221_v3 = vadd.f32 %v2220_v52, %v2202_v54 }
 0x1de   : > { %v2017_v62 = vadd.f32 %v2009_v14, %v1784_v30  ;;  %v1294_v30 = vrot.slane %v1292_v56, 2 }
 0x1e0   : > { %v2227_v39 = vadd.f32 %v2219_v34, %v2017_v62  ;;  %v1295_v34 = vrot.slane %v3746_v0, 7 }
 0x1e1   : > { %v1995_v49 = vpop.f32.mrf.mxu1 }
 0x1e3   : > { %v2010_v22 = vpop.f32.mrf.mxu2  ;;  %v2207_v23 = vpop.f32.mrf.mxu3 }
 0x1e4   : > { %v2011_v38 = vadd.f32 %v2010_v22, %v1992_v4  ;;  %v1287_v23 = vrot.slane %v1285_v19, 2 }
 0x1e6   : > { %v2018_v60 = vadd.f32 %v2011_v38, %v1786_v47  ;;  %v1289_v13 = vsel %vm3994_vm15, %v1287_v23, %v1288_v10 }
 0x1e8   : > { %v2228_v15 = vadd.f32 %v2221_v3, %v2018_v60 }
 0x1e9   : > { %v1997_v27 = vpop.f32.mrf.mxu1 }
 0x1ea   : > { %v1286_v27 = vsel %vm3994_vm15, %v2757_v2, %v1285_v19 }
 0x1eb   : > { %v2013_v36 = vpop.f32.mrf.mxu2  ;;  %v3986_v58 = vpop.f32.mrf.mxu3 }
 0x1ec   : > { %v2014_v59 = vadd.f32 %v2013_v36, %v1995_v49 }
 0x1ee   : > { %v2019_v22 = vadd.f32 %v2014_v59, %v1789_v6 }
 0x1f1   : > { %v2312_v48 = vpop.f32.mrf.mxu1 }
 0x1f2   : > { %v2321_v51 = vadd.f32 %v2312_v48, %v2227_v39 }
 0x1f3   : > { %v2015_v40 = vpop.f32.mrf.mxu2  ;;  %v2319_v57 = vpop.f32.mrf.mxu3 }
 0x1f4   : > { %v2328_v21 = vmul.f32 %v3236_v41, %v2321_v51 }
 0x1f6   : > { %v2335_v42 = vadd.f32 %v3237_v17, %v2328_v21 }
 0x1f8   : > { %v2341_v9 = vrot.slane %v2335_v42, 2  ;;  %v2342_v20 = vrot.slane %v2335_v42, 6  ;;  %v2353_v11 = vadd.f32 %v2335_v42, %v1272_v61 }
 0x1f9   : > { %v2314_v45 = vpop.f32.mrf.mxu1 }
 0x1fa   : > { %v2354_v54 = vadd.f32 %v2341_v9, %v1275_v1  ;;  %v2355_v4 = vadd.f32 %v2342_v20, %v1279_v16  ;;  %v2361_v44 = vmax.f32 %v2353_v11, 0.0  ;;  %v2322_v49 = vadd.f32 %v2314_v45, %v2228_v15 }
 0x1fb   : > { %v2223_v35 = vpop.f32.mrf.mxu2 }
 0x1fc   : > { %v2224_v18 = vadd.f32 %v2223_v35, %v3984_v7  ;;  %v2362_v14 = vmax.f32 %v2354_v54, 0.0  ;;  %v2363_v24 = vmax.f32 %v2355_v4, 0.0  ;;  %2377 = vst [vmem:[#allocation1] ss:$4 sm:$0xff] %v2361_v44  ;;  %v2329_v63 = vmul.f32 %v3236_v41, %v2322_v49 }
 0x1fd   : > { %v2758_v7 = vrot.slane %v3652_v8, 9 }
 0x1fe   : > { %v2229_v55 = vadd.f32 %v2224_v18, %v2019_v22  ;;  %2379 = vst [vmem:[#allocation1 + $0x1] ss:$4 sm:$0xff] %v2362_v14  ;;  %v2336_v29 = vadd.f32 %v3237_v17, %v2329_v63 }
 0x1ff   : > { %2382 = vst [vmem:[#allocation1 + $0x20] ss:$4 sm:$0xff] %v2363_v24  ;;  %v1293_v8 = vsel %vm3994_vm15, %v2758_v7, %v1292_v56 }
 0x200   : > { %v2323_v36 = vadd.f32 %v3986_v58, %v2229_v55  ;;  %v2343_v62 = vrot.slane %v2336_v29, 4  ;;  %v2344_v31 = vrot.slane %v2336_v29, 6  ;;  %v2356_v33 = vadd.f32 %v2336_v29, %v1282_v5 }
 0x201   : > { %v1296_v58 = vsel %vm3994_vm15, %v1294_v30, %v1295_v34 }
 0x202   : > { %v2330_v37 = vmul.f32 %v3236_v41, %v2323_v36  ;;  %v2357_v38 = vadd.f32 %v2343_v62, %v1286_v27  ;;  %v2358_v39 = vadd.f32 %v2344_v31, %v1289_v13  ;;  %v2364_v26 = vmax.f32 %v2356_v33, 0.0 }
 0x203   : > { %v2225_v48 = vpop.f32.mrf.mxu2 }
 0x204   : > { %v2337_v25 = vadd.f32 %v3237_v17, %v2330_v37  ;;  %v2365_v47 = vmax.f32 %v2357_v38, 0.0  ;;  %v2366_v51 = vmax.f32 %v2358_v39, 0.0  ;;  %2384 = vst [vmem:[#allocation1 + $0x21] ss:$4 sm:$0xff] %v2364_v26 }
 0x205   : > { %v2380_v0 = vld.sshfl [vmem:[#allocation1] sm:$0xff pattern:$0x73625140] }
 0x206   : > { %v2345_v41 = vrot.slane %v2337_v25, 2  ;;  %v2346_v40 = vrot.slane %v2337_v25, 4  ;;  %2386 = vst [vmem:[#allocation1] ss:$4 sm:$0xff] %v2365_v47  ;;  %v2396_v52 = vpack.c.bf16 %v2380_v0, %v2380_v0 }
 0x207   : > { %2387 = vst [vmem:[#allocation1 + $0x1] ss:$4 sm:$0xff] %v2366_v51 }
 0x208   : > { %v2359_v17 = vadd.f32 %v2345_v41, %v1293_v8  ;;  %v2360_v46 = vadd.f32 %v2346_v40, %v1296_v58  ;;  %2400 = vst [vmem:[%s278_s17] sm:$0x3] %v2396_v52 }
 0x20a   : > { %v2367_v43 = vmax.f32 %v2359_v17, 0.0  ;;  %v2368_v28 = vmax.f32 %v2360_v46, 0.0 }
 0x20b   : > { %v2385_v53 = vld.sshfl [vmem:[#allocation1 + $0x20] sm:$0xff pattern:$0x73625140] }
 0x20c   : > { %2389 = vst [vmem:[#allocation1 + $0x20] ss:$4 sm:$0xff] %v2367_v43  ;;  %v2397_v57 = vpack.c.bf16 %v2385_v53, %v2385_v53 }
 0x20d   : > { %2390 = vst [vmem:[#allocation1 + $0x21] ss:$4 sm:$0xff] %v2368_v28 }
 0x20e   : > { %v2388_v50 = vld.sshfl [vmem:[#allocation1] sm:$0xff pattern:$0x73625140]  ;;  %2401 = vst [vmem:[%s278_s17 + $0x2] sm:$0x3] %v2397_v57 }
 0x20f   : > { %v2398_v60 = vpack.c.bf16 %v2388_v50, %v2388_v50 }
 0x211   : > { %2402 = vst [vmem:[%s278_s17 + $0x4] sm:$0x3] %v2398_v60 }
 0x214   : > { %v2391_v21 = vld.sshfl [vmem:[#allocation1 + $0x20] sm:$0xff pattern:$0x73625140] }
 0x215   : > { %v2399_v61 = vpack.c.bf16 %v2391_v21, %v2391_v21 }
 0x217   : > { %2403 = vst [vmem:[%s278_s17 + $0x6] sm:$0x3] %v2399_v61 }
 0x218 PF: > { %s17_s24 = sadd.s32 1, %s3244_s24  }
 0x219   : > { %p14_p4 = scmp.ge.s32.totalorder %s17_s24, 4  }
 0x21b   :  { %16 = sbr.rel (!%p14_p4) target bundleno = 1 (0x1), region = 98 }

// kernel: _lambda_.5
= control target key start
LH: loop header
LB: loop body
LE: loop exit
PB: predicated region body
PF: predicated region fallthrough
CT: control target
= control target key end

     0   :  { %s3088_s23 = smov 0   ;;  %s3615_s0 = inlined_call_operand.vmem [shape: bf16[2,4,12,128], index: 0, kind: input, shape index: {}]   ;;  %s3616_s1 = inlined_call_operand.vmem [shape: bf16[1152,128], index: 1, kind: input, shape index: {}]   ;;  %s3617_s2 = inlined_call_operand.vmem [shape: f32[1,128], index: 2, kind: input, shape index: {}, may-alias: {2,5,8}]   ;;  %s3618_s3 = inlined_call_operand.vmem [shape: f32[1,128], index: 3, kind: input, shape index: {}, may-alias: {3,6,9}]   ;;  %s3619_s4 = inlined_call_operand.vmem [shape: bf16[128,128], index: 4, kind: input, shape index: {}]   ;;  %s3620_s5 = inlined_call_operand.vmem [shape: f32[1,128], index: 5, kind: input, shape index: {}, may-alias: {2,5,8}]   ;;  %s3621_s6 = inlined_call_operand.vmem [shape: f32[1,128], index: 6, kind: input, shape index: {}, may-alias: {3,6,9}]   ;;  %s3622_s7 = inlined_call_operand.vmem [shape: bf16[1152,128], index: 7, kind: input, shape index: {}]   ;;  %s3623_s8 = inlined_call_operand.vmem [shape: f32[1,128], index: 8, kind: input, shape index: {}, may-alias: {2,5,8}]   ;;  %s3624_s9 = inlined_call_operand.vmem [shape: f32[1,128], index: 9, kind: input, shape index: {}, may-alias: {3,6,9}]   ;;  %s3625_s10 = inlined_call_operand.vmem [shape: f32[1,128], index: 10, kind: input, shape index: {}]   ;;  %s3626_s11 = inlined_call_operand.<no memory space> [shape: f32[1,1], index: 11, kind: input, shape index: {}]   ;;  %s3627_s12 = inlined_call_operand.vmem [shape: f32[2,1,1], index: 12, kind: output, shape index: {}]  }
   0x1   :  { %v17_v0 = vstv %s3626_s11 }
   0x2   :  { %18 = vst [vmem:[#allocation3] sm:$0x1] %v17_v0 }
   0x3 LB: > { %s2214_s24 = sadd.s32 4294967295, %s3017_s23   ;;  %p2218_p0 = scmp.ge.s32.totalorder %s3017_s23, 1  ;;  %s3017_s23 = sphi %s3088_s23, %s24_s23  }
   0x4   : > { %p364_p1 = scmp.lt.s32.totalorder %s3017_s23, 3 }
   0x6   : > { %p365_p2 = pnand %p2218_p0, %p364_p1 }
   0x7   : > { %p404_p3 = scmp.lt.s32.totalorder (!%p365_p2), %s2214_s24, 1 }
   0x8   : > { %368 = sbr.rel (%p365_p2) target bundleno = 613 (0x265), region = 68 }
   0xd   : > { %v2866_v1 = vld [vmem:[%s3616_s1 + $0xb8] sm:$0xff]  ;;  %v2865_v5 = vld [vmem:[%s3616_s1 + $0xb0] sm:$0xff]  ;;  %v2864_v9 = vld [vmem:[%s3616_s1 + $0xa8] sm:$0xff]  ;;  %s3629_s24 = smov (!%p404_p3, %s2214_s24), 1  ;;  %vm1312_vm0 = vcmask 1040384   ;;  %vm1315_vm1 = vcmask 1042432  }
   0xe   : > { %v2850_v2 = vld [vmem:[%s3616_s1 + $0x38] sm:$0xff]  ;;  %605 = vmatpush.bf16.msra.mxu0 %v2866_v1  ;;  %v2849_v6 = vld [vmem:[%s3616_s1 + $0x30] sm:$0xff]  ;;  %v2848_v10 = vld [vmem:[%s3616_s1 + $0x28] sm:$0xff]  ;;  %s2842_s21 = sshll.u32 %s3629_s24, 5  ;;  %vm2149_vm2 = vcmask 1043456   ;;  %s411_s14 = scalar_lea.vmem %s3627_s12, %s3629_s24  ;;  %vm2165_vm3 = vcmask 0  }
   0xf   : > { %v2858_v3 = vld [vmem:[%s3616_s1 + $0x78] sm:$0xff]  ;;  %727 = vmatpush.bf16.msra.mxu2 %v2850_v2  ;;  %v2857_v7 = vld [vmem:[%s3616_s1 + $0x70] sm:$0xff]  ;;  %v2856_v11 = vld [vmem:[%s3616_s1 + $0x68] sm:$0xff]  ;;  %s3156_s29 = scalar_lea.vmem %s3615_s0, %s2842_s21 }
  0x10   : > { %v2874_v4 = vld [vmem:[%s3616_s1 + $0xf8] sm:$0xff]  ;;  %740 = vmatpush.bf16.msra.mxu3 %v2858_v3  ;;  %v2873_v8 = vld [vmem:[%s3616_s1 + $0xf0] sm:$0xff]  ;;  %v2872_v12 = vld [vmem:[%s3616_s1 + $0xe8] sm:$0xff] }
  0x11   : > { %618 = vmatpush.bf16.msra.mxu1 %v2874_v4  ;;  %v2863_v13 = vld [vmem:[%s3616_s1 + $0xa0] sm:$0xff]  ;;  %v2862_v17 = vld [vmem:[%s3616_s1 + $0x98] sm:$0xff]  ;;  %v2222_v21 = vld [vmem:[%s3156_s29 + $0x10] sm:$0x7] }
  0x12   : > { %606 = vmatpush.bf16.msra.mxu0 %v2865_v5  ;;  %v2847_v14 = vld [vmem:[%s3616_s1 + $0x20] sm:$0xff]  ;;  %v2846_v18 = vld [vmem:[%s3616_s1 + $0x18] sm:$0xff]  ;;  %v2861_v22 = vld [vmem:[%s3616_s1 + $0x90] sm:$0xff]  ;;  %v452_v24 = vunpack.c.l.b16 %v2222_v21 }
  0x13   : > { %728 = vmatpush.bf16.msra.mxu2 %v2849_v6  ;;  %v2855_v15 = vld [vmem:[%s3616_s1 + $0x60] sm:$0xff]  ;;  %v2854_v19 = vld [vmem:[%s3616_s1 + $0x58] sm:$0xff]  ;;  %v2845_v23 = vld [vmem:[%s3616_s1 + $0x10] sm:$0xff] }
  0x14   : > { %741 = vmatpush.bf16.msra.mxu3 %v2857_v7  ;;  %v2871_v16 = vld [vmem:[%s3616_s1 + $0xe0] sm:$0xff]  ;;  %v2870_v20 = vld [vmem:[%s3616_s1 + $0xd8] sm:$0xff]  ;;  %v2853_v25 = vld [vmem:[%s3616_s1 + $0x50] sm:$0xff]  ;;  %v453_v28 = vpack.c.b16 %v452_v24, %v452_v24 }
  0x15   : > { %619 = vmatpush.bf16.msra.mxu1 %v2873_v8  ;;  %v2869_v26 = vld [vmem:[%s3616_s1 + $0xd0] sm:$0xff]  ;;  %v448_v27 = vld [vmem:[%s3156_s29] sm:$0xf]  ;;  %v2860_v29 = vld [vmem:[%s3616_s1 + $0x88] sm:$0xff] }
  0x16   : > { %607 = vmatpush.bf16.msra.mxu0 %v2864_v9  ;;  %v2844_v30 = vld [vmem:[%s3616_s1 + $0x8] sm:$0xff]  ;;  %v455_v31 = vshrl.u32 %v453_v28, 16  ;;  %v458_v32 = vshll.u32 %v453_v28, 16  ;;  %v496_v35 = vshll.u32 %v448_v27, 16  ;;  %v2859_v37 = vld [vmem:[%s3616_s1 + $0x80] sm:$0xff]  ;;  %v494_v42 = vshrl.u32 %v448_v27, 16 }
  0x17   : > { %729 = vmatpush.bf16.msra.mxu2 %v2848_v10  ;;  %v2852_v33 = vld [vmem:[%s3616_s1 + $0x48] sm:$0xff]  ;;  %v2843_v38 = vld [vmem:[%s3616_s1] sm:$0xff]  ;;  %v2882_v44 = vld [vmem:[%s3616_s1 + $0x138] sm:$0xff] }
  0x18   : > { %742 = vmatpush.bf16.msra.mxu3 %v2856_v11  ;;  %v2868_v34 = vld [vmem:[%s3616_s1 + $0xc8] sm:$0xff]  ;;  %v457_v36 = vrot.slane %v455_v31, 7  ;;  %v2851_v40 = vld [vmem:[%s3616_s1 + $0x40] sm:$0xff]  ;;  %v498_v43 = vrot.slane %v496_v35, 1  ;;  %v2899_v45 = vld [vmem:[%s3616_s1 + $0x1b8] sm:$0xff] }
  0x19   : > { %620 = vmatpush.bf16.msra.mxu1 %v2872_v12  ;;  %v2867_v41 = vld [vmem:[%s3616_s1 + $0xc0] sm:$0xff]  ;;  %v2907_v48 = vld [vmem:[%s3616_s1 + $0x1f8] sm:$0xff]  ;;  %v2221_v52 = vld [vmem:[%s3156_s29 + $0x8] sm:$0x7] }
  0x1a   : > { %608 = vmatpush.bf16.msra.mxu0 %v2863_v13  ;;  %v460_v39 = vor.u32 %v458_v32, %v457_v36  ;;  %v2890_v49 = vld [vmem:[%s3616_s1 + $0x178] sm:$0xff]  ;;  %v413_v51 = vld [vmem:[%s3156_s29] sm:$0x7]  ;;  %v499_v53 = vor.u32 %v498_v43, %v494_v42  ;;  %v2881_v54 = vld [vmem:[%s3616_s1 + $0x130] sm:$0xff] }
  0x1b   : > { %730 = vmatpush.bf16.msra.mxu2 %v2847_v14  ;;  %v2898_v55 = vld [vmem:[%s3616_s1 + $0x1b0] sm:$0xff]  ;;  %v2880_v59 = vld [vmem:[%s3616_s1 + $0x128] sm:$0xff]  ;;  %v2879_v63 = vld [vmem:[%s3616_s1 + $0x120] sm:$0xff] }
  0x1c   : > { %743 = vmatpush.bf16.msra.mxu3 %v2855_v15  ;;  %v501_v46 = vshrl.u32 %v460_v39, 16  ;;  %v503_v47 = vshll.u32 %v460_v39, 16  ;;  %v2906_v57 = vld [vmem:[%s3616_s1 + $0x1f0] sm:$0xff]  ;;  %v2897_v60 = vld [vmem:[%s3616_s1 + $0x1a8] sm:$0xff]  ;;  %v2896_v0 = vld [vmem:[%s3616_s1 + $0x1a0] sm:$0xff] }
  0x1d   : > { %621 = vmatpush.bf16.msra.mxu1 %v2871_v16  ;;  %v2889_v58 = vld [vmem:[%s3616_s1 + $0x170] sm:$0xff]  ;;  %v2905_v61 = vld [vmem:[%s3616_s1 + $0x1e8] sm:$0xff]  ;;  %v922_v1 = vld [vmem:[%s3156_s29] sm:$0xe] }
  0x1e   : > { %609 = vmatpush.bf16.msra.mxu0 %v2862_v17  ;;  %v505_v50 = vrot.slane %v503_v47, 1  ;;  %v2888_v62 = vld [vmem:[%s3616_s1 + $0x168] sm:$0xff]  ;;  %v3248_v2 = vld [vmem:[%s3156_s29 + $0x4] sm:$0x1]  ;;  %v2352_v5 = vld [vmem:[%s3156_s29 + $0x10] sm:$0xf]  ;;  %v928_v6 = vunpack.c.l.b16 %v922_v1 }
  0x1f   : > { %731 = vmatpush.bf16.msra.mxu2 %v2846_v18  ;;  %v2904_v3 = vld [vmem:[%s3616_s1 + $0x1e0] sm:$0xff]  ;;  %v929_v7 = vunpack.c.l.b16 %v3248_v2  ;;  %v2878_v8 = vld [vmem:[%s3616_s1 + $0x118] sm:$0xff]  ;;  %v757_v11 = vunpack.c.l.b16 %v2352_v5  ;;  %v2421_v13 = vld [vmem:[%s3156_s29 + $0x8] sm:$0xe] }
  0x20   : > { %744 = vmatpush.bf16.msra.mxu3 %v2854_v19  ;;  %v506_v56 = vor.u32 %v505_v50, %v501_v46  ;;  %v2887_v4 = vld [vmem:[%s3616_s1 + $0x160] sm:$0xff]  ;;  %v2895_v9 = vld [vmem:[%s3616_s1 + $0x198] sm:$0xff]  ;;  %v2891_v14 = vld [vmem:[%s3156_s29 + $0x8] sm:$0x10] }
  0x21   : > { %622 = vmatpush.bf16.msra.mxu1 %v2870_v20  ;;  %v2903_v10 = vld [vmem:[%s3616_s1 + $0x1d8] sm:$0xff]  ;;  %v930_v15 = vpack.c.b16 %v929_v7, %v928_v6  ;;  %v2877_v16 = vld [vmem:[%s3616_s1 + $0x110] sm:$0xff]  ;;  %v2422_v18 = vor.u32 %v2891_v14, %v2421_v13  ;;  %v758_v19 = vpack.c.b16 %v757_v11, %v757_v11  ;;  %v2876_v24 = vld [vmem:[%s3616_s1 + $0x108] sm:$0xff] }
  0x22   : > { %610 = vmatpush.bf16.msra.mxu0 %v2861_v22  ;;  %v2886_v12 = vld [vmem:[%s3616_s1 + $0x158] sm:$0xff]  ;;  %v2894_v17 = vld [vmem:[%s3616_s1 + $0x190] sm:$0xff]  ;;  %v2900_v39 = vld [vmem:[%s3616_s1 + $0x1c0] sm:$0xff] }
  0x23   : > { %732 = vmatpush.bf16.msra.mxu2 %v2845_v23  ;;  %v2902_v20 = vld [vmem:[%s3616_s1 + $0x1d0] sm:$0xff]  ;;  %v969_v22 = vshrl.u32 %v930_v15, 16  ;;  %v972_v23 = vshll.u32 %v930_v15, 16  ;;  %v980_v27 = vshll.u32 %v2422_v18, 16  ;;  %v762_v28 = vshll.u32 %v758_v19, 16  ;;  %v2923_v42 = vld [vmem:[%s3619_s4 + $0x38] sm:$0xff] }
  0x24   : > { %745 = vmatpush.bf16.msra.mxu3 %v2853_v25  ;;  %v2885_v21 = vld [vmem:[%s3616_s1 + $0x150] sm:$0xff]  ;;  %v2893_v25 = vld [vmem:[%s3616_s1 + $0x188] sm:$0xff]  ;;  %v2931_v13 = vld [vmem:[%s3622_s7 + $0x38] sm:$0xff] }
  0x25   : > { %623 = vmatpush.bf16.msra.mxu1 %v2869_v26  ;;  %v977_v26 = vshrl.u32 %v2422_v18, 16  ;;  %v971_v31 = vrot.slane %v969_v22, 1  ;;  %v974_v32 = vrot.slane %v972_v23, 2  ;;  %v982_v36 = vrot.slane %v980_v27, 2  ;;  %v2914_v47 = vld [vmem:[%s3616_s1 + $0x230] sm:$0xff]  ;;  %v2921_v50 = vld [vmem:[%s3619_s4 + $0x28] sm:$0xff] }
  0x26   : > { %611 = vmatpush.bf16.msra.mxu0 %v2860_v29  ;;  %v2901_v29 = vld [vmem:[%s3616_s1 + $0x1c8] sm:$0xff]  ;;  %v2954_v27 = vld [vmem:[%s3622_s7 + $0xf0] sm:$0xff] }
  0x27   : > { %733 = vmatpush.bf16.msra.mxu2 %v2844_v30  ;;  %v2884_v30 = vld [vmem:[%s3616_s1 + $0x148] sm:$0xff]  ;;  %v979_v35 = vrot.slane %v977_v26, 1  ;;  %v975_v43 = vor.u32 %v974_v32, %v971_v31 }
  0x28   : > { %746 = vmatpush.bf16.msra.mxu3 %v2852_v33  ;;  %v2875_v33 = vld [vmem:[%s3616_s1 + $0x100] sm:$0xff]  ;;  %v2945_v14 = vld [vmem:[%s3622_s7 + $0xa8] sm:$0xff] }
  0x29   : > { %624 = vmatpush.bf16.msra.mxu1 %v2868_v34  ;;  %v2892_v34 = vld [vmem:[%s3616_s1 + $0x180] sm:$0xff]  ;;  %v2929_v22 = vld [vmem:[%s3622_s7 + $0x28] sm:$0xff] }
  0x2a   : > { %612 = vmatpush.bf16.msra.mxu0 %v2859_v37  ;;  %v760_v37 = vshrl.u32 %v758_v19, 16  ;;  %v2953_v32 = vld [vmem:[%s3622_s7 + $0xe8] sm:$0xff] }
  0x2b   : > { %734 = vmatpush.bf16.msra.mxu2 %v2843_v38  ;;  %v764_v38 = vrot.slane %v762_v28, 1  ;;  %v2928_v28 = vld [vmem:[%s3622_s7 + $0x20] sm:$0xff] }
  0x2c   : > { %747 = vmatpush.bf16.msra.mxu3 %v2851_v40  ;;  %v2883_v40 = vld [vmem:[%s3616_s1 + $0x140] sm:$0xff] }
  0x2d   : > { %625 = vmatpush.bf16.msra.mxu1 %v2867_v41  ;;  %613 = vmatmul.bf16.vlgmr.msra.gmra.mxu0 %v499_v53  ;;  %v2915_v41 = vld [vmem:[%s3616_s1 + $0x238] sm:$0xff]  ;;  %v765_v46 = vor.u32 %v764_v38, %v760_v37  ;;  %v2952_v38 = vld [vmem:[%s3622_s7 + $0xe0] sm:$0xff] }
  0x2e   : > { %895 = vmatpush.bf16.msrb.mxu0 %v2882_v44  ;;  %735 = vmatmul.bf16.vlgmr.msra.gmra.mxu2 %v413_v51  ;;  %v983_v44 = vor.u32 %v982_v36, %v979_v35  ;;  %v2912_v51 = vld [vmem:[%s3616_s1 + $0x220] sm:$0xff]  ;;  %v2911_v53 = vld [vmem:[%s3616_s1 + $0x218] sm:$0xff]  ;;  %v2941_v35 = vld [vmem:[%s3622_s7 + $0x88] sm:$0xff] }
  0x2f   : > { %1082 = vmatpush.bf16.msrb.mxu2 %v2899_v45  ;;  %748 = vmatmul.bf16.vlgmr.msra.gmra.mxu3 %v2221_v52  ;;  %v2351_v45 = vld [vmem:[%s3156_s29 + $0x18] sm:$0x7]  ;;  %v2920_v52 = vld [vmem:[%s3619_s4 + $0x20] sm:$0xff] }
  0x30   : > { %1095 = vmatpush.bf16.msrb.mxu3 %v2907_v48  ;;  %626 = vmatmul.bf16.vlgmr.msra.gmra.mxu1 %v506_v56  ;;  %v2922_v48 = vld [vmem:[%s3619_s4 + $0x30] sm:$0xff]  ;;  %v1109_v56 = vld [vmem:[%s3156_s29] sm:$0xc] }
  0x31   : > { %908 = vmatpush.bf16.msrb.mxu1 %v2890_v49  ;;  %v2913_v49 = vld [vmem:[%s3616_s1 + $0x228] sm:$0xff] }
  0x32   : > { %896 = vmatpush.bf16.msrb.mxu0 %v2881_v54  ;;  %v2919_v54 = vld [vmem:[%s3619_s4 + $0x18] sm:$0xff] }
  0x33   : > { %1083 = vmatpush.bf16.msrb.mxu2 %v2898_v55  ;;  %v2910_v55 = vld [vmem:[%s3616_s1 + $0x210] sm:$0xff] }
  0x34   : > { %1096 = vmatpush.bf16.msrb.mxu3 %v2906_v57  ;;  %v2918_v57 = vld [vmem:[%s3619_s4 + $0x10] sm:$0xff] }
  0x35   : > { %909 = vmatpush.bf16.msrb.mxu1 %v2889_v58  ;;  %v1127_v58 = vunpack.c.l.b16 %v1109_v56  ;;  %v2962_v56 = vld [vmem:[%s3622_s7 + $0x130] sm:$0xff] }
  0x36   : > { %897 = vmatpush.bf16.msrb.mxu0 %v2880_v59  ;;  %v2909_v59 = vld [vmem:[%s3616_s1 + $0x208] sm:$0xff] }
  0x37   : > { %1084 = vmatpush.bf16.msrb.mxu2 %v2897_v60  ;;  %v2917_v60 = vld [vmem:[%s3619_s4 + $0x8] sm:$0xff] }
  0x38   : > { %1097 = vmatpush.bf16.msrb.mxu3 %v2905_v61  ;;  %v1128_v61 = vpack.c.b16 %v929_v7, %v1127_v58  ;;  %v3006_v58 = vld [vmem:[%s3618_s3] ss:$0 sm:$0xff] }
  0x39   : > { %910 = vmatpush.bf16.msrb.mxu1 %v2888_v62  ;;  %v2908_v62 = vld [vmem:[%s3616_s1 + $0x200] sm:$0xff] }
  0x3a   : > { %898 = vmatpush.bf16.msrb.mxu0 %v2879_v63  ;;  %v2916_v63 = vld [vmem:[%s3619_s4] sm:$0xff] }
  0x3b   : > { %1085 = vmatpush.bf16.msrb.mxu2 %v2896_v0  ;;  %v1129_v0 = vrot.slane %v1128_v61, 2  ;;  %v2949_v61 = vld [vmem:[%s3622_s7 + $0xc8] sm:$0xff] }
  0x3c   : > { %1098 = vmatpush.bf16.msrb.mxu3 %v2904_v3 }
  0x3d   : > { %911 = vmatpush.bf16.msrb.mxu1 %v2887_v4 }
  0x3e   : > { %899 = vmatpush.bf16.msrb.mxu0 %v2878_v8 }
  0x3f   : > { %1086 = vmatpush.bf16.msrb.mxu2 %v2895_v9  ;;  %v2947_v9 = vld [vmem:[%s3622_s7 + $0xb8] sm:$0xff] }
  0x40   : > { %1099 = vmatpush.bf16.msrb.mxu3 %v2903_v10 }
  0x41   : > { %912 = vmatpush.bf16.msrb.mxu1 %v2886_v12  ;;  %v2946_v12 = vld [vmem:[%s3622_s7 + $0xb0] sm:$0xff] }
  0x42   : > { %900 = vmatpush.bf16.msrb.mxu0 %v2877_v16  ;;  %v2930_v16 = vld [vmem:[%s3622_s7 + $0x30] sm:$0xff] }
  0x43   : > { %1087 = vmatpush.bf16.msrb.mxu2 %v2894_v17 }
  0x44   : > { %1100 = vmatpush.bf16.msrb.mxu3 %v2902_v20  ;;  %v2944_v20 = vld [vmem:[%s3622_s7 + $0xa0] sm:$0xff] }
  0x45   : > { %913 = vmatpush.bf16.msrb.mxu1 %v2885_v21  ;;  %v2955_v21 = vld [vmem:[%s3622_s7 + $0xf8] sm:$0xff] }
  0x46   : > { %901 = vmatpush.bf16.msrb.mxu0 %v2876_v24  ;;  %v2943_v24 = vld [vmem:[%s3622_s7 + $0x98] sm:$0xff] }
  0x47   : > { %1088 = vmatpush.bf16.msrb.mxu2 %v2893_v25 }
  0x48   : > { %1101 = vmatpush.bf16.msrb.mxu3 %v2901_v29  ;;  %v2939_v29 = vld [vmem:[%s3622_s7 + $0x78] sm:$0xff] }
  0x49   : > { %914 = vmatpush.bf16.msrb.mxu1 %v2884_v30  ;;  %v2942_v30 = vld [vmem:[%s3622_s7 + $0x90] sm:$0xff] }
  0x4a   : > { %902 = vmatpush.bf16.msrb.mxu0 %v2875_v33  ;;  %v2927_v33 = vld [vmem:[%s3622_s7 + $0x18] sm:$0xff] }
  0x4b   : > { %1089 = vmatpush.bf16.msrb.mxu2 %v2892_v34  ;;  %v2938_v34 = vld [vmem:[%s3622_s7 + $0x70] sm:$0xff] }
  0x4c   : > { %1102 = vmatpush.bf16.msrb.mxu3 %v2900_v39  ;;  %v2926_v39 = vld [vmem:[%s3622_s7 + $0x10] sm:$0xff] }
  0x4d   : > { %915 = vmatpush.bf16.msrb.mxu1 %v2883_v40  ;;  %903 = vmatmul.bf16.vlgmr.msrb.gmra.mxu0 %v2351_v45  ;;  %v2937_v40 = vld [vmem:[%s3622_s7 + $0x68] sm:$0xff] }
  0x4e   : > { %1179 = vmatpush.bf16.msra.mxu0 %v2915_v41  ;;  %1090 = vmatmul.bf16.vlgmr.msrb.gmra.mxu2 %v975_v43 }
  0x4f   : > { %1103 = vmatmul.bf16.vlgmr.msrb.gmra.mxu3 %v983_v44  ;;  %1524 = vmatpush.bf16.msra.mxu2 %v2947_v9  ;;  %v2951_v44 = vld [vmem:[%s3622_s7 + $0xd8] sm:$0xff] }
  0x50   : > { %916 = vmatmul.bf16.vlgmr.msrb.gmra.mxu1 %v765_v46  ;;  %1537 = vmatpush.bf16.msra.mxu3 %v2955_v21  ;;  %v2936_v46 = vld [vmem:[%s3622_s7 + $0x60] sm:$0xff] }
  0x51   : > { %1272 = vmatpush.bf16.msra.mxu1 %v2923_v42  ;;  %v2940_v42 = vld [vmem:[%s3622_s7 + $0x80] sm:$0xff] }
  0x52   : > { %1180 = vmatpush.bf16.msra.mxu0 %v2914_v47  ;;  %v2963_v47 = vld [vmem:[%s3622_s7 + $0x138] sm:$0xff] }
  0x53   : > { %1525 = vmatpush.bf16.msra.mxu2 %v2946_v12  ;;  %v2971_v12 = vld [vmem:[%s3622_s7 + $0x178] sm:$0xff] }
  0x54   : > { %1538 = vmatpush.bf16.msra.mxu3 %v2954_v27  ;;  %v2975_v27 = vld [vmem:[%s3622_s7 + $0x198] sm:$0xff] }
  0x55   : > { %1273 = vmatpush.bf16.msra.mxu1 %v2922_v48 }
  0x56   : > { %1181 = vmatpush.bf16.msra.mxu0 %v2913_v49  ;;  %v3005_v49 = vld [vmem:[%s3617_s2] ss:$0 sm:$0xff] }
  0x57   : > { %1526 = vmatpush.bf16.msra.mxu2 %v2945_v14  ;;  %v2932_v14 = vld [vmem:[%s3622_s7 + $0x40] sm:$0xff] }
  0x58   : > { %1539 = vmatpush.bf16.msra.mxu3 %v2953_v32  ;;  %v2985_v32 = vld [vmem:[%s3622_s7 + $0x1e8] sm:$0xff] }
  0x59   : > { %1274 = vmatpush.bf16.msra.mxu1 %v2921_v50  ;;  %v2950_v50 = vld [vmem:[%s3622_s7 + $0xd0] sm:$0xff] }
  0x5a   : > { %1182 = vmatpush.bf16.msra.mxu0 %v2912_v51  ;;  %v2924_v51 = vld [vmem:[%s3622_s7] sm:$0xff] }
  0x5b   : > { %1527 = vmatpush.bf16.msra.mxu2 %v2944_v20 }
  0x5c   : > { %1540 = vmatpush.bf16.msra.mxu3 %v2952_v38 }
  0x5d   : > { %1275 = vmatpush.bf16.msra.mxu1 %v2920_v52  ;;  %v3019_v52 = vmov 0  }
  0x5e   : > { %1183 = vmatpush.bf16.msra.mxu0 %v2911_v53  ;;  %1299 = vst [vmem:[#allocation2] sm:$0xf] %v3019_v52 }
  0x5f   : > { %1528 = vmatpush.bf16.msra.mxu2 %v2943_v24  ;;  %1300 = vst [vmem:[#allocation2 + $0x4] sm:$0xf] %v3019_v52 }
  0x60   : > { %1541 = vmatpush.bf16.msra.mxu3 %v2951_v44  ;;  %1301 = vst [vmem:[#allocation2 + $0x8] sm:$0x3] %v3019_v52  ;;  %v2983_v44 = vld [vmem:[%s3622_s7 + $0x1d8] sm:$0xff] }
  0x61   : > { %1276 = vmatpush.bf16.msra.mxu1 %v2919_v54 }
  0x62   : > { %1184 = vmatpush.bf16.msra.mxu0 %v2910_v55  ;;  %v2935_v55 = vld [vmem:[%s3622_s7 + $0x58] sm:$0xff] }
  0x63   : > { %1529 = vmatpush.bf16.msra.mxu2 %v2942_v30  ;;  %v2968_v30 = vld [vmem:[%s3622_s7 + $0x160] sm:$0xff] }
  0x64   : > { %1542 = vmatpush.bf16.msra.mxu3 %v2950_v50 }
  0x65   : > { %1277 = vmatpush.bf16.msra.mxu1 %v2918_v57 }
  0x66   : > { %1185 = vmatpush.bf16.msra.mxu0 %v2909_v59  ;;  %v2979_v59 = vld [vmem:[%s3622_s7 + $0x1b8] sm:$0xff] }
  0x67   : > { %1530 = vmatpush.bf16.msra.mxu2 %v2941_v35  ;;  %v2967_v35 = vld [vmem:[%s3622_s7 + $0x158] sm:$0xff] }
  0x68   : > { %1543 = vmatpush.bf16.msra.mxu3 %v2949_v61 }
  0x69   : > { %1278 = vmatpush.bf16.msra.mxu1 %v2917_v60 }
  0x6a   : > { %1186 = vmatpush.bf16.msra.mxu0 %v2908_v62  ;;  %v2934_v62 = vld [vmem:[%s3622_s7 + $0x50] sm:$0xff] }
  0x6b   : > { %1531 = vmatpush.bf16.msra.mxu2 %v2940_v42  ;;  %v2966_v42 = vld [vmem:[%s3622_s7 + $0x150] sm:$0xff] }
  0x6d   : > { %1279 = vmatpush.bf16.msra.mxu1 %v2916_v63  ;;  %1187 = vmatmul.bf16.vlgmr.msra.gmra.mxu0 %v1129_v0  ;;  %v2961_v63 = vld [vmem:[%s3622_s7 + $0x128] sm:$0xff] }
  0x6e   : > { %1646 = vmatpush.bf16.msrb.mxu0 %v2931_v13  ;;  %v2977_v13 = vld [vmem:[%s3622_s7 + $0x1a8] sm:$0xff] }
  0x6f   : > { %1833 = vmatpush.bf16.msrb.mxu2 %v2963_v47 }
  0x70   : > { %1280 = vmatmul.bf16.vlgmr.msra.gmra.mxu1 %v2351_v45  ;;  %v2925_v45 = vld [vmem:[%s3622_s7 + $0x8] sm:$0xff] }
  0x71   : > { %1659 = vmatpush.bf16.msrb.mxu1 %v2939_v29  ;;  %v2957_v29 = vld [vmem:[%s3622_s7 + $0x108] sm:$0xff] }
  0x72   : > { %1647 = vmatpush.bf16.msrb.mxu0 %v2930_v16 }
  0x73   : > { %1834 = vmatpush.bf16.msrb.mxu2 %v2962_v56 }
  0x75   : > { %1660 = vmatpush.bf16.msrb.mxu1 %v2938_v34  ;;  %v2956_v34 = vld [vmem:[%s3622_s7 + $0x100] sm:$0xff] }
  0x76   : > { %1648 = vmatpush.bf16.msrb.mxu0 %v2929_v22  ;;  %v2958_v22 = vld [vmem:[%s3622_s7 + $0x110] sm:$0xff] }
  0x77   : > { %1835 = vmatpush.bf16.msrb.mxu2 %v2961_v63 }
  0x79   : > { %1661 = vmatpush.bf16.msrb.mxu1 %v2937_v40 }
  0x7a   : > { %1649 = vmatpush.bf16.msrb.mxu0 %v2928_v28  ;;  %v2986_v28 = vld [vmem:[%s3622_s7 + $0x1f0] sm:$0xff] }
  0x7d   : > { %1662 = vmatpush.bf16.msrb.mxu1 %v2936_v46  ;;  %v2982_v46 = vld [vmem:[%s3622_s7 + $0x1d0] sm:$0xff] }
  0x7e   : > { %1650 = vmatpush.bf16.msrb.mxu0 %v2927_v33 }
  0x81   : > { %1663 = vmatpush.bf16.msrb.mxu1 %v2935_v55 }
  0x82   : > { %1651 = vmatpush.bf16.msrb.mxu0 %v2926_v39 }
  0x85   : > { %1664 = vmatpush.bf16.msrb.mxu1 %v2934_v62 }
  0x86   : > { %1652 = vmatpush.bf16.msrb.mxu0 %v2925_v45  ;;  %v2965_v45 = vld [vmem:[%s3622_s7 + $0x148] sm:$0xff] }
  0x8a   : > { %1653 = vmatpush.bf16.msrb.mxu0 %v2924_v51  ;;  %v2981_v51 = vld [vmem:[%s3622_s7 + $0x1c8] sm:$0xff] }
  0x8e   : > { %2003 = vmatpush.bf16.msra.mxu0 %v2979_v59 }
  0xaa   : > { %v614_v1 = vpop.f32.mrf.mxu0 }
  0xad   : > { %v627_v3 = vpop.f32.mrf.mxu1 }
  0xae   : > { %v628_v25 = vadd.f32 %v627_v3, %v614_v1  ;;  %v3007_v1 = vld [vmem:[%s3620_s5] ss:$0 sm:$0xff]  ;;  %v2978_v3 = vld [vmem:[%s3622_s7 + $0x1b0] sm:$0xff] }
  0xaf   : > { %2004 = vmatpush.bf16.msra.mxu0 %v2978_v3 }
  0xb1   : > { %v736_v4 = vpop.f32.mrf.mxu2 }
  0xb2   : > { %v749_v2 = vpop.f32.mrf.mxu3  ;;  %v616_v5 = vpop.f32.mrf.mxu0  ;;  %v737_v31 = vadd.f32 %v736_v4, %v628_v25 }
  0xb3   : > { %2005 = vmatpush.bf16.msra.mxu0 %v2977_v13 }
  0xb4   : > { %v750_v36 = vadd.f32 %v749_v2, %v737_v31  ;;  %v2948_v2 = vld [vmem:[%s3622_s7 + $0xc0] sm:$0xff]  ;;  %v2974_v31 = vld [vmem:[%s3622_s7 + $0x190] sm:$0xff] }
  0xb5   : > { %v629_v6 = vpop.f32.mrf.mxu1  ;;  %1544 = vmatpush.bf16.msra.mxu3 %v2948_v2 }
  0xb6   : > { %v3008_v6 = vld [vmem:[%s3621_s6] ss:$0 sm:$0xff] }
  0xb9   : > { %v738_v7 = vpop.f32.mrf.mxu2  ;;  %1846 = vmatpush.bf16.msrb.mxu3 %v2971_v12 }
  0xba   : > { %v751_v8 = vpop.f32.mrf.mxu3  ;;  %v2933_v7 = vld [vmem:[%s3622_s7 + $0x48] sm:$0xff] }
  0xbb   : > { %v2960_v8 = vld [vmem:[%s3622_s7 + $0x120] sm:$0xff]  ;;  %1665 = vmatpush.bf16.msrb.mxu1 %v2933_v7 }
  0xbc   : > { %1836 = vmatpush.bf16.msrb.mxu2 %v2960_v8  ;;  %v2995_v8 = vld [vmem:[%s3622_s7 + $0x238] sm:$0xff] }
  0xbf   : > { %1666 = vmatpush.bf16.msrb.mxu1 %v2932_v14 }
  0xca   : > { %v904_v10 = vpop.f32.mrf.mxu0 }
  0xcd   : > { %v917_v11 = vpop.f32.mrf.mxu1 }
  0xce   : > { %v918_v37 = vadd.f32 %v917_v11, %v904_v10 }
  0xd0   : > { %v921_v43 = vadd.f32 %v918_v37, %v750_v36  ;;  %v2973_v36 = vld [vmem:[%s3622_s7 + $0x188] sm:$0xff]  ;;  %v2984_v37 = vld [vmem:[%s3622_s7 + $0x1e0] sm:$0xff] }
  0xd1   : > { %v1091_v15 = vpop.f32.mrf.mxu2 }
  0xd2   : > { %v1104_v17 = vpop.f32.mrf.mxu3  ;;  %v906_v18 = vpop.f32.mrf.mxu0 }
  0xd3   : > { %v1105_v41 = vadd.f32 %v1104_v17, %v1091_v15  ;;  %v2959_v15 = vld [vmem:[%s3622_s7 + $0x118] sm:$0xff]  ;;  %v2970_v17 = vld [vmem:[%s3622_s7 + $0x170] sm:$0xff]  ;;  %v2976_v18 = vld [vmem:[%s3622_s7 + $0x1a0] sm:$0xff] }
  0xd4   : > { %1837 = vmatpush.bf16.msrb.mxu2 %v2959_v15  ;;  %1847 = vmatpush.bf16.msrb.mxu3 %v2970_v17 }
  0xd5   : > { %v919_v19 = vpop.f32.mrf.mxu1  ;;  %v1108_v48 = vadd.f32 %v1105_v41, %v921_v43  ;;  %2006 = vmatpush.bf16.msra.mxu0 %v2976_v18  ;;  %v2972_v43 = vld [vmem:[%s3622_s7 + $0x180] sm:$0xff]  ;;  %v2994_v18 = vld [vmem:[%s3622_s7 + $0x230] sm:$0xff] }
  0xd6   : > { %v2987_v19 = vld [vmem:[%s3622_s7 + $0x1f8] sm:$0xff] }
  0xd7   : > { %2016 = vmatpush.bf16.msra.mxu1 %v2987_v19 }
  0xd8   : > { %1838 = vmatpush.bf16.msrb.mxu2 %v2958_v22 }
  0xd9   : > { %v1093_v23 = vpop.f32.mrf.mxu2  ;;  %2007 = vmatpush.bf16.msra.mxu0 %v2975_v27  ;;  %v2993_v27 = vld [vmem:[%s3622_s7 + $0x228] sm:$0xff] }
  0xda   : > { %v1106_v26 = vpop.f32.mrf.mxu3 }
  0xdb   : > { %v2969_v26 = vld [vmem:[%s3622_s7 + $0x168] sm:$0xff]  ;;  %2017 = vmatpush.bf16.msra.mxu1 %v2986_v28 }
  0xdc   : > { %1848 = vmatpush.bf16.msrb.mxu3 %v2969_v26  ;;  %1839 = vmatpush.bf16.msrb.mxu2 %v2957_v29 }
  0xdd   : > { %2008 = vmatpush.bf16.msra.mxu0 %v2974_v31 }
  0xdf   : > { %2018 = vmatpush.bf16.msra.mxu1 %v2985_v32 }
  0xe0   : > { %1849 = vmatpush.bf16.msrb.mxu3 %v2968_v30  ;;  %1840 = vmatpush.bf16.msrb.mxu2 %v2956_v34 }
  0xe1   : > { %2009 = vmatpush.bf16.msra.mxu0 %v2973_v36 }
  0xe3   : > { %2019 = vmatpush.bf16.msra.mxu1 %v2984_v37 }
  0xe4   : > { %1850 = vmatpush.bf16.msrb.mxu3 %v2967_v35 }
  0xe5   : > { %2010 = vmatpush.bf16.msra.mxu0 %v2972_v43  ;;  %v2990_v43 = vld [vmem:[%s3622_s7 + $0x210] sm:$0xff] }
  0xe7   : > { %2020 = vmatpush.bf16.msra.mxu1 %v2983_v44 }
  0xe8   : > { %1851 = vmatpush.bf16.msrb.mxu3 %v2966_v42 }
  0xea   : > { %v1188_v53 = vpop.f32.mrf.mxu0 }
  0xeb   : > { %v1192_v57 = vadd.f32 %v1188_v53, %v1108_v48  ;;  %2021 = vmatpush.bf16.msra.mxu1 %v2982_v46  ;;  %v2989_v46 = vld [vmem:[%s3622_s7 + $0x208] sm:$0xff] }
  0xec   : > { %1852 = vmatpush.bf16.msrb.mxu3 %v2965_v45 }
  0xed   : > { %v1281_v54 = vpop.f32.mrf.mxu1  ;;  %v1197_v60 = vmul.f32 %v3005_v49, %v1192_v57  ;;  %v2964_v49 = vld [vmem:[%s3622_s7 + $0x140] sm:$0xff] }
  0xee   : > { %v1289_v11 = vmul.f32 %v3007_v1, %v1281_v54  ;;  %v2980_v54 = vld [vmem:[%s3622_s7 + $0x1c0] sm:$0xff] }
  0xef   : > { %v1202_v0 = vadd.f32 %v3006_v58, %v1197_v60  ;;  %2022 = vmatpush.bf16.msra.mxu1 %v2981_v51 }
  0xf0   : > { %v3497_v16 = vadd.f32 %v3008_v6, %v1289_v11  ;;  %1853 = vmatpush.bf16.msrb.mxu3 %v2964_v49 }
  0xf1   : > { %v1203_v4 = vmax.f32 %v1202_v0, 0.0 }
  0xf2   : > { %v1190_v5 = vpop.f32.mrf.mxu0  ;;  %v1297_v21 = vrot.slane %v3497_v16, 3  ;;  %v1298_v25 = vrot.slane %v3497_v16, 4  ;;  %v1296_v47 = vrot.slane %v3497_v16, 1 }
  0xf3   : > { %v1205_v10 = vrot.slane %v1203_v4, 1  ;;  %1303 = vst [vmem:[#allocation1 + $0x1] ss:$9 sm:$0xff] %v1203_v4  ;;  %v1206_v20 = vrot.slane %v1203_v4, 3  ;;  %v1207_v23 = vrot.slane %v1203_v4, 4  ;;  %2023 = vmatpush.bf16.msra.mxu1 %v2980_v54 }
  0xf5   : > { %v1283_v9 = vpop.f32.mrf.mxu1  ;;  %1305 = vst [vmem:[#allocation1 + $0x2] ss:$9 sm:$0xff] %v1205_v10 }
  0xf6   : > { %v1861_v9 = vld [vmem:[#allocation2 + $0x8] sm:$0x1] }
  0xfc   : > { %v1306_v24 = vld [vmem:[#allocation1] sm:$0xff] }
  0xfd   : > { %1307 = vst [vmem:[#allocation1 + $0x1] ss:$9 sm:$0xff] %v1206_v20  ;;  %v1313_v33 = vsel %vm1312_vm0, 0.0, %v1306_v24  ;;  %v1865_v20 = vunpack.c.l.b16 %v1861_v9 }
  0xfe   : > { %1308 = vst [vmem:[#allocation1 + $0x2] ss:$9 sm:$0xff] %v1207_v23  ;;  %v1316_v39 = vsel %vm1315_vm1, %v1313_v33, 0.0  ;;  %v2992_v33 = vld [vmem:[%s3622_s7 + $0x220] sm:$0xff] }
  0xff   : > { %2132 = vst [vmem:[#allocation1 + $0x20] ss:$4 sm:$0xff] %v1297_v21 }
 0x100   : > { %2134 = vst [vmem:[#allocation1 + $0x21] ss:$4 sm:$0xff] %v1298_v25 }
 0x105   : > { %v1309_v38 = vld [vmem:[#allocation1] sm:$0xff] }
 0x106   : > { %v1314_v40 = vsel %vm1312_vm0, 0.0, %v1309_v38  ;;  %1320 = vst [vmem:[#allocation1] ss:$2 sm:$0xff] %v1316_v39  ;;  %v2991_v38 = vld [vmem:[%s3622_s7 + $0x218] sm:$0xff] }
 0x107   : > { %v1317_v41 = vsel %vm1315_vm1, %v1314_v40, 0.0 }
 0x108   : > { %1322 = vst [vmem:[#allocation1 + $0x1] ss:$2 sm:$0xff] %v1317_v41 }
 0x10f   : > { %v1323_v48 = vld.sshfl [vmem:[#allocation1] sm:$0xff pattern:$0x75316420] }
 0x110   : > { %v1325_v50 = vpack.c.bf16 %v1323_v48, %v1323_v48  ;;  %2127 = vst [vmem:[#allocation1] ss:$4 sm:$0xff] %v3497_v16  ;;  %v2988_v48 = vld [vmem:[%s3622_s7 + $0x200] sm:$0xff] }
 0x111   : > { %2129 = vst [vmem:[#allocation1 + $0x1] ss:$4 sm:$0xff] %v1296_v47 }
 0x112   : > { %v1327_v52 = vrot.slane %v1325_v50, 6 }
 0x114   : > { %v1328_v53 = vrot.slane %v1327_v52, 4  ;;  %1331 = vst [vmem:[#allocation2] sm:$0xc] %v1327_v52 }
 0x116   : > { %1332 = vst [vmem:[#allocation2 + $0x4] sm:$0x3] %v1328_v53 }
 0x11b   : > { %v1333_v55 = vld [vmem:[#allocation2] sm:$0xf] }
 0x11c   : > { %v1380_v56 = vld [vmem:[#allocation2] sm:$0xe]  ;;  %1654 = vmatmul.bf16.vlgmr.msrb.gmra.mxu0 %v1333_v55  ;;  %v1337_v60 = vunpack.c.l.b16 %v1333_v55 }
 0x11d   : > { %v1381_v57 = vld [vmem:[#allocation2] sm:$0xc]  ;;  %v1334_v59 = vld [vmem:[#allocation2 + $0x4] sm:$0x1]  ;;  %v1384_v63 = vunpack.c.l.b16 %v1380_v56  ;;  %v2030_v45 = vld [vmem:[#allocation2 + $0x4] sm:$0xe] }
 0x11e   : > { %v1673_v58 = vld [vmem:[#allocation2] sm:$0x8]  ;;  %v1382_v61 = vld [vmem:[#allocation2 + $0x4] sm:$0x3]  ;;  %v1338_v62 = vunpack.c.l.b16 %v1334_v59  ;;  %v1388_v0 = vunpack.c.l.b16 %v1381_v57  ;;  %v2048_v47 = vunpack.c.l.b16 %v2030_v45 }
 0x11f   : > { %v1389_v1 = vunpack.c.l.b16 %v1382_v61  ;;  %v1672_v3 = vld [vmem:[#allocation2 + $0x4] sm:$0x7]  ;;  %v1678_v2 = vunpack.c.l.b16 %v1673_v58 }
 0x120   : > { %v1675_v4 = vunpack.c.l.b16 %v1672_v3  ;;  %v1339_v5 = vpack.c.b16 %v1338_v62, %v1337_v60  ;;  %v1385_v6 = vpack.c.b16 %v1338_v62, %v1384_v63  ;;  %v1860_v14 = vld [vmem:[#allocation2 + $0x4] sm:$0xf]  ;;  %v2049_v49 = vpack.c.b16 %v1865_v20, %v2048_v47 }
 0x121   : > { %v1390_v7 = vpack.c.b16 %v1389_v1, %v1388_v0  ;;  %v1864_v19 = vunpack.c.l.b16 %v1860_v14 }
 0x122   : > { %v1679_v10 = vpack.c.b16 %v1675_v4, %v1678_v2  ;;  %v1343_v11 = vshll.u32 %v1339_v5, 16  ;;  %v1424_v12 = vrot.slane %v1385_v6, 1  ;;  %v1341_v15 = vshrl.u32 %v1339_v5, 16 }
 0x123   : > { %v2551_v13 = vrot.slane %v1390_v7, 2  ;;  %v1676_v22 = vpack.c.b16 %v1675_v4, %v1388_v0  ;;  %v1866_v26 = vpack.c.b16 %v1865_v20, %v1864_v19  ;;  %v2050_v50 = vrot.slane %v2049_v49, 1  ;;  %v2135_v19 = vld [vmem:[#allocation1 + $0x20] sm:$0xff] }
 0x124   : > { %v1345_v16 = vrot.slane %v1343_v11, 1  ;;  %1532 = vmatmul.bf16.vlgmr.msra.gmra.mxu2 %v1424_v12  ;;  %v1683_v17 = vshll.u32 %v1679_v10, 16  ;;  %v1681_v23 = vshrl.u32 %v1679_v10, 16  ;;  %v3009_v10 = vld [vmem:[%s3623_s8] ss:$0 sm:$0xff] }
 0x125   : > { %1545 = vmatmul.bf16.vlgmr.msra.gmra.mxu3 %v2551_v13  ;;  %2100 = vmatpush.bf16.msra.mxu2 %v2995_v8  ;;  %v1720_v28 = vshrl.u32 %v1676_v22, 16  ;;  %v1723_v29 = vshll.u32 %v1676_v22, 16  ;;  %v1870_v32 = vshll.u32 %v1866_v26, 16  ;;  %v1868_v42 = vshrl.u32 %v1866_v26, 16  ;;  %v3010_v13 = vld [vmem:[%s3624_s9] ss:$0 sm:$0xff] }
 0x126   : > { %v1346_v21 = vor.u32 %v1345_v16, %v1341_v15  ;;  %v1685_v24 = vrot.slane %v1683_v17, 1  ;;  %v2130_v16 = vld [vmem:[#allocation1] sm:$0xff] }
 0x127   : > { %v1722_v34 = vrot.slane %v1720_v28, 2  ;;  %v1725_v35 = vrot.slane %v1723_v29, 3  ;;  %v1872_v39 = vrot.slane %v1870_v32, 1  ;;  %v2158_v32 = vld [vmem:[%s3625_s10] sm:$0x1] }
 0x128   : > { %1667 = vmatmul.bf16.vlgmr.msrb.gmra.mxu1 %v1346_v21  ;;  %v1686_v25 = vor.u32 %v1685_v24, %v1681_v23 }
 0x129   : > { %2101 = vmatpush.bf16.msra.mxu2 %v2994_v18  ;;  %v1726_v40 = vor.u32 %v1725_v35, %v1722_v34  ;;  %v1873_v44 = vor.u32 %v1872_v39, %v1868_v42 }
 0x12a   : > { %v1728_v30 = vshrl.u32 %v1686_v25, 16  ;;  %v1731_v31 = vshll.u32 %v1686_v25, 16 }
 0x12c   : > { %2011 = vmatmul.bf16.vlgmr.msra.gmra.mxu0 %v1860_v14  ;;  %v1730_v36 = vrot.slane %v1728_v30, 2  ;;  %v1733_v37 = vrot.slane %v1731_v31, 3 }
 0x12d   : > { %2102 = vmatpush.bf16.msra.mxu2 %v2993_v27 }
 0x12e   : > { %v1734_v41 = vor.u32 %v1733_v37, %v1730_v36  ;;  %v2163_v36 = vld [vmem:[#allocation3] sm:$0x1] }
 0x131   : > { %2103 = vmatpush.bf16.msra.mxu2 %v2992_v33 }
 0x134   : > { %1841 = vmatmul.bf16.vlgmr.msrb.gmra.mxu2 %v1726_v40 }
 0x135   : > { %1854 = vmatmul.bf16.vlgmr.msrb.gmra.mxu3 %v1734_v41  ;;  %2104 = vmatpush.bf16.msra.mxu2 %v2991_v38 }
 0x138   : > { %2024 = vmatmul.bf16.vlgmr.msra.gmra.mxu1 %v1873_v44 }
 0x139   : > { %2105 = vmatpush.bf16.msra.mxu2 %v2990_v43 }
 0x13d   : > { %2106 = vmatpush.bf16.msra.mxu2 %v2989_v46 }
 0x141   : > { %2107 = vmatpush.bf16.msra.mxu2 %v2988_v48 }
 0x144   : > { %2108 = vmatmul.bf16.vlgmr.msra.gmra.mxu2 %v2050_v50 }
 0x199   : > { %v1655_v51 = vpop.f32.mrf.mxu0 }
 0x1a1   : > { %v1657_v52 = vpop.f32.mrf.mxu0 }
 0x1a5   : > { %v1668_v53 = vpop.f32.mrf.mxu1 }
 0x1a7   : > { %v1533_v54 = vpop.f32.mrf.mxu2 }
 0x1a8   : > { %v1546_v55 = vpop.f32.mrf.mxu3 }
 0x1a9   : > { %v2012_v56 = vpop.f32.mrf.mxu0  ;;  %v1547_v0 = vadd.f32 %v1546_v55, %v1533_v54 }
 0x1ab   : > { %v1656_v1 = vadd.f32 %v1655_v51, %v1547_v0 }
 0x1ad   : > { %v1670_v57 = vpop.f32.mrf.mxu1  ;;  %v1669_v6 = vadd.f32 %v1668_v53, %v1656_v1 }
 0x1af   : > { %v1535_v58 = vpop.f32.mrf.mxu2 }
 0x1b0   : > { %v1548_v59 = vpop.f32.mrf.mxu3 }
 0x1b1   : > { %v2014_v60 = vpop.f32.mrf.mxu0 }
 0x1b5   : > { %v2025_v61 = vpop.f32.mrf.mxu1 }
 0x1b6   : > { %v2026_v8 = vadd.f32 %v2025_v61, %v2012_v56 }
 0x1b7   : > { %v1842_v62 = vpop.f32.mrf.mxu2 }
 0x1b8   : > { %v1855_v63 = vpop.f32.mrf.mxu3 }
 0x1b9   : > { %v1856_v4 = vadd.f32 %v1855_v63, %v1842_v62 }
 0x1bb   : > { %v1859_v7 = vadd.f32 %v1856_v4, %v1669_v6 }
 0x1bd   : > { %v2027_v3 = vpop.f32.mrf.mxu1  ;;  %v2029_v9 = vadd.f32 %v2026_v8, %v1859_v7 }
 0x1bf   : > { %v1844_v2 = vpop.f32.mrf.mxu2 }
 0x1c0   : > { %v1857_v5 = vpop.f32.mrf.mxu3 }
 0x1c7   : > { %v2109_v11 = vpop.f32.mrf.mxu2 }
 0x1c8   : > { %v2113_v12 = vadd.f32 %v2109_v11, %v2029_v9 }
 0x1ca   : > { %v2118_v14 = vmul.f32 %v3009_v10, %v2113_v12 }
 0x1cc   : > { %v2123_v15 = vadd.f32 %v3010_v13, %v2118_v14 }
 0x1ce   : > { %v2125_v17 = vrot.slane %v2123_v15, 4  ;;  %v2138_v18 = vadd.f32 %v2130_v16, %v2123_v15 }
 0x1cf   : > { %v2111_v20 = vpop.f32.mrf.mxu2 }
 0x1d0   : > { %v2139_v21 = vadd.f32 %v2135_v19, %v2125_v17  ;;  %v2140_v22 = vmax.f32 %v2138_v18, 0.0 }
 0x1d2   : > { %v2141_v23 = vmax.f32 %v2139_v21, 0.0  ;;  %2144 = vst [vmem:[#allocation1] ss:$4 sm:$0xff] %v2140_v22 }
 0x1d4   : > { %2146 = vst [vmem:[#allocation1 + $0x1] ss:$4 sm:$0xff] %v2141_v23 }
 0x1db   : > { %v2147_v24 = vld.sshfl [vmem:[#allocation1] sm:$0xff pattern:$0x73625140] }
 0x1dc   : > { %v2150_v25 = vsel %vm2149_vm2, %v2147_v24, 0.0 }
 0x1dd   : > { %v2151_v26 = vrot.slane %v2150_v25, 4 }
 0x1df   : > { %v2152_v27 = vadd.f32 %v2151_v26, %v2150_v25 }
 0x1e1   : > { %v2153_v28 = vrot.slane %v2152_v27, 2 }
 0x1e3   : > { %v2154_v29 = vadd.f32 %v2153_v28, %v2152_v27 }
 0x1e5   : > { %v2155_v30 = vrot.slane %v2154_v29, 1 }
 0x1e7   : > { %v2156_v31 = vadd.f32 %v2155_v30, %v2154_v29 }
 0x1e9   : > { %v2157_v33 = vmul.f32 0.25, %v2156_v31 }
 0x1eb   : > { %v2159_v34 = vmul.f32 %v2158_v32, %v2157_v33 }
 0x1ed   : > { %v2160_v35 = vsel %vm1312_vm0, %v2159_v34, 0.0 }
 0x1ee   : > { %2161 = vadd.xlane.f32.xlu0 %v2160_v35 }
 0x261   : > { %v2162_v37 = vpop.xlane.xlu0 %2161 }
 0x262   : > { %v2164_v38 = vadd.f32 %v2163_v36, %v2162_v37 }
 0x264   : > { %2166 = vst.msk [vmem:[%s411_s14] sm:$0x1] %vm2165_vm3, %v2164_v38 }
 0x265 PF: > { %s24_s23 = sadd.s32 1, %s3017_s23  }
 0x266   : > { %p21_p4 = scmp.ge.s32.totalorder %s24_s23, 4  }
 0x268   :  { %23 = sbr.rel (!%p21_p4) target bundleno = 3 (0x3), region = 108 }

</bundles_post_ra>
